<compile_context>
chip_gen: v5e
topology: v5e:2x2
jax: 0.10.0
libtpu: 0.0.40
codegen_flags: <defaults>
</compile_context>

<pallas_src>
import functools
import math

import numpy as np
import jax
import jax.numpy as jnp
from jax import lax
from jax.experimental import pallas as pl
from jax.experimental.pallas import tpu as pltpu


_VMEM_LIMIT = 48 * 1024 * 1024   # review: explicit scoped-VMEM budget, safe on v5e/v6e/v7x


# ------------------------------ in-kernel helpers ------------------------------

def _ln_rows(x, g, b, eps):
    """LayerNorm over the last dim of a (rows, D) f32 slab; g,b are (1, D)."""
    mean = jnp.mean(x, axis=-1, keepdims=True)
    var = jnp.mean(jnp.square(x - mean), axis=-1, keepdims=True)
    return (x - mean) * lax.rsqrt(var + eps) * g + b


def _erf_poly(x):
    # Abramowitz & Stegun 7.1.26 polynomial, max |err| ~1.5e-7 (f32-exact in practice).
    a1, a2, a3, a4, a5 = 0.254829592, -0.284496736, 1.421413741, -1.453152027, 1.061405429
    p = 0.3275911
    sgn = jnp.where(x >= 0.0, 1.0, -1.0)
    ax = jnp.abs(x)
    t = pl.reciprocal(1.0 + p * ax, approx=True)      # EUP slot instead of VPU divide
    poly = ((((a5 * t + a4) * t + a3) * t + a2) * t + a1) * t
    return sgn * (1.0 - poly * jnp.exp(-ax * ax))


def _gelu_exact(x):
    # nn.GELU (exact, erf-based) semantics, evaluated in f32.
    return 0.5 * x * (1.0 + _erf_poly(x * 0.7071067811865476))


# ------------------------------- Pallas kernels -------------------------------

def _linear_add_kernel(x_ref, w_ref, b_ref, add_ref, o_ref):
    """o = x @ w + b + add   (patch embed fused with pos-embed add)."""
    y = jnp.dot(x_ref[0], w_ref[...], preferred_element_type=jnp.float32) \
        + b_ref[...] + add_ref[0]
    o_ref[0] = y.astype(o_ref.dtype)


def linear_add(x, w, b, add):
    """x: (N, T, K) bf16, w: (K, Nout) bf16, b: (1, Nout) f32, add: (1, T, Nout) f32."""
    N, T, K = x.shape
    Nout = w.shape[1]
    return pl.pallas_call(
        _linear_add_kernel,
        out_shape=jax.ShapeDtypeStruct((N, T, Nout), jnp.bfloat16),
        grid=(N,),
        in_specs=[pl.BlockSpec((1, T, K), lambda n: (n, 0, 0)),
                  pl.BlockSpec((K, Nout), lambda n: (0, 0)),
                  pl.BlockSpec((1, Nout), lambda n: (0, 0)),
                  pl.BlockSpec((1, T, Nout), lambda n: (0, 0, 0))],
        out_specs=pl.BlockSpec((1, T, Nout), lambda n: (n, 0, 0)),
        compiler_params=pltpu.CompilerParams(
            dimension_semantics=("parallel",), vmem_limit_bytes=_VMEM_LIMIT),
    )(x, w, b, add)


def _ln_linear_kernel(x_ref, g_ref, bln_ref, w_ref, b_ref, o_ref, *, eps):
    """o = LayerNorm(x) @ w + b   (fused norm + projection)."""
    x = x_ref[0].astype(jnp.float32)
    h = _ln_rows(x, g_ref[...], bln_ref[...], eps).astype(jnp.bfloat16)
    y = jnp.dot(h, w_ref[...], preferred_element_type=jnp.float32) + b_ref[...]
    o_ref[0] = y.astype(o_ref.dtype)


def ln_linear(x, g, bln, w, b, eps, out_dtype):
    """x: (N, T, K) bf16, g/bln: (1, K) f32, w: (K, Nout) bf16, b: (1, Nout) f32."""
    N, T, K = x.shape
    Nout = w.shape[1]
    return pl.pallas_call(
        functools.partial(_ln_linear_kernel, eps=eps),
        out_shape=jax.ShapeDtypeStruct((N, T, Nout), out_dtype),
        grid=(N,),
        in_specs=[pl.BlockSpec((1, T, K), lambda n: (n, 0, 0)),
                  pl.BlockSpec((1, K), lambda n: (0, 0)),
                  pl.BlockSpec((1, K), lambda n: (0, 0)),
                  pl.BlockSpec((K, Nout), lambda n: (0, 0)),
                  pl.BlockSpec((1, Nout), lambda n: (0, 0))],
        out_specs=pl.BlockSpec((1, T, Nout), lambda n: (n, 0, 0)),
        compiler_params=pltpu.CompilerParams(
            dimension_semantics=("parallel",), vmem_limit_bytes=_VMEM_LIMIT),
    )(x, g, bln, w, b)


def _stack_block_kernel(x_ref,
                        ln1g_ref, ln1b_ref, qkvw_ref, qkvb_ref,
                        projw_ref, projb_ref, ln2g_ref, ln2b_ref,
                        fc1w_ref, fc1b_ref, fc2w_ref, fc2b_ref,
                        o_ref, *, num_heads, eps):
    """One timm Block of layer l applied to the VMEM-resident activation of batch n.

    Grid = (batch, depth).  o_ref has a constant block index over the depth axis, so the
    (T, D) residual stream never leaves VMEM between layers; layer weights stream in per
    grid step (double-buffered -> next-layer weight DMA overlaps this layer's compute).
    """
    l = pl.program_id(1)

    @pl.when(l == 0)
    def _():
        o_ref[...] = x_ref[...]                       # seed residual stream at layer 0

    x = o_ref[0].astype(jnp.float32)                  # (T, D) residual stream, f32 math
    T, D = x.shape
    hd = D // num_heads
    scale = hd ** -0.5

    # ---- attention branch:  x = x + proj(MHA(LN1(x))) ----
    h = _ln_rows(x, ln1g_ref[0], ln1b_ref[0], eps).astype(jnp.bfloat16)
    # single full-width QKV matmul (uses all MXU columns), f32 accumulate + bias
    qkv = (jnp.dot(h, qkvw_ref[0], preferred_element_type=jnp.float32)
           + qkvb_ref[0]).astype(jnp.bfloat16)        # (T, 3D), column order (qkv, head, hd)
    heads = []
    # NOTE: static unroll is fine at toy H; at H=12-16 / long T switch to lax.fori_loop
    # (unroll<=2) over heads to bound q/k/v/score live ranges (review item).
    for hh in range(num_heads):
        q = qkv[:, hh * hd:(hh + 1) * hd]
        k = qkv[:, D + hh * hd:D + (hh + 1) * hd]
        v = qkv[:, 2 * D + hh * hd:2 * D + (hh + 1) * hd]
        # contraction on the hd axis of both operands: no k.T relayout
        s = lax.dot_general(q, k, (((1,), (1,)), ((), ())),
                            preferred_element_type=jnp.float32) * scale      # (T, T) f32
        s = s - jnp.max(s, axis=-1, keepdims=True)
        p = jnp.exp(s)
        p = p * pl.reciprocal(jnp.sum(p, axis=-1, keepdims=True), approx=True)
        heads.append(jnp.dot(p.astype(jnp.bfloat16), v,
                             preferred_element_type=jnp.float32))            # (T, hd)
    attn = jnp.concatenate(heads, axis=-1).astype(jnp.bfloat16)              # (T, D) concat-by-head
    # single full-width proj matmul (full contraction depth D); residual + bias in-kernel
    x = x + jnp.dot(attn, projw_ref[0], preferred_element_type=jnp.float32) + projb_ref[0]

    # ---- MLP branch:  x = x + fc2(GELU(fc1(LN2(x)))) ----
    h2 = _ln_rows(x, ln2g_ref[0], ln2b_ref[0], eps).astype(jnp.bfloat16)
    m = jnp.dot(h2, fc1w_ref[0], preferred_element_type=jnp.float32) + fc1b_ref[0]
    m = _gelu_exact(m).astype(jnp.bfloat16)
    m = jnp.dot(m, fc2w_ref[0], preferred_element_type=jnp.float32) + fc2b_ref[0]
    o_ref[0] = (x + m).astype(o_ref.dtype)


def fused_block_stack(x, bs, num_heads, eps):
    """Run ALL transformer blocks in one pallas_call; x: (N, T, D) bf16."""
    N, T, D = x.shape
    depth = bs["qkv_w"].shape[0]
    hidden = bs["fc1_w"].shape[2]

    x_spec = pl.BlockSpec((1, T, D), lambda n, l: (n, 0, 0))     # constant over depth axis

    def wspec(r, c):
        return pl.BlockSpec((1, r, c), lambda n, l: (l, 0, 0))   # streams with layer index

    return pl.pallas_call(
        functools.partial(_stack_block_kernel, num_heads=num_heads, eps=eps),
        out_shape=jax.ShapeDtypeStruct((N, T, D), jnp.bfloat16),
        grid=(N, depth),
        in_specs=[
            x_spec,
            wspec(1, D), wspec(1, D),                 # ln1 g, b
            wspec(D, 3 * D), wspec(1, 3 * D),         # qkv w, b
            wspec(D, D), wspec(1, D),                 # proj w, b
            wspec(1, D), wspec(1, D),                 # ln2 g, b
            wspec(D, hidden), wspec(1, hidden),       # fc1 w, b
            wspec(hidden, D), wspec(1, D),            # fc2 w, b
        ],
        out_specs=x_spec,
        compiler_params=pltpu.CompilerParams(
            dimension_semantics=("parallel", "arbitrary"),       # batch shards across TCs
            vmem_limit_bytes=_VMEM_LIMIT),
    )(x,
      bs["ln1_g"], bs["ln1_b"], bs["qkv_w"], bs["qkv_b"],
      bs["proj_w"], bs["proj_b"], bs["ln2_g"], bs["ln2_b"],
      bs["fc1_w"], bs["fc1_b"], bs["fc2_w"], bs["fc2_b"])


# ------------------------------ sin-cos pos embed ------------------------------

def _get_1d_sincos(embed_dim, pos):
    omega = np.arange(embed_dim // 2, dtype=np.float64)
    omega /= embed_dim / 2.0
    omega = 1.0 / 10000 ** omega
    out = np.einsum("m,d->md", pos.reshape(-1), omega)
    return np.concatenate([np.sin(out), np.cos(out)], axis=1)


def get_2d_sincos_pos_embed(embed_dim, grid_size, cls_token=False):
    grid_h = np.arange(grid_size, dtype=np.float32)
    grid_w = np.arange(grid_size, dtype=np.float32)
    grid = np.stack(np.meshgrid(grid_w, grid_h), axis=0).reshape(2, 1, grid_size, grid_size)
    emb_h = _get_1d_sincos(embed_dim // 2, grid[0])
    emb_w = _get_1d_sincos(embed_dim // 2, grid[1])
    pos = np.concatenate([emb_h, emb_w], axis=1)
    if cls_token:
        pos = np.concatenate([np.zeros([1, embed_dim]), pos], axis=0)
    return pos.astype(np.float32)


# ------------------------------- parameter init -------------------------------

def xavier_uniform(key, fan_in, fan_out):
    limit = math.sqrt(6.0 / (fan_in + fan_out))
    return jax.random.uniform(key, (fan_in, fan_out), jnp.float32, -limit, limit)


def init_block_stack(key, dim, mlp_ratio, depth):
    """All per-layer weights pre-stacked along a leading layer axis (review: hoist all
    per-forward restructuring out of the jitted forward).  Matmul weights in bf16."""
    hidden = int(dim * mlp_ratio)
    keys = jax.random.split(key, depth)

    def one(k):
        ks = jax.random.split(k, 4)
        return dict(qkv_w=xavier_uniform(ks[0], dim, 3 * dim),
                    proj_w=xavier_uniform(ks[1], dim, dim),
                    fc1_w=xavier_uniform(ks[2], dim, hidden),
                    fc2_w=xavier_uniform(ks[3], hidden, dim))

    per = [one(k) for k in keys]
    stack = lambda name: jnp.stack([p[name] for p in per], axis=0).astype(jnp.bfloat16)
    return dict(
        ln1_g=jnp.ones((depth, 1, dim), jnp.float32),
        ln1_b=jnp.zeros((depth, 1, dim), jnp.float32),
        qkv_w=stack("qkv_w"), qkv_b=jnp.zeros((depth, 1, 3 * dim), jnp.float32),
        proj_w=stack("proj_w"), proj_b=jnp.zeros((depth, 1, dim), jnp.float32),
        ln2_g=jnp.ones((depth, 1, dim), jnp.float32),
        ln2_b=jnp.zeros((depth, 1, dim), jnp.float32),
        fc1_w=stack("fc1_w"), fc1_b=jnp.zeros((depth, 1, hidden), jnp.float32),
        fc2_w=stack("fc2_w"), fc2_b=jnp.zeros((depth, 1, dim), jnp.float32),
    )


def init_params(key, cfg):
    C, P = cfg["in_chans"], cfg["patch_size"]
    D, Dd = cfg["embed_dim"], cfg["decoder_embed_dim"]
    gs = cfg["img_size"] // P
    ks = jax.random.split(key, 7)
    pos = jnp.asarray(get_2d_sincos_pos_embed(D, gs, cls_token=True))[None]    # (1, L+1, D)
    dpos = jnp.asarray(get_2d_sincos_pos_embed(Dd, gs, cls_token=True))[None]
    cls_token = 0.02 * jax.random.normal(ks[1], (1, 1, D), jnp.float32)
    return dict(
        patch_w=xavier_uniform(ks[0], C * P * P, D).astype(jnp.bfloat16),      # Conv2d(k=s=P)
        patch_b=jnp.zeros((1, D), jnp.float32),
        pos_embed_patch=pos[:, 1:, :],                       # fused into patch-embed kernel
        cls_pos=cls_token + pos[:, :1, :],                   # cls_token + its pos, precomputed
        blocks=init_block_stack(ks[2], D, cfg["mlp_ratio"], cfg["depth"]),
        norm_g=jnp.ones((1, D), jnp.float32), norm_b=jnp.zeros((1, D), jnp.float32),
        dec_embed_w=xavier_uniform(ks[3], D, Dd).astype(jnp.bfloat16),
        dec_embed_b=jnp.zeros((1, Dd), jnp.float32),
        mask_token=0.02 * jax.random.normal(ks[4], (1, 1, Dd), jnp.float32),
        dec_pos_embed=dpos,
        dec_blocks=init_block_stack(ks[5], Dd, cfg["mlp_ratio"], cfg["decoder_depth"]),
        dec_norm_g=jnp.ones((1, Dd), jnp.float32), dec_norm_b=jnp.zeros((1, Dd), jnp.float32),
        dec_pred_w=xavier_uniform(ks[6], Dd, P * P * C).astype(jnp.bfloat16),
        dec_pred_b=jnp.zeros((1, P * P * C), jnp.float32),
    )


# --------------------------------- MAE forward ---------------------------------

def forward_encoder(params, imgs, mask_ratio, mask_key, cfg):
    N, C, H, W = imgs.shape
    P, D = cfg["patch_size"], cfg["embed_dim"]
    h = w = H // P
    L = h * w

    # PatchEmbed: Conv2d(kernel=stride=P) == extract patches in (c,p,q) order + matmul;
    # pos-embed add fused into the same kernel.
    x = imgs.reshape(N, C, h, P, w, P)
    x = jnp.einsum("nchpwq->nhwcpq", x).reshape(N, L, C * P * P).astype(jnp.bfloat16)
    x = linear_add(x, params["patch_w"], params["patch_b"], params["pos_embed_patch"])

    # random_masking (data-dependent argsort/gather shuffle kept as XLA glue)
    len_keep = int(L * (1 - mask_ratio))
    noise = jax.random.uniform(mask_key, (N, L))
    ids_shuffle = jnp.argsort(noise, axis=1)
    ids_restore = jnp.argsort(ids_shuffle, axis=1)
    ids_keep = ids_shuffle[:, :len_keep]
    x = jnp.take_along_axis(x, jnp.broadcast_to(ids_keep[:, :, None], (N, len_keep, D)), axis=1)
    mask = jnp.ones((N, L), jnp.float32).at[:, :len_keep].set(0.0)
    mask = jnp.take_along_axis(mask, ids_restore, axis=1)

    cls = jnp.broadcast_to(params["cls_pos"].astype(jnp.bfloat16), (N, 1, D))
    x = jnp.concatenate([cls, x], axis=1)

    x = fused_block_stack(x, params["blocks"], cfg["num_heads"], cfg["ln_eps"])
    # NOTE: encoder final LayerNorm is fused with decoder_embed (ln_linear) in
    # forward_decoder — end-to-end forward output is identical to norm-then-embed.
    return x, mask, ids_restore


def forward_decoder(params, latent, ids_restore, cfg):
    N, Tv, _ = latent.shape
    Dd = cfg["decoder_embed_dim"]
    L = ids_restore.shape[1]

    # encoder final norm + decoder_embed fused into one kernel
    x = ln_linear(latent, params["norm_g"], params["norm_b"],
                  params["dec_embed_w"], params["dec_embed_b"],
                  cfg["ln_eps"], jnp.bfloat16)                       # (N, Tv, Dd)

    mask_tokens = jnp.broadcast_to(params["mask_token"].astype(jnp.bfloat16),
                                   (N, L + 1 - Tv, Dd))
    x_ = jnp.concatenate([x[:, 1:, :], mask_tokens], axis=1)
    x_ = jnp.take_along_axis(x_, jnp.broadcast_to(ids_restore[:, :, None], (N, L, Dd)), axis=1)
    x = jnp.concatenate([x[:, :1, :], x_], axis=1)
    x = (x.astype(jnp.float32) + params["dec_pos_embed"]).astype(jnp.bfloat16)

    x = fused_block_stack(x, params["dec_blocks"], cfg["decoder_num_heads"], cfg["ln_eps"])

    # decoder final norm + decoder_pred fused into one kernel (f32 prediction output)
    pred = ln_linear(x, params["dec_norm_g"], params["dec_norm_b"],
                     params["dec_pred_w"], params["dec_pred_b"],
                     cfg["ln_eps"], jnp.float32)                     # (N, L+1, P*P*C)
    return pred[:, 1:, :]


def adaptive_unpatchify(pred, patch_size):
    # TODO(synk): assumes a square token grid (h == w), like the reference.
    N, L, PD = pred.shape
    h = w = int(round(L ** 0.5))
    c = PD // (patch_size ** 2)
    x = pred.reshape(N, h, w, patch_size, patch_size, c)
    x = jnp.einsum("nhwpqc->nchpwq", x)
    return x.reshape(N, c, h * patch_size, h * patch_size)


def mae_forward(params, imgs5d, mask_ratio, mask_key, cfg):
    imgs = imgs5d[:, 0]                                        # imgs.squeeze(1) -> NCHW
    latent, mask, ids_restore = forward_encoder(params, imgs, mask_ratio, mask_key, cfg)
    pred = forward_decoder(params, latent, ids_restore, cfg)
    out_vid = adaptive_unpatchify(pred, cfg["patch_size"])
    return out_vid[:, None]                                    # unsqueeze(1)


# ------------------------------------- main -------------------------------------

if __name__ == "__main__":
    # Feature dims chosen as multiples of 128 (lane-dense stores, full MXU tiles) per review,
    # while keeping shapes small.  Batch = 2 keeps the "parallel" grid even for v7x megacore.
    cfg = dict(img_size=16, patch_size=4, in_chans=4,
               embed_dim=128, depth=2, num_heads=4,
               decoder_embed_dim=128, decoder_depth=2, decoder_num_heads=4,
               mlp_ratio=4.0, ln_eps=1e-6)

    key = jax.random.PRNGKey(0)
    k_params, k_img, k_mask = jax.random.split(key, 3)

    params = init_params(k_params, cfg)
    imgs = jax.random.normal(k_img, (2, 1, cfg["in_chans"], cfg["img_size"], cfg["img_size"]),
                             jnp.float32)

    fwd = jax.jit(lambda p_, x_, k_: mae_forward(p_, x_, 0.5, k_, cfg))
    out = jax.block_until_ready(fwd(params, imgs, k_mask))

    assert out.shape == imgs.shape and out.dtype == jnp.float32
    assert bool(jnp.all(jnp.isfinite(out)))
    print("KERNEL_OK")
</pallas_src>

<mosaic_0001>
module attributes {stable_mosaic.version = 11 : i64} {
  func.func @_linear_add_kernel(%arg0: i32, %arg1: memref<1x16x64xbf16, #tpu.memory_space<vmem>>, %arg2: memref<64x128xbf16, #tpu.memory_space<vmem>>, %arg3: memref<1x128xf32, #tpu.memory_space<vmem>>, %arg4: memref<1x16x128xf32, #tpu.memory_space<vmem>>, %arg5: memref<1x16x128xbf16, #tpu.memory_space<vmem>>) attributes {dimension_semantics = [#tpu.dimension_semantics<parallel>], iteration_bounds = array<i64: 2>, scalar_prefetch = 0 : i64, scratch_operands = 0 : i64, tpu.core_type = #tpu.core_type<tc>, window_params = [{transform_indices = @transform_0, window_bounds = array<i64: 1, 16, 64>}, {pipeline_mode = #tpu.pipeline_mode<synchronous>, transform_indices = @transform_1, window_bounds = array<i64: 64, 128>}, {pipeline_mode = #tpu.pipeline_mode<synchronous>, transform_indices = @transform_2, window_bounds = array<i64: 1, 128>}, {pipeline_mode = #tpu.pipeline_mode<synchronous>, transform_indices = @transform_3, window_bounds = array<i64: 1, 16, 128>}, {transform_indices = @transform_4, window_bounds = array<i64: 1, 16, 128>}]} {
    %c0 = arith.constant 0 : index
    %c0_0 = arith.constant 0 : index
    %c0_1 = arith.constant 0 : index
    %0 = vector.load %arg1[%c0, %c0_0, %c0_1] : memref<1x16x64xbf16, #tpu.memory_space<vmem>>, vector<1x16x64xbf16>
    %1 = vector.shape_cast %0 : vector<1x16x64xbf16> to vector<16x64xbf16>
    %c0_2 = arith.constant 0 : index
    %c0_3 = arith.constant 0 : index
    %2 = vector.load %arg2[%c0_2, %c0_3] : memref<64x128xbf16, #tpu.memory_space<vmem>>, vector<64x128xbf16>
    %cst = arith.constant dense<0.000000e+00> : vector<16x128xf32>
    %3 = tpu.matmul %1, %2, %cst {dimension_numbers = #tpu.dot_dimension_numbers<[1], [0], [0], [1], [0, 0, 1, 1], [], []>} : vector<16x64xbf16>, vector<64x128xbf16>, vector<16x128xf32> -> vector<16x128xf32>
    %c0_4 = arith.constant 0 : index
    %c0_5 = arith.constant 0 : index
    %4 = vector.load %arg3[%c0_4, %c0_5] : memref<1x128xf32, #tpu.memory_space<vmem>>, vector<1x128xf32>
    %5 = vector.broadcast %4 : vector<1x128xf32> to vector<16x128xf32>
    %6 = arith.addf %3, %5 : vector<16x128xf32>
    %c0_6 = arith.constant 0 : index
    %c0_7 = arith.constant 0 : index
    %c0_8 = arith.constant 0 : index
    %7 = vector.load %arg4[%c0_6, %c0_7, %c0_8] : memref<1x16x128xf32, #tpu.memory_space<vmem>>, vector<1x16x128xf32>
    %8 = vector.shape_cast %7 : vector<1x16x128xf32> to vector<16x128xf32>
    %9 = arith.addf %6, %8 : vector<16x128xf32>
    %10 = arith.truncf %9 : vector<16x128xf32> to vector<16x128xbf16>
    %c0_9 = arith.constant 0 : index
    %c0_10 = arith.constant 0 : index
    %c0_11 = arith.constant 0 : index
    %11 = vector.load %arg5[%c0_9, %c0_10, %c0_11] : memref<1x16x128xbf16, #tpu.memory_space<vmem>>, vector<1x16x128xbf16>
    %12 = vector.shape_cast %11 : vector<1x16x128xbf16> to vector<16x128xbf16>
    %13 = vector.shape_cast %10 : vector<16x128xbf16> to vector<1x16x128xbf16>
    tpu.vector_store %arg5[%c0_9, %c0_10, %c0_11], %13 {strides = array<i32>} : memref<1x16x128xbf16, #tpu.memory_space<vmem>>, vector<1x16x128xbf16>,
    return
  }
  func.func @transform_0(%arg0: i32) -> (i32, i32, i32) {
    %c0_i32 = arith.constant 0 : i32
    %c0_i32_0 = arith.constant 0 : i32
    %c0_i32_1 = arith.constant 0 : i32
    return %arg0, %c0_i32, %c0_i32_0 : i32, i32, i32
  }
  func.func @transform_1(%arg0: i32) -> (i32, i32) {
    %c0_i32 = arith.constant 0 : i32
    %c0_i32_0 = arith.constant 0 : i32
    %c0_i32_1 = arith.constant 0 : i32
    return %c0_i32, %c0_i32_0 : i32, i32
  }
  func.func @transform_2(%arg0: i32) -> (i32, i32) {
    %c0_i32 = arith.constant 0 : i32
    %c0_i32_0 = arith.constant 0 : i32
    %c0_i32_1 = arith.constant 0 : i32
    return %c0_i32, %c0_i32_0 : i32, i32
  }
  func.func @transform_3(%arg0: i32) -> (i32, i32, i32) {
    %c0_i32 = arith.constant 0 : i32
    %c0_i32_0 = arith.constant 0 : i32
    %c0_i32_1 = arith.constant 0 : i32
    %c0_i32_2 = arith.constant 0 : i32
    return %c0_i32, %c0_i32_0, %c0_i32_1 : i32, i32, i32
  }
  func.func @transform_4(%arg0: i32) -> (i32, i32, i32) {
    %c0_i32 = arith.constant 0 : i32
    %c0_i32_0 = arith.constant 0 : i32
    %c0_i32_1 = arith.constant 0 : i32
    return %arg0, %c0_i32, %c0_i32_0 : i32, i32, i32
  }
}

module attributes {stable_mosaic.version = 11 : i64} {
  func.func @_stack_block_kernel(%arg0: i32, %arg1: i32, %arg2: memref<1x9x128xbf16, #tpu.memory_space<vmem>>, %arg3: memref<1x1x128xf32, #tpu.memory_space<vmem>>, %arg4: memref<1x1x128xf32, #tpu.memory_space<vmem>>, %arg5: memref<1x128x384xbf16, #tpu.memory_space<vmem>>, %arg6: memref<1x1x384xf32, #tpu.memory_space<vmem>>, %arg7: memref<1x128x128xbf16, #tpu.memory_space<vmem>>, %arg8: memref<1x1x128xf32, #tpu.memory_space<vmem>>, %arg9: memref<1x1x128xf32, #tpu.memory_space<vmem>>, %arg10: memref<1x1x128xf32, #tpu.memory_space<vmem>>, %arg11: memref<1x128x512xbf16, #tpu.memory_space<vmem>>, %arg12: memref<1x1x512xf32, #tpu.memory_space<vmem>>, %arg13: memref<1x512x128xbf16, #tpu.memory_space<vmem>>, %arg14: memref<1x1x128xf32, #tpu.memory_space<vmem>>, %arg15: memref<1x9x128xbf16, #tpu.memory_space<vmem>>) attributes {dimension_semantics = [#tpu.dimension_semantics<parallel>, #tpu.dimension_semantics<arbitrary>], iteration_bounds = array<i64: 2, 2>, scalar_prefetch = 0 : i64, scratch_operands = 0 : i64, tpu.core_type = #tpu.core_type<tc>, window_params = [{transform_indices = @transform_0, window_bounds = array<i64: 1, 9, 128>}, {transform_indices = @transform_1, window_bounds = array<i64: 1, 1, 128>}, {transform_indices = @transform_2, window_bounds = array<i64: 1, 1, 128>}, {transform_indices = @transform_3, window_bounds = array<i64: 1, 128, 384>}, {transform_indices = @transform_4, window_bounds = array<i64: 1, 1, 384>}, {transform_indices = @transform_5, window_bounds = array<i64: 1, 128, 128>}, {transform_indices = @transform_6, window_bounds = array<i64: 1, 1, 128>}, {transform_indices = @transform_7, window_bounds = array<i64: 1, 1, 128>}, {transform_indices = @transform_8, window_bounds = array<i64: 1, 1, 128>}, {transform_indices = @transform_9, window_bounds = array<i64: 1, 128, 512>}, {transform_indices = @transform_10, window_bounds = array<i64: 1, 1, 512>}, {transform_indices = @transform_11, window_bounds = array<i64: 1, 512, 128>}, {transform_indices = @transform_12, window_bounds = array<i64: 1, 1, 128>}, {transform_indices = @transform_13, window_bounds = array<i64: 1, 9, 128>}]} {
    %c0_i32 = arith.constant 0 : i32
    %0 = arith.cmpi eq, %arg1, %c0_i32 : i32
    %1 = arith.extui %0 : i1 to i32
    %c0_i32_0 = arith.constant 0 : i32
    %2 = arith.cmpi ne, %1, %c0_i32_0 : i32
    scf.if %2 {
      %c0_90 = arith.constant 0 : index
      %c0_91 = arith.constant 0 : index
      %c0_92 = arith.constant 0 : index
      %210 = vector.load %arg2[%c0_90, %c0_91, %c0_92] : memref<1x9x128xbf16, #tpu.memory_space<vmem>>, vector<1x9x128xbf16>
      %c0_93 = arith.constant 0 : index
      %c0_94 = arith.constant 0 : index
      %c0_95 = arith.constant 0 : index
      %211 = vector.load %arg15[%c0_93, %c0_94, %c0_95] : memref<1x9x128xbf16, #tpu.memory_space<vmem>>, vector<1x9x128xbf16>
      tpu.vector_store %arg15[%c0_93, %c0_94, %c0_95], %210 {strides = array<i32>} : memref<1x9x128xbf16, #tpu.memory_space<vmem>>, vector<1x9x128xbf16>,
    } else {
    }
    %c0 = arith.constant 0 : index
    %c0_1 = arith.constant 0 : index
    %c0_2 = arith.constant 0 : index
    %3 = vector.load %arg15[%c0, %c0_1, %c0_2] : memref<1x9x128xbf16, #tpu.memory_space<vmem>>, vector<1x9x128xbf16>
    %4 = vector.shape_cast %3 : vector<1x9x128xbf16> to vector<9x128xbf16>
    %5 = arith.extf %4 : vector<9x128xbf16> to vector<9x128xf32>
    %c0_3 = arith.constant 0 : index
    %c0_4 = arith.constant 0 : index
    %c0_5 = arith.constant 0 : index
    %6 = vector.load %arg3[%c0_3, %c0_4, %c0_5] : memref<1x1x128xf32, #tpu.memory_space<vmem>>, vector<1x1x128xf32>
    %7 = vector.shape_cast %6 : vector<1x1x128xf32> to vector<1x128xf32>
    %c0_6 = arith.constant 0 : index
    %c0_7 = arith.constant 0 : index
    %c0_8 = arith.constant 0 : index
    %8 = vector.load %arg4[%c0_6, %c0_7, %c0_8] : memref<1x1x128xf32, #tpu.memory_space<vmem>>, vector<1x1x128xf32>
    %9 = vector.shape_cast %8 : vector<1x1x128xf32> to vector<1x128xf32>
    %cst = arith.constant dense<0.000000e+00> : vector<9xf32>
    %10 = vector.multi_reduction <add>, %5, %cst [1] : vector<9x128xf32> to vector<9xf32>
    %11 = vector.shape_cast %10 : vector<9xf32> to vector<9x1xf32>
    %cst_9 = arith.constant 1.280000e+02 : f32
    %12 = vector.broadcast %cst_9 : f32 to vector<9x1xf32>
    %13 = arith.divf %11, %12 : vector<9x1xf32>
    %14 = vector.broadcast %13 : vector<9x1xf32> to vector<9x128xf32>
    %15 = arith.subf %5, %14 : vector<9x128xf32>
    %16 = arith.mulf %15, %15 : vector<9x128xf32>
    %cst_10 = arith.constant dense<0.000000e+00> : vector<9xf32>
    %17 = vector.multi_reduction <add>, %16, %cst_10 [1] : vector<9x128xf32> to vector<9xf32>
    %18 = vector.shape_cast %17 : vector<9xf32> to vector<9x1xf32>
    %cst_11 = arith.constant 1.280000e+02 : f32
    %19 = vector.broadcast %cst_11 : f32 to vector<9x1xf32>
    %20 = arith.divf %18, %19 : vector<9x1xf32>
    %21 = vector.broadcast %13 : vector<9x1xf32> to vector<9x128xf32>
    %22 = arith.subf %5, %21 : vector<9x128xf32>
    %cst_12 = arith.constant 9.99999997E-7 : f32
    %23 = vector.broadcast %cst_12 : f32 to vector<9x1xf32>
    %24 = arith.addf %20, %23 : vector<9x1xf32>
    %25 = math.rsqrt %24 : vector<9x1xf32>
    %26 = vector.broadcast %25 : vector<9x1xf32> to vector<9x128xf32>
    %27 = arith.mulf %22, %26 : vector<9x128xf32>
    %28 = vector.broadcast %7 : vector<1x128xf32> to vector<9x128xf32>
    %29 = arith.mulf %27, %28 : vector<9x128xf32>
    %30 = vector.broadcast %9 : vector<1x128xf32> to vector<9x128xf32>
    %31 = arith.addf %29, %30 : vector<9x128xf32>
    %32 = arith.truncf %31 : vector<9x128xf32> to vector<9x128xbf16>
    %c0_13 = arith.constant 0 : index
    %c0_14 = arith.constant 0 : index
    %c0_15 = arith.constant 0 : index
    %33 = vector.load %arg5[%c0_13, %c0_14, %c0_15] : memref<1x128x384xbf16, #tpu.memory_space<vmem>>, vector<1x128x384xbf16>
    %34 = vector.shape_cast %33 : vector<1x128x384xbf16> to vector<128x384xbf16>
    %cst_16 = arith.constant dense<0.000000e+00> : vector<9x384xf32>
    %35 = tpu.matmul %32, %34, %cst_16 {dimension_numbers = #tpu.dot_dimension_numbers<[1], [0], [0], [1], [0, 0, 1, 1], [], []>} : vector<9x128xbf16>, vector<128x384xbf16>, vector<9x384xf32> -> vector<9x384xf32>
    %c0_17 = arith.constant 0 : index
    %c0_18 = arith.constant 0 : index
    %c0_19 = arith.constant 0 : index
    %36 = vector.load %arg6[%c0_17, %c0_18, %c0_19] : memref<1x1x384xf32, #tpu.memory_space<vmem>>, vector<1x1x384xf32>
    %37 = vector.shape_cast %36 : vector<1x1x384xf32> to vector<1x384xf32>
    %38 = vector.broadcast %37 : vector<1x384xf32> to vector<9x384xf32>
    %39 = arith.addf %35, %38 : vector<9x384xf32>
    %40 = arith.truncf %39 : vector<9x384xf32> to vector<9x384xbf16>
    %41 = vector.extract_strided_slice %40 {offsets = [0, 0], sizes = [9, 32], strides = [1, 1]} : vector<9x384xbf16> to vector<9x32xbf16>
    %42 = vector.extract_strided_slice %40 {offsets = [0, 128], sizes = [9, 32], strides = [1, 1]} : vector<9x384xbf16> to vector<9x32xbf16>
    %43 = vector.extract_strided_slice %40 {offsets = [0, 256], sizes = [9, 32], strides = [1, 1]} : vector<9x384xbf16> to vector<9x32xbf16>
    %cst_20 = arith.constant dense<0.000000e+00> : vector<9x9xf32>
    %44 = tpu.matmul %41, %42, %cst_20 {dimension_numbers = #tpu.dot_dimension_numbers<[1], [1], [0], [0], [0, 0, 1, 0], [], []>} : vector<9x32xbf16>, vector<9x32xbf16>, vector<9x9xf32> -> vector<9x9xf32>
    %cst_21 = arith.constant 0.176776692 : f32
    %45 = vector.broadcast %cst_21 : f32 to vector<9x9xf32>
    %46 = arith.mulf %44, %45 : vector<9x9xf32>
    %cst_22 = arith.constant dense<0xFF800000> : vector<9xf32>
    %47 = vector.multi_reduction <maximumf>, %46, %cst_22 [1] : vector<9x9xf32> to vector<9xf32>
    %48 = vector.shape_cast %47 : vector<9xf32> to vector<9x1xf32>
    %49 = vector.broadcast %48 : vector<9x1xf32> to vector<9x9xf32>
    %50 = arith.subf %46, %49 : vector<9x9xf32>
    %51 = math.exp %50 : vector<9x9xf32>
    %cst_23 = arith.constant dense<0.000000e+00> : vector<9xf32>
    %52 = vector.multi_reduction <add>, %51, %cst_23 [1] : vector<9x9xf32> to vector<9xf32>
    %53 = vector.shape_cast %52 : vector<9xf32> to vector<9x1xf32>
    %54 = tpu.reciprocal %53 {approx = true} : vector<9x1xf32> -> vector<9x1xf32>
    %55 = vector.broadcast %54 : vector<9x1xf32> to vector<9x9xf32>
    %56 = arith.mulf %51, %55 : vector<9x9xf32>
    %57 = arith.truncf %56 : vector<9x9xf32> to vector<9x9xbf16>
    %cst_24 = arith.constant dense<0.000000e+00> : vector<9x32xf32>
    %58 = tpu.matmul %57, %43, %cst_24 {dimension_numbers = #tpu.dot_dimension_numbers<[1], [0], [0], [1], [0, 0, 1, 1], [], []>} : vector<9x9xbf16>, vector<9x32xbf16>, vector<9x32xf32> -> vector<9x32xf32>
    %59 = vector.extract_strided_slice %40 {offsets = [0, 32], sizes = [9, 32], strides = [1, 1]} : vector<9x384xbf16> to vector<9x32xbf16>
    %60 = vector.extract_strided_slice %40 {offsets = [0, 160], sizes = [9, 32], strides = [1, 1]} : vector<9x384xbf16> to vector<9x32xbf16>
    %61 = vector.extract_strided_slice %40 {offsets = [0, 288], sizes = [9, 32], strides = [1, 1]} : vector<9x384xbf16> to vector<9x32xbf16>
    %cst_25 = arith.constant dense<0.000000e+00> : vector<9x9xf32>
    %62 = tpu.matmul %59, %60, %cst_25 {dimension_numbers = #tpu.dot_dimension_numbers<[1], [1], [0], [0], [0, 0, 1, 0], [], []>} : vector<9x32xbf16>, vector<9x32xbf16>, vector<9x9xf32> -> vector<9x9xf32>
    %cst_26 = arith.constant 0.176776692 : f32
    %63 = vector.broadcast %cst_26 : f32 to vector<9x9xf32>
    %64 = arith.mulf %62, %63 : vector<9x9xf32>
    %cst_27 = arith.constant dense<0xFF800000> : vector<9xf32>
    %65 = vector.multi_reduction <maximumf>, %64, %cst_27 [1] : vector<9x9xf32> to vector<9xf32>
    %66 = vector.shape_cast %65 : vector<9xf32> to vector<9x1xf32>
    %67 = vector.broadcast %66 : vector<9x1xf32> to vector<9x9xf32>
    %68 = arith.subf %64, %67 : vector<9x9xf32>
    %69 = math.exp %68 : vector<9x9xf32>
    %cst_28 = arith.constant dense<0.000000e+00> : vector<9xf32>
    %70 = vector.multi_reduction <add>, %69, %cst_28 [1] : vector<9x9xf32> to vector<9xf32>
    %71 = vector.shape_cast %70 : vector<9xf32> to vector<9x1xf32>
    %72 = tpu.reciprocal %71 {approx = true} : vector<9x1xf32> -> vector<9x1xf32>
    %73 = vector.broadcast %72 : vector<9x1xf32> to vector<9x9xf32>
    %74 = arith.mulf %69, %73 : vector<9x9xf32>
    %75 = arith.truncf %74 : vector<9x9xf32> to vector<9x9xbf16>
    %cst_29 = arith.constant dense<0.000000e+00> : vector<9x32xf32>
    %76 = tpu.matmul %75, %61, %cst_29 {dimension_numbers = #tpu.dot_dimension_numbers<[1], [0], [0], [1], [0, 0, 1, 1], [], []>} : vector<9x9xbf16>, vector<9x32xbf16>, vector<9x32xf32> -> vector<9x32xf32>
    %77 = vector.extract_strided_slice %40 {offsets = [0, 64], sizes = [9, 32], strides = [1, 1]} : vector<9x384xbf16> to vector<9x32xbf16>
    %78 = vector.extract_strided_slice %40 {offsets = [0, 192], sizes = [9, 32], strides = [1, 1]} : vector<9x384xbf16> to vector<9x32xbf16>
    %79 = vector.extract_strided_slice %40 {offsets = [0, 320], sizes = [9, 32], strides = [1, 1]} : vector<9x384xbf16> to vector<9x32xbf16>
    %cst_30 = arith.constant dense<0.000000e+00> : vector<9x9xf32>
    %80 = tpu.matmul %77, %78, %cst_30 {dimension_numbers = #tpu.dot_dimension_numbers<[1], [1], [0], [0], [0, 0, 1, 0], [], []>} : vector<9x32xbf16>, vector<9x32xbf16>, vector<9x9xf32> -> vector<9x9xf32>
    %cst_31 = arith.constant 0.176776692 : f32
    %81 = vector.broadcast %cst_31 : f32 to vector<9x9xf32>
    %82 = arith.mulf %80, %81 : vector<9x9xf32>
    %cst_32 = arith.constant dense<0xFF800000> : vector<9xf32>
    %83 = vector.multi_reduction <maximumf>, %82, %cst_32 [1] : vector<9x9xf32> to vector<9xf32>
    %84 = vector.shape_cast %83 : vector<9xf32> to vector<9x1xf32>
    %85 = vector.broadcast %84 : vector<9x1xf32> to vector<9x9xf32>
    %86 = arith.subf %82, %85 : vector<9x9xf32>
    %87 = math.exp %86 : vector<9x9xf32>
    %cst_33 = arith.constant dense<0.000000e+00> : vector<9xf32>
    %88 = vector.multi_reduction <add>, %87, %cst_33 [1] : vector<9x9xf32> to vector<9xf32>
    %89 = vector.shape_cast %88 : vector<9xf32> to vector<9x1xf32>
    %90 = tpu.reciprocal %89 {approx = true} : vector<9x1xf32> -> vector<9x1xf32>
    %91 = vector.broadcast %90 : vector<9x1xf32> to vector<9x9xf32>
    %92 = arith.mulf %87, %91 : vector<9x9xf32>
    %93 = arith.truncf %92 : vector<9x9xf32> to vector<9x9xbf16>
    %cst_34 = arith.constant dense<0.000000e+00> : vector<9x32xf32>
    %94 = tpu.matmul %93, %79, %cst_34 {dimension_numbers = #tpu.dot_dimension_numbers<[1], [0], [0], [1], [0, 0, 1, 1], [], []>} : vector<9x9xbf16>, vector<9x32xbf16>, vector<9x32xf32> -> vector<9x32xf32>
    %95 = vector.extract_strided_slice %40 {offsets = [0, 96], sizes = [9, 32], strides = [1, 1]} : vector<9x384xbf16> to vector<9x32xbf16>
    %96 = vector.extract_strided_slice %40 {offsets = [0, 224], sizes = [9, 32], strides = [1, 1]} : vector<9x384xbf16> to vector<9x32xbf16>
    %97 = vector.extract_strided_slice %40 {offsets = [0, 352], sizes = [9, 32], strides = [1, 1]} : vector<9x384xbf16> to vector<9x32xbf16>
    %cst_35 = arith.constant dense<0.000000e+00> : vector<9x9xf32>
    %98 = tpu.matmul %95, %96, %cst_35 {dimension_numbers = #tpu.dot_dimension_numbers<[1], [1], [0], [0], [0, 0, 1, 0], [], []>} : vector<9x32xbf16>, vector<9x32xbf16>, vector<9x9xf32> -> vector<9x9xf32>
    %cst_36 = arith.constant 0.176776692 : f32
    %99 = vector.broadcast %cst_36 : f32 to vector<9x9xf32>
    %100 = arith.mulf %98, %99 : vector<9x9xf32>
    %cst_37 = arith.constant dense<0xFF800000> : vector<9xf32>
    %101 = vector.multi_reduction <maximumf>, %100, %cst_37 [1] : vector<9x9xf32> to vector<9xf32>
    %102 = vector.shape_cast %101 : vector<9xf32> to vector<9x1xf32>
    %103 = vector.broadcast %102 : vector<9x1xf32> to vector<9x9xf32>
    %104 = arith.subf %100, %103 : vector<9x9xf32>
    %105 = math.exp %104 : vector<9x9xf32>
    %cst_38 = arith.constant dense<0.000000e+00> : vector<9xf32>
    %106 = vector.multi_reduction <add>, %105, %cst_38 [1] : vector<9x9xf32> to vector<9xf32>
    %107 = vector.shape_cast %106 : vector<9xf32> to vector<9x1xf32>
    %108 = tpu.reciprocal %107 {approx = true} : vector<9x1xf32> -> vector<9x1xf32>
    %109 = vector.broadcast %108 : vector<9x1xf32> to vector<9x9xf32>
    %110 = arith.mulf %105, %109 : vector<9x9xf32>
    %111 = arith.truncf %110 : vector<9x9xf32> to vector<9x9xbf16>
    %cst_39 = arith.constant dense<0.000000e+00> : vector<9x32xf32>
    %112 = tpu.matmul %111, %97, %cst_39 {dimension_numbers = #tpu.dot_dimension_numbers<[1], [0], [0], [1], [0, 0, 1, 1], [], []>} : vector<9x9xbf16>, vector<9x32xbf16>, vector<9x32xf32> -> vector<9x32xf32>
    %113 = tpu.concatenate %58, %76, %94, %112 in 1 : vector<9x32xf32>, vector<9x32xf32>, vector<9x32xf32>, vector<9x32xf32> -> vector<9x128xf32>
    %114 = arith.truncf %113 : vector<9x128xf32> to vector<9x128xbf16>
    %c0_40 = arith.constant 0 : index
    %c0_41 = arith.constant 0 : index
    %c0_42 = arith.constant 0 : index
    %115 = vector.load %arg7[%c0_40, %c0_41, %c0_42] : memref<1x128x128xbf16, #tpu.memory_space<vmem>>, vector<1x128x128xbf16>
    %116 = vector.shape_cast %115 : vector<1x128x128xbf16> to vector<128x128xbf16>
    %cst_43 = arith.constant dense<0.000000e+00> : vector<9x128xf32>
    %117 = tpu.matmul %114, %116, %cst_43 {dimension_numbers = #tpu.dot_dimension_numbers<[1], [0], [0], [1], [0, 0, 1, 1], [], []>} : vector<9x128xbf16>, vector<128x128xbf16>, vector<9x128xf32> -> vector<9x128xf32>
    %118 = arith.addf %5, %117 : vector<9x128xf32>
    %c0_44 = arith.constant 0 : index
    %c0_45 = arith.constant 0 : index
    %c0_46 = arith.constant 0 : index
    %119 = vector.load %arg8[%c0_44, %c0_45, %c0_46] : memref<1x1x128xf32, #tpu.memory_space<vmem>>, vector<1x1x128xf32>
    %120 = vector.shape_cast %119 : vector<1x1x128xf32> to vector<1x128xf32>
    %121 = vector.broadcast %120 : vector<1x128xf32> to vector<9x128xf32>
    %122 = arith.addf %118, %121 : vector<9x128xf32>
    %c0_47 = arith.constant 0 : index
    %c0_48 = arith.constant 0 : index
    %c0_49 = arith.constant 0 : index
    %123 = vector.load %arg9[%c0_47, %c0_48, %c0_49] : memref<1x1x128xf32, #tpu.memory_space<vmem>>, vector<1x1x128xf32>
    %124 = vector.shape_cast %123 : vector<1x1x128xf32> to vector<1x128xf32>
    %c0_50 = arith.constant 0 : index
    %c0_51 = arith.constant 0 : index
    %c0_52 = arith.constant 0 : index
    %125 = vector.load %arg10[%c0_50, %c0_51, %c0_52] : memref<1x1x128xf32, #tpu.memory_space<vmem>>, vector<1x1x128xf32>
    %126 = vector.shape_cast %125 : vector<1x1x128xf32> to vector<1x128xf32>
    %cst_53 = arith.constant dense<0.000000e+00> : vector<9xf32>
    %127 = vector.multi_reduction <add>, %122, %cst_53 [1] : vector<9x128xf32> to vector<9xf32>
    %128 = vector.shape_cast %127 : vector<9xf32> to vector<9x1xf32>
    %cst_54 = arith.constant 1.280000e+02 : f32
    %129 = vector.broadcast %cst_54 : f32 to vector<9x1xf32>
    %130 = arith.divf %128, %129 : vector<9x1xf32>
    %131 = vector.broadcast %130 : vector<9x1xf32> to vector<9x128xf32>
    %132 = arith.subf %122, %131 : vector<9x128xf32>
    %133 = arith.mulf %132, %132 : vector<9x128xf32>
    %cst_55 = arith.constant dense<0.000000e+00> : vector<9xf32>
    %134 = vector.multi_reduction <add>, %133, %cst_55 [1] : vector<9x128xf32> to vector<9xf32>
    %135 = vector.shape_cast %134 : vector<9xf32> to vector<9x1xf32>
    %cst_56 = arith.constant 1.280000e+02 : f32
    %136 = vector.broadcast %cst_56 : f32 to vector<9x1xf32>
    %137 = arith.divf %135, %136 : vector<9x1xf32>
    %138 = vector.broadcast %130 : vector<9x1xf32> to vector<9x128xf32>
    %139 = arith.subf %122, %138 : vector<9x128xf32>
    %cst_57 = arith.constant 9.99999997E-7 : f32
    %140 = vector.broadcast %cst_57 : f32 to vector<9x1xf32>
    %141 = arith.addf %137, %140 : vector<9x1xf32>
    %142 = math.rsqrt %141 : vector<9x1xf32>
    %143 = vector.broadcast %142 : vector<9x1xf32> to vector<9x128xf32>
    %144 = arith.mulf %139, %143 : vector<9x128xf32>
    %145 = vector.broadcast %124 : vector<1x128xf32> to vector<9x128xf32>
    %146 = arith.mulf %144, %145 : vector<9x128xf32>
    %147 = vector.broadcast %126 : vector<1x128xf32> to vector<9x128xf32>
    %148 = arith.addf %146, %147 : vector<9x128xf32>
    %149 = arith.truncf %148 : vector<9x128xf32> to vector<9x128xbf16>
    %c0_58 = arith.constant 0 : index
    %c0_59 = arith.constant 0 : index
    %c0_60 = arith.constant 0 : index
    %150 = vector.load %arg11[%c0_58, %c0_59, %c0_60] : memref<1x128x512xbf16, #tpu.memory_space<vmem>>, vector<1x128x512xbf16>
    %151 = vector.shape_cast %150 : vector<1x128x512xbf16> to vector<128x512xbf16>
    %cst_61 = arith.constant dense<0.000000e+00> : vector<9x512xf32>
    %152 = tpu.matmul %149, %151, %cst_61 {dimension_numbers = #tpu.dot_dimension_numbers<[1], [0], [0], [1], [0, 0, 1, 1], [], []>} : vector<9x128xbf16>, vector<128x512xbf16>, vector<9x512xf32> -> vector<9x512xf32>
    %c0_62 = arith.constant 0 : index
    %c0_63 = arith.constant 0 : index
    %c0_64 = arith.constant 0 : index
    %153 = vector.load %arg12[%c0_62, %c0_63, %c0_64] : memref<1x1x512xf32, #tpu.memory_space<vmem>>, vector<1x1x512xf32>
    %154 = vector.shape_cast %153 : vector<1x1x512xf32> to vector<1x512xf32>
    %155 = vector.broadcast %154 : vector<1x512xf32> to vector<9x512xf32>
    %156 = arith.addf %152, %155 : vector<9x512xf32>
    %cst_65 = arith.constant 5.000000e-01 : f32
    %157 = vector.broadcast %cst_65 : f32 to vector<9x512xf32>
    %158 = arith.mulf %157, %156 : vector<9x512xf32>
    %cst_66 = arith.constant 0.707106769 : f32
    %159 = vector.broadcast %cst_66 : f32 to vector<9x512xf32>
    %160 = arith.mulf %156, %159 : vector<9x512xf32>
    %cst_67 = arith.constant 0.000000e+00 : f32
    %161 = vector.broadcast %cst_67 : f32 to vector<9x512xf32>
    %162 = arith.cmpf oge, %160, %161 : vector<9x512xf32>
    %cst_68 = arith.constant 1.000000e+00 : f32
    %cst_69 = arith.constant -1.000000e+00 : f32
    %163 = vector.broadcast %cst_68 : f32 to vector<9x512xf32>
    %164 = vector.broadcast %cst_69 : f32 to vector<9x512xf32>
    %165 = arith.select %162, %163, %164 : vector<9x512xi1>, vector<9x512xf32>
    %166 = math.absf %160 : vector<9x512xf32>
    %cst_70 = arith.constant 0.327591091 : f32
    %167 = vector.broadcast %cst_70 : f32 to vector<9x512xf32>
    %168 = arith.mulf %167, %166 : vector<9x512xf32>
    %cst_71 = arith.constant 1.000000e+00 : f32
    %169 = vector.broadcast %cst_71 : f32 to vector<9x512xf32>
    %170 = arith.addf %169, %168 : vector<9x512xf32>
    %171 = tpu.reciprocal %170 {approx = true} : vector<9x512xf32> -> vector<9x512xf32>
    %cst_72 = arith.constant 1.06140542 : f32
    %172 = vector.broadcast %cst_72 : f32 to vector<9x512xf32>
    %173 = arith.mulf %172, %171 : vector<9x512xf32>
    %cst_73 = arith.constant -1.45315206 : f32
    %174 = vector.broadcast %cst_73 : f32 to vector<9x512xf32>
    %175 = arith.addf %173, %174 : vector<9x512xf32>
    %176 = arith.mulf %175, %171 : vector<9x512xf32>
    %cst_74 = arith.constant 1.42141378 : f32
    %177 = vector.broadcast %cst_74 : f32 to vector<9x512xf32>
    %178 = arith.addf %176, %177 : vector<9x512xf32>
    %179 = arith.mulf %178, %171 : vector<9x512xf32>
    %cst_75 = arith.constant -0.284496725 : f32
    %180 = vector.broadcast %cst_75 : f32 to vector<9x512xf32>
    %181 = arith.addf %179, %180 : vector<9x512xf32>
    %182 = arith.mulf %181, %171 : vector<9x512xf32>
    %cst_76 = arith.constant 0.254829586 : f32
    %183 = vector.broadcast %cst_76 : f32 to vector<9x512xf32>
    %184 = arith.addf %182, %183 : vector<9x512xf32>
    %185 = arith.mulf %184, %171 : vector<9x512xf32>
    %cst_77 = arith.constant 0.000000e+00 : f32
    %186 = vector.broadcast %cst_77 : f32 to vector<9x512xf32>
    %187 = arith.subf %186, %166 : vector<9x512xf32>
    %188 = arith.mulf %187, %166 : vector<9x512xf32>
    %189 = math.exp %188 : vector<9x512xf32>
    %190 = arith.mulf %185, %189 : vector<9x512xf32>
    %cst_78 = arith.constant 1.000000e+00 : f32
    %191 = vector.broadcast %cst_78 : f32 to vector<9x512xf32>
    %192 = arith.subf %191, %190 : vector<9x512xf32>
    %193 = arith.mulf %165, %192 : vector<9x512xf32>
    %cst_79 = arith.constant 1.000000e+00 : f32
    %194 = vector.broadcast %cst_79 : f32 to vector<9x512xf32>
    %195 = arith.addf %194, %193 : vector<9x512xf32>
    %196 = arith.mulf %158, %195 : vector<9x512xf32>
    %197 = arith.truncf %196 : vector<9x512xf32> to vector<9x512xbf16>
    %c0_80 = arith.constant 0 : index
    %c0_81 = arith.constant 0 : index
    %c0_82 = arith.constant 0 : index
    %198 = vector.load %arg13[%c0_80, %c0_81, %c0_82] : memref<1x512x128xbf16, #tpu.memory_space<vmem>>, vector<1x512x128xbf16>
    %199 = vector.shape_cast %198 : vector<1x512x128xbf16> to vector<512x128xbf16>
    %cst_83 = arith.constant dense<0.000000e+00> : vector<9x128xf32>
    %200 = tpu.matmul %197, %199, %cst_83 {dimension_numbers = #tpu.dot_dimension_numbers<[1], [0], [0], [1], [0, 0, 1, 1], [], []>} : vector<9x512xbf16>, vector<512x128xbf16>, vector<9x128xf32> -> vector<9x128xf32>
    %c0_84 = arith.constant 0 : index
    %c0_85 = arith.constant 0 : index
    %c0_86 = arith.constant 0 : index
    %201 = vector.load %arg14[%c0_84, %c0_85, %c0_86] : memref<1x1x128xf32, #tpu.memory_space<vmem>>, vector<1x1x128xf32>
    %202 = vector.shape_cast %201 : vector<1x1x128xf32> to vector<1x128xf32>
    %203 = vector.broadcast %202 : vector<1x128xf32> to vector<9x128xf32>
    %204 = arith.addf %200, %203 : vector<9x128xf32>
    %205 = arith.addf %122, %204 : vector<9x128xf32>
    %206 = arith.truncf %205 : vector<9x128xf32> to vector<9x128xbf16>
    %c0_87 = arith.constant 0 : index
    %c0_88 = arith.constant 0 : index
    %c0_89 = arith.constant 0 : index
    %207 = vector.load %arg15[%c0_87, %c0_88, %c0_89] : memref<1x9x128xbf16, #tpu.memory_space<vmem>>, vector<1x9x128xbf16>
    %208 = vector.shape_cast %207 : vector<1x9x128xbf16> to vector<9x128xbf16>
    %209 = vector.shape_cast %206 : vector<9x128xbf16> to vector<1x9x128xbf16>
    tpu.vector_store %arg15[%c0_87, %c0_88, %c0_89], %209 {strides = array<i32>} : memref<1x9x128xbf16, #tpu.memory_space<vmem>>, vector<1x9x128xbf16>,
    return
  }
  func.func @transform_0(%arg0: i32, %arg1: i32) -> (i32, i32, i32) {
    %c0_i32 = arith.constant 0 : i32
    %c0_i32_0 = arith.constant 0 : i32
    %c0_i32_1 = arith.constant 0 : i32
    return %arg0, %c0_i32, %c0_i32_0 : i32, i32, i32
  }
  func.func @transform_1(%arg0: i32, %arg1: i32) -> (i32, i32, i32) {
    %c0_i32 = arith.constant 0 : i32
    %c0_i32_0 = arith.constant 0 : i32
    %c0_i32_1 = arith.constant 0 : i32
    return %arg1, %c0_i32, %c0_i32_0 : i32, i32, i32
  }
  func.func @transform_2(%arg0: i32, %arg1: i32) -> (i32, i32, i32) {
    %c0_i32 = arith.constant 0 : i32
    %c0_i32_0 = arith.constant 0 : i32
    %c0_i32_1 = arith.constant 0 : i32
    return %arg1, %c0_i32, %c0_i32_0 : i32, i32, i32
  }
  func.func @transform_3(%arg0: i32, %arg1: i32) -> (i32, i32, i32) {
    %c0_i32 = arith.constant 0 : i32
    %c0_i32_0 = arith.constant 0 : i32
    %c0_i32_1 = arith.constant 0 : i32
    return %arg1, %c0_i32, %c0_i32_0 : i32, i32, i32
  }
  func.func @transform_4(%arg0: i32, %arg1: i32) -> (i32, i32, i32) {
    %c0_i32 = arith.constant 0 : i32
    %c0_i32_0 = arith.constant 0 : i32
    %c0_i32_1 = arith.constant 0 : i32
    return %arg1, %c0_i32, %c0_i32_0 : i32, i32, i32
  }
  func.func @transform_5(%arg0: i32, %arg1: i32) -> (i32, i32, i32) {
    %c0_i32 = arith.constant 0 : i32
    %c0_i32_0 = arith.constant 0 : i32
    %c0_i32_1 = arith.constant 0 : i32
    return %arg1, %c0_i32, %c0_i32_0 : i32, i32, i32
  }
  func.func @transform_6(%arg0: i32, %arg1: i32) -> (i32, i32, i32) {
    %c0_i32 = arith.constant 0 : i32
    %c0_i32_0 = arith.constant 0 : i32
    %c0_i32_1 = arith.constant 0 : i32
    return %arg1, %c0_i32, %c0_i32_0 : i32, i32, i32
  }
  func.func @transform_7(%arg0: i32, %arg1: i32) -> (i32, i32, i32) {
    %c0_i32 = arith.constant 0 : i32
    %c0_i32_0 = arith.constant 0 : i32
    %c0_i32_1 = arith.constant 0 : i32
    return %arg1, %c0_i32, %c0_i32_0 : i32, i32, i32
  }
  func.func @transform_8(%arg0: i32, %arg1: i32) -> (i32, i32, i32) {
    %c0_i32 = arith.constant 0 : i32
    %c0_i32_0 = arith.constant 0 : i32
    %c0_i32_1 = arith.constant 0 : i32
    return %arg1, %c0_i32, %c0_i32_0 : i32, i32, i32
  }
  func.func @transform_9(%arg0: i32, %arg1: i32) -> (i32, i32, i32) {
    %c0_i32 = arith.constant 0 : i32
    %c0_i32_0 = arith.constant 0 : i32
    %c0_i32_1 = arith.constant 0 : i32
    return %arg1, %c0_i32, %c0_i32_0 : i32, i32, i32
  }
  func.func @transform_10(%arg0: i32, %arg1: i32) -> (i32, i32, i32) {
    %c0_i32 = arith.constant 0 : i32
    %c0_i32_0 = arith.constant 0 : i32
    %c0_i32_1 = arith.constant 0 : i32
    return %arg1, %c0_i32, %c0_i32_0 : i32, i32, i32
  }
  func.func @transform_11(%arg0: i32, %arg1: i32) -> (i32, i32, i32) {
    %c0_i32 = arith.constant 0 : i32
    %c0_i32_0 = arith.constant 0 : i32
    %c0_i32_1 = arith.constant 0 : i32
    return %arg1, %c0_i32, %c0_i32_0 : i32, i32, i32
  }
  func.func @transform_12(%arg0: i32, %arg1: i32) -> (i32, i32, i32) {
    %c0_i32 = arith.constant 0 : i32
    %c0_i32_0 = arith.constant 0 : i32
    %c0_i32_1 = arith.constant 0 : i32
    return %arg1, %c0_i32, %c0_i32_0 : i32, i32, i32
  }
  func.func @transform_13(%arg0: i32, %arg1: i32) -> (i32, i32, i32) {
    %c0_i32 = arith.constant 0 : i32
    %c0_i32_0 = arith.constant 0 : i32
    %c0_i32_1 = arith.constant 0 : i32
    return %arg0, %c0_i32, %c0_i32_0 : i32, i32, i32
  }
}

module attributes {stable_mosaic.version = 11 : i64} {
  func.func @_ln_linear_kernel(%arg0: i32, %arg1: memref<1x9x128xbf16, #tpu.memory_space<vmem>>, %arg2: memref<1x128xf32, #tpu.memory_space<vmem>>, %arg3: memref<1x128xf32, #tpu.memory_space<vmem>>, %arg4: memref<128x128xbf16, #tpu.memory_space<vmem>>, %arg5: memref<1x128xf32, #tpu.memory_space<vmem>>, %arg6: memref<1x9x128xbf16, #tpu.memory_space<vmem>>) attributes {dimension_semantics = [#tpu.dimension_semantics<parallel>], iteration_bounds = array<i64: 2>, scalar_prefetch = 0 : i64, scratch_operands = 0 : i64, tpu.core_type = #tpu.core_type<tc>, window_params = [{transform_indices = @transform_0, window_bounds = array<i64: 1, 9, 128>}, {pipeline_mode = #tpu.pipeline_mode<synchronous>, transform_indices = @transform_1, window_bounds = array<i64: 1, 128>}, {pipeline_mode = #tpu.pipeline_mode<synchronous>, transform_indices = @transform_2, window_bounds = array<i64: 1, 128>}, {pipeline_mode = #tpu.pipeline_mode<synchronous>, transform_indices = @transform_3, window_bounds = array<i64: 128, 128>}, {pipeline_mode = #tpu.pipeline_mode<synchronous>, transform_indices = @transform_4, window_bounds = array<i64: 1, 128>}, {transform_indices = @transform_5, window_bounds = array<i64: 1, 9, 128>}]} {
    %c0 = arith.constant 0 : index
    %c0_0 = arith.constant 0 : index
    %c0_1 = arith.constant 0 : index
    %0 = vector.load %arg1[%c0, %c0_0, %c0_1] : memref<1x9x128xbf16, #tpu.memory_space<vmem>>, vector<1x9x128xbf16>
    %1 = vector.shape_cast %0 : vector<1x9x128xbf16> to vector<9x128xbf16>
    %2 = arith.extf %1 : vector<9x128xbf16> to vector<9x128xf32>
    %c0_2 = arith.constant 0 : index
    %c0_3 = arith.constant 0 : index
    %3 = vector.load %arg2[%c0_2, %c0_3] : memref<1x128xf32, #tpu.memory_space<vmem>>, vector<1x128xf32>
    %c0_4 = arith.constant 0 : index
    %c0_5 = arith.constant 0 : index
    %4 = vector.load %arg3[%c0_4, %c0_5] : memref<1x128xf32, #tpu.memory_space<vmem>>, vector<1x128xf32>
    %cst = arith.constant dense<0.000000e+00> : vector<9xf32>
    %5 = vector.multi_reduction <add>, %2, %cst [1] : vector<9x128xf32> to vector<9xf32>
    %6 = vector.shape_cast %5 : vector<9xf32> to vector<9x1xf32>
    %cst_6 = arith.constant 1.280000e+02 : f32
    %7 = vector.broadcast %cst_6 : f32 to vector<9x1xf32>
    %8 = arith.divf %6, %7 : vector<9x1xf32>
    %9 = vector.broadcast %8 : vector<9x1xf32> to vector<9x128xf32>
    %10 = arith.subf %2, %9 : vector<9x128xf32>
    %11 = arith.mulf %10, %10 : vector<9x128xf32>
    %cst_7 = arith.constant dense<0.000000e+00> : vector<9xf32>
    %12 = vector.multi_reduction <add>, %11, %cst_7 [1] : vector<9x128xf32> to vector<9xf32>
    %13 = vector.shape_cast %12 : vector<9xf32> to vector<9x1xf32>
    %cst_8 = arith.constant 1.280000e+02 : f32
    %14 = vector.broadcast %cst_8 : f32 to vector<9x1xf32>
    %15 = arith.divf %13, %14 : vector<9x1xf32>
    %16 = vector.broadcast %8 : vector<9x1xf32> to vector<9x128xf32>
    %17 = arith.subf %2, %16 : vector<9x128xf32>
    %cst_9 = arith.constant 9.99999997E-7 : f32
    %18 = vector.broadcast %cst_9 : f32 to vector<9x1xf32>
    %19 = arith.addf %15, %18 : vector<9x1xf32>
    %20 = math.rsqrt %19 : vector<9x1xf32>
    %21 = vector.broadcast %20 : vector<9x1xf32> to vector<9x128xf32>
    %22 = arith.mulf %17, %21 : vector<9x128xf32>
    %23 = vector.broadcast %3 : vector<1x128xf32> to vector<9x128xf32>
    %24 = arith.mulf %22, %23 : vector<9x128xf32>
    %25 = vector.broadcast %4 : vector<1x128xf32> to vector<9x128xf32>
    %26 = arith.addf %24, %25 : vector<9x128xf32>
    %27 = arith.truncf %26 : vector<9x128xf32> to vector<9x128xbf16>
    %c0_10 = arith.constant 0 : index
    %c0_11 = arith.constant 0 : index
    %28 = vector.load %arg4[%c0_10, %c0_11] : memref<128x128xbf16, #tpu.memory_space<vmem>>, vector<128x128xbf16>
    %cst_12 = arith.constant dense<0.000000e+00> : vector<9x128xf32>
    %29 = tpu.matmul %27, %28, %cst_12 {dimension_numbers = #tpu.dot_dimension_numbers<[1], [0], [0], [1], [0, 0, 1, 1], [], []>} : vector<9x128xbf16>, vector<128x128xbf16>, vector<9x128xf32> -> vector<9x128xf32>
    %c0_13 = arith.constant 0 : index
    %c0_14 = arith.constant 0 : index
    %30 = vector.load %arg5[%c0_13, %c0_14] : memref<1x128xf32, #tpu.memory_space<vmem>>, vector<1x128xf32>
    %31 = vector.broadcast %30 : vector<1x128xf32> to vector<9x128xf32>
    %32 = arith.addf %29, %31 : vector<9x128xf32>
    %33 = arith.truncf %32 : vector<9x128xf32> to vector<9x128xbf16>
    %c0_15 = arith.constant 0 : index
    %c0_16 = arith.constant 0 : index
    %c0_17 = arith.constant 0 : index
    %34 = vector.load %arg6[%c0_15, %c0_16, %c0_17] : memref<1x9x128xbf16, #tpu.memory_space<vmem>>, vector<1x9x128xbf16>
    %35 = vector.shape_cast %34 : vector<1x9x128xbf16> to vector<9x128xbf16>
    %36 = vector.shape_cast %33 : vector<9x128xbf16> to vector<1x9x128xbf16>
    tpu.vector_store %arg6[%c0_15, %c0_16, %c0_17], %36 {strides = array<i32>} : memref<1x9x128xbf16, #tpu.memory_space<vmem>>, vector<1x9x128xbf16>,
    return
  }
  func.func @transform_0(%arg0: i32) -> (i32, i32, i32) {
    %c0_i32 = arith.constant 0 : i32
    %c0_i32_0 = arith.constant 0 : i32
    %c0_i32_1 = arith.constant 0 : i32
    return %arg0, %c0_i32, %c0_i32_0 : i32, i32, i32
  }
  func.func @transform_1(%arg0: i32) -> (i32, i32) {
    %c0_i32 = arith.constant 0 : i32
    %c0_i32_0 = arith.constant 0 : i32
    %c0_i32_1 = arith.constant 0 : i32
    return %c0_i32, %c0_i32_0 : i32, i32
  }
  func.func @transform_2(%arg0: i32) -> (i32, i32) {
    %c0_i32 = arith.constant 0 : i32
    %c0_i32_0 = arith.constant 0 : i32
    %c0_i32_1 = arith.constant 0 : i32
    return %c0_i32, %c0_i32_0 : i32, i32
  }
  func.func @transform_3(%arg0: i32) -> (i32, i32) {
    %c0_i32 = arith.constant 0 : i32
    %c0_i32_0 = arith.constant 0 : i32
    %c0_i32_1 = arith.constant 0 : i32
    return %c0_i32, %c0_i32_0 : i32, i32
  }
  func.func @transform_4(%arg0: i32) -> (i32, i32) {
    %c0_i32 = arith.constant 0 : i32
    %c0_i32_0 = arith.constant 0 : i32
    %c0_i32_1 = arith.constant 0 : i32
    return %c0_i32, %c0_i32_0 : i32, i32
  }
  func.func @transform_5(%arg0: i32) -> (i32, i32, i32) {
    %c0_i32 = arith.constant 0 : i32
    %c0_i32_0 = arith.constant 0 : i32
    %c0_i32_1 = arith.constant 0 : i32
    return %arg0, %c0_i32, %c0_i32_0 : i32, i32, i32
  }
}

module attributes {stable_mosaic.version = 11 : i64} {
  func.func @_ln_linear_kernel(%arg0: i32, %arg1: memref<1x17x128xbf16, #tpu.memory_space<vmem>>, %arg2: memref<1x128xf32, #tpu.memory_space<vmem>>, %arg3: memref<1x128xf32, #tpu.memory_space<vmem>>, %arg4: memref<128x64xbf16, #tpu.memory_space<vmem>>, %arg5: memref<1x64xf32, #tpu.memory_space<vmem>>, %arg6: memref<1x17x64xf32, #tpu.memory_space<vmem>>) attributes {dimension_semantics = [#tpu.dimension_semantics<parallel>], iteration_bounds = array<i64: 2>, scalar_prefetch = 0 : i64, scratch_operands = 0 : i64, tpu.core_type = #tpu.core_type<tc>, window_params = [{transform_indices = @transform_0, window_bounds = array<i64: 1, 17, 128>}, {pipeline_mode = #tpu.pipeline_mode<synchronous>, transform_indices = @transform_1, window_bounds = array<i64: 1, 128>}, {pipeline_mode = #tpu.pipeline_mode<synchronous>, transform_indices = @transform_2, window_bounds = array<i64: 1, 128>}, {pipeline_mode = #tpu.pipeline_mode<synchronous>, transform_indices = @transform_3, window_bounds = array<i64: 128, 64>}, {pipeline_mode = #tpu.pipeline_mode<synchronous>, transform_indices = @transform_4, window_bounds = array<i64: 1, 64>}, {transform_indices = @transform_5, window_bounds = array<i64: 1, 17, 64>}]} {
    %c0 = arith.constant 0 : index
    %c0_0 = arith.constant 0 : index
    %c0_1 = arith.constant 0 : index
    %0 = vector.load %arg1[%c0, %c0_0, %c0_1] : memref<1x17x128xbf16, #tpu.memory_space<vmem>>, vector<1x17x128xbf16>
    %1 = vector.shape_cast %0 : vector<1x17x128xbf16> to vector<17x128xbf16>
    %2 = arith.extf %1 : vector<17x128xbf16> to vector<17x128xf32>
    %c0_2 = arith.constant 0 : index
    %c0_3 = arith.constant 0 : index
    %3 = vector.load %arg2[%c0_2, %c0_3] : memref<1x128xf32, #tpu.memory_space<vmem>>, vector<1x128xf32>
    %c0_4 = arith.constant 0 : index
    %c0_5 = arith.constant 0 : index
    %4 = vector.load %arg3[%c0_4, %c0_5] : memref<1x128xf32, #tpu.memory_space<vmem>>, vector<1x128xf32>
    %cst = arith.constant dense<0.000000e+00> : vector<17xf32>
    %5 = vector.multi_reduction <add>, %2, %cst [1] : vector<17x128xf32> to vector<17xf32>
    %6 = vector.shape_cast %5 : vector<17xf32> to vector<17x1xf32>
    %cst_6 = arith.constant 1.280000e+02 : f32
    %7 = vector.broadcast %cst_6 : f32 to vector<17x1xf32>
    %8 = arith.divf %6, %7 : vector<17x1xf32>
    %9 = vector.broadcast %8 : vector<17x1xf32> to vector<17x128xf32>
    %10 = arith.subf %2, %9 : vector<17x128xf32>
    %11 = arith.mulf %10, %10 : vector<17x128xf32>
    %cst_7 = arith.constant dense<0.000000e+00> : vector<17xf32>
    %12 = vector.multi_reduction <add>, %11, %cst_7 [1] : vector<17x128xf32> to vector<17xf32>
    %13 = vector.shape_cast %12 : vector<17xf32> to vector<17x1xf32>
    %cst_8 = arith.constant 1.280000e+02 : f32
    %14 = vector.broadcast %cst_8 : f32 to vector<17x1xf32>
    %15 = arith.divf %13, %14 : vector<17x1xf32>
    %16 = vector.broadcast %8 : vector<17x1xf32> to vector<17x128xf32>
    %17 = arith.subf %2, %16 : vector<17x128xf32>
    %cst_9 = arith.constant 9.99999997E-7 : f32
    %18 = vector.broadcast %cst_9 : f32 to vector<17x1xf32>
    %19 = arith.addf %15, %18 : vector<17x1xf32>
    %20 = math.rsqrt %19 : vector<17x1xf32>
    %21 = vector.broadcast %20 : vector<17x1xf32> to vector<17x128xf32>
    %22 = arith.mulf %17, %21 : vector<17x128xf32>
    %23 = vector.broadcast %3 : vector<1x128xf32> to vector<17x128xf32>
    %24 = arith.mulf %22, %23 : vector<17x128xf32>
    %25 = vector.broadcast %4 : vector<1x128xf32> to vector<17x128xf32>
    %26 = arith.addf %24, %25 : vector<17x128xf32>
    %27 = arith.truncf %26 : vector<17x128xf32> to vector<17x128xbf16>
    %c0_10 = arith.constant 0 : index
    %c0_11 = arith.constant 0 : index
    %28 = vector.load %arg4[%c0_10, %c0_11] : memref<128x64xbf16, #tpu.memory_space<vmem>>, vector<128x64xbf16>
    %cst_12 = arith.constant dense<0.000000e+00> : vector<17x64xf32>
    %29 = tpu.matmul %27, %28, %cst_12 {dimension_numbers = #tpu.dot_dimension_numbers<[1], [0], [0], [1], [0, 0, 1, 1], [], []>} : vector<17x128xbf16>, vector<128x64xbf16>, vector<17x64xf32> -> vector<17x64xf32>
    %c0_13 = arith.constant 0 : index
    %c0_14 = arith.constant 0 : index
    %30 = vector.load %arg5[%c0_13, %c0_14] : memref<1x64xf32, #tpu.memory_space<vmem>>, vector<1x64xf32>
    %31 = vector.broadcast %30 : vector<1x64xf32> to vector<17x64xf32>
    %32 = arith.addf %29, %31 : vector<17x64xf32>
    %c0_15 = arith.constant 0 : index
    %c0_16 = arith.constant 0 : index
    %c0_17 = arith.constant 0 : index
    %33 = vector.load %arg6[%c0_15, %c0_16, %c0_17] : memref<1x17x64xf32, #tpu.memory_space<vmem>>, vector<1x17x64xf32>
    %34 = vector.shape_cast %33 : vector<1x17x64xf32> to vector<17x64xf32>
    %35 = vector.shape_cast %32 : vector<17x64xf32> to vector<1x17x64xf32>
    tpu.vector_store %arg6[%c0_15, %c0_16, %c0_17], %35 {strides = array<i32>} : memref<1x17x64xf32, #tpu.memory_space<vmem>>, vector<1x17x64xf32>,
    return
  }
  func.func @transform_0(%arg0: i32) -> (i32, i32, i32) {
    %c0_i32 = arith.constant 0 : i32
    %c0_i32_0 = arith.constant 0 : i32
    %c0_i32_1 = arith.constant 0 : i32
    return %arg0, %c0_i32, %c0_i32_0 : i32, i32, i32
  }
  func.func @transform_1(%arg0: i32) -> (i32, i32) {
    %c0_i32 = arith.constant 0 : i32
    %c0_i32_0 = arith.constant 0 : i32
    %c0_i32_1 = arith.constant 0 : i32
    return %c0_i32, %c0_i32_0 : i32, i32
  }
  func.func @transform_2(%arg0: i32) -> (i32, i32) {
    %c0_i32 = arith.constant 0 : i32
    %c0_i32_0 = arith.constant 0 : i32
    %c0_i32_1 = arith.constant 0 : i32
    return %c0_i32, %c0_i32_0 : i32, i32
  }
  func.func @transform_3(%arg0: i32) -> (i32, i32) {
    %c0_i32 = arith.constant 0 : i32
    %c0_i32_0 = arith.constant 0 : i32
    %c0_i32_1 = arith.constant 0 : i32
    return %c0_i32, %c0_i32_0 : i32, i32
  }
  func.func @transform_4(%arg0: i32) -> (i32, i32) {
    %c0_i32 = arith.constant 0 : i32
    %c0_i32_0 = arith.constant 0 : i32
    %c0_i32_1 = arith.constant 0 : i32
    return %c0_i32, %c0_i32_0 : i32, i32
  }
  func.func @transform_5(%arg0: i32) -> (i32, i32, i32) {
    %c0_i32 = arith.constant 0 : i32
    %c0_i32_0 = arith.constant 0 : i32
    %c0_i32_1 = arith.constant 0 : i32
    return %arg0, %c0_i32, %c0_i32_0 : i32, i32, i32
  }
}

module attributes {stable_mosaic.version = 11 : i64} {
  func.func @_stack_block_kernel(%arg0: i32, %arg1: i32, %arg2: memref<1x17x128xbf16, #tpu.memory_space<vmem>>, %arg3: memref<1x1x128xf32, #tpu.memory_space<vmem>>, %arg4: memref<1x1x128xf32, #tpu.memory_space<vmem>>, %arg5: memref<1x128x384xbf16, #tpu.memory_space<vmem>>, %arg6: memref<1x1x384xf32, #tpu.memory_space<vmem>>, %arg7: memref<1x128x128xbf16, #tpu.memory_space<vmem>>, %arg8: memref<1x1x128xf32, #tpu.memory_space<vmem>>, %arg9: memref<1x1x128xf32, #tpu.memory_space<vmem>>, %arg10: memref<1x1x128xf32, #tpu.memory_space<vmem>>, %arg11: memref<1x128x512xbf16, #tpu.memory_space<vmem>>, %arg12: memref<1x1x512xf32, #tpu.memory_space<vmem>>, %arg13: memref<1x512x128xbf16, #tpu.memory_space<vmem>>, %arg14: memref<1x1x128xf32, #tpu.memory_space<vmem>>, %arg15: memref<1x17x128xbf16, #tpu.memory_space<vmem>>) attributes {dimension_semantics = [#tpu.dimension_semantics<parallel>, #tpu.dimension_semantics<arbitrary>], iteration_bounds = array<i64: 2, 2>, scalar_prefetch = 0 : i64, scratch_operands = 0 : i64, tpu.core_type = #tpu.core_type<tc>, window_params = [{transform_indices = @transform_0, window_bounds = array<i64: 1, 17, 128>}, {transform_indices = @transform_1, window_bounds = array<i64: 1, 1, 128>}, {transform_indices = @transform_2, window_bounds = array<i64: 1, 1, 128>}, {transform_indices = @transform_3, window_bounds = array<i64: 1, 128, 384>}, {transform_indices = @transform_4, window_bounds = array<i64: 1, 1, 384>}, {transform_indices = @transform_5, window_bounds = array<i64: 1, 128, 128>}, {transform_indices = @transform_6, window_bounds = array<i64: 1, 1, 128>}, {transform_indices = @transform_7, window_bounds = array<i64: 1, 1, 128>}, {transform_indices = @transform_8, window_bounds = array<i64: 1, 1, 128>}, {transform_indices = @transform_9, window_bounds = array<i64: 1, 128, 512>}, {transform_indices = @transform_10, window_bounds = array<i64: 1, 1, 512>}, {transform_indices = @transform_11, window_bounds = array<i64: 1, 512, 128>}, {transform_indices = @transform_12, window_bounds = array<i64: 1, 1, 128>}, {transform_indices = @transform_13, window_bounds = array<i64: 1, 17, 128>}]} {
    %c0_i32 = arith.constant 0 : i32
    %0 = arith.cmpi eq, %arg1, %c0_i32 : i32
    %1 = arith.extui %0 : i1 to i32
    %c0_i32_0 = arith.constant 0 : i32
    %2 = arith.cmpi ne, %1, %c0_i32_0 : i32
    scf.if %2 {
      %c0_90 = arith.constant 0 : index
      %c0_91 = arith.constant 0 : index
      %c0_92 = arith.constant 0 : index
      %210 = vector.load %arg2[%c0_90, %c0_91, %c0_92] : memref<1x17x128xbf16, #tpu.memory_space<vmem>>, vector<1x17x128xbf16>
      %c0_93 = arith.constant 0 : index
      %c0_94 = arith.constant 0 : index
      %c0_95 = arith.constant 0 : index
      %211 = vector.load %arg15[%c0_93, %c0_94, %c0_95] : memref<1x17x128xbf16, #tpu.memory_space<vmem>>, vector<1x17x128xbf16>
      tpu.vector_store %arg15[%c0_93, %c0_94, %c0_95], %210 {strides = array<i32>} : memref<1x17x128xbf16, #tpu.memory_space<vmem>>, vector<1x17x128xbf16>,
    } else {
    }
    %c0 = arith.constant 0 : index
    %c0_1 = arith.constant 0 : index
    %c0_2 = arith.constant 0 : index
    %3 = vector.load %arg15[%c0, %c0_1, %c0_2] : memref<1x17x128xbf16, #tpu.memory_space<vmem>>, vector<1x17x128xbf16>
    %4 = vector.shape_cast %3 : vector<1x17x128xbf16> to vector<17x128xbf16>
    %5 = arith.extf %4 : vector<17x128xbf16> to vector<17x128xf32>
    %c0_3 = arith.constant 0 : index
    %c0_4 = arith.constant 0 : index
    %c0_5 = arith.constant 0 : index
    %6 = vector.load %arg3[%c0_3, %c0_4, %c0_5] : memref<1x1x128xf32, #tpu.memory_space<vmem>>, vector<1x1x128xf32>
    %7 = vector.shape_cast %6 : vector<1x1x128xf32> to vector<1x128xf32>
    %c0_6 = arith.constant 0 : index
    %c0_7 = arith.constant 0 : index
    %c0_8 = arith.constant 0 : index
    %8 = vector.load %arg4[%c0_6, %c0_7, %c0_8] : memref<1x1x128xf32, #tpu.memory_space<vmem>>, vector<1x1x128xf32>
    %9 = vector.shape_cast %8 : vector<1x1x128xf32> to vector<1x128xf32>
    %cst = arith.constant dense<0.000000e+00> : vector<17xf32>
    %10 = vector.multi_reduction <add>, %5, %cst [1] : vector<17x128xf32> to vector<17xf32>
    %11 = vector.shape_cast %10 : vector<17xf32> to vector<17x1xf32>
    %cst_9 = arith.constant 1.280000e+02 : f32
    %12 = vector.broadcast %cst_9 : f32 to vector<17x1xf32>
    %13 = arith.divf %11, %12 : vector<17x1xf32>
    %14 = vector.broadcast %13 : vector<17x1xf32> to vector<17x128xf32>
    %15 = arith.subf %5, %14 : vector<17x128xf32>
    %16 = arith.mulf %15, %15 : vector<17x128xf32>
    %cst_10 = arith.constant dense<0.000000e+00> : vector<17xf32>
    %17 = vector.multi_reduction <add>, %16, %cst_10 [1] : vector<17x128xf32> to vector<17xf32>
    %18 = vector.shape_cast %17 : vector<17xf32> to vector<17x1xf32>
    %cst_11 = arith.constant 1.280000e+02 : f32
    %19 = vector.broadcast %cst_11 : f32 to vector<17x1xf32>
    %20 = arith.divf %18, %19 : vector<17x1xf32>
    %21 = vector.broadcast %13 : vector<17x1xf32> to vector<17x128xf32>
    %22 = arith.subf %5, %21 : vector<17x128xf32>
    %cst_12 = arith.constant 9.99999997E-7 : f32
    %23 = vector.broadcast %cst_12 : f32 to vector<17x1xf32>
    %24 = arith.addf %20, %23 : vector<17x1xf32>
    %25 = math.rsqrt %24 : vector<17x1xf32>
    %26 = vector.broadcast %25 : vector<17x1xf32> to vector<17x128xf32>
    %27 = arith.mulf %22, %26 : vector<17x128xf32>
    %28 = vector.broadcast %7 : vector<1x128xf32> to vector<17x128xf32>
    %29 = arith.mulf %27, %28 : vector<17x128xf32>
    %30 = vector.broadcast %9 : vector<1x128xf32> to vector<17x128xf32>
    %31 = arith.addf %29, %30 : vector<17x128xf32>
    %32 = arith.truncf %31 : vector<17x128xf32> to vector<17x128xbf16>
    %c0_13 = arith.constant 0 : index
    %c0_14 = arith.constant 0 : index
    %c0_15 = arith.constant 0 : index
    %33 = vector.load %arg5[%c0_13, %c0_14, %c0_15] : memref<1x128x384xbf16, #tpu.memory_space<vmem>>, vector<1x128x384xbf16>
    %34 = vector.shape_cast %33 : vector<1x128x384xbf16> to vector<128x384xbf16>
    %cst_16 = arith.constant dense<0.000000e+00> : vector<17x384xf32>
    %35 = tpu.matmul %32, %34, %cst_16 {dimension_numbers = #tpu.dot_dimension_numbers<[1], [0], [0], [1], [0, 0, 1, 1], [], []>} : vector<17x128xbf16>, vector<128x384xbf16>, vector<17x384xf32> -> vector<17x384xf32>
    %c0_17 = arith.constant 0 : index
    %c0_18 = arith.constant 0 : index
    %c0_19 = arith.constant 0 : index
    %36 = vector.load %arg6[%c0_17, %c0_18, %c0_19] : memref<1x1x384xf32, #tpu.memory_space<vmem>>, vector<1x1x384xf32>
    %37 = vector.shape_cast %36 : vector<1x1x384xf32> to vector<1x384xf32>
    %38 = vector.broadcast %37 : vector<1x384xf32> to vector<17x384xf32>
    %39 = arith.addf %35, %38 : vector<17x384xf32>
    %40 = arith.truncf %39 : vector<17x384xf32> to vector<17x384xbf16>
    %41 = vector.extract_strided_slice %40 {offsets = [0, 0], sizes = [17, 32], strides = [1, 1]} : vector<17x384xbf16> to vector<17x32xbf16>
    %42 = vector.extract_strided_slice %40 {offsets = [0, 128], sizes = [17, 32], strides = [1, 1]} : vector<17x384xbf16> to vector<17x32xbf16>
    %43 = vector.extract_strided_slice %40 {offsets = [0, 256], sizes = [17, 32], strides = [1, 1]} : vector<17x384xbf16> to vector<17x32xbf16>
    %cst_20 = arith.constant dense<0.000000e+00> : vector<17x17xf32>
    %44 = tpu.matmul %41, %42, %cst_20 {dimension_numbers = #tpu.dot_dimension_numbers<[1], [1], [0], [0], [0, 0, 1, 0], [], []>} : vector<17x32xbf16>, vector<17x32xbf16>, vector<17x17xf32> -> vector<17x17xf32>
    %cst_21 = arith.constant 0.176776692 : f32
    %45 = vector.broadcast %cst_21 : f32 to vector<17x17xf32>
    %46 = arith.mulf %44, %45 : vector<17x17xf32>
    %cst_22 = arith.constant dense<0xFF800000> : vector<17xf32>
    %47 = vector.multi_reduction <maximumf>, %46, %cst_22 [1] : vector<17x17xf32> to vector<17xf32>
    %48 = vector.shape_cast %47 : vector<17xf32> to vector<17x1xf32>
    %49 = vector.broadcast %48 : vector<17x1xf32> to vector<17x17xf32>
    %50 = arith.subf %46, %49 : vector<17x17xf32>
    %51 = math.exp %50 : vector<17x17xf32>
    %cst_23 = arith.constant dense<0.000000e+00> : vector<17xf32>
    %52 = vector.multi_reduction <add>, %51, %cst_23 [1] : vector<17x17xf32> to vector<17xf32>
    %53 = vector.shape_cast %52 : vector<17xf32> to vector<17x1xf32>
    %54 = tpu.reciprocal %53 {approx = true} : vector<17x1xf32> -> vector<17x1xf32>
    %55 = vector.broadcast %54 : vector<17x1xf32> to vector<17x17xf32>
    %56 = arith.mulf %51, %55 : vector<17x17xf32>
    %57 = arith.truncf %56 : vector<17x17xf32> to vector<17x17xbf16>
    %cst_24 = arith.constant dense<0.000000e+00> : vector<17x32xf32>
    %58 = tpu.matmul %57, %43, %cst_24 {dimension_numbers = #tpu.dot_dimension_numbers<[1], [0], [0], [1], [0, 0, 1, 1], [], []>} : vector<17x17xbf16>, vector<17x32xbf16>, vector<17x32xf32> -> vector<17x32xf32>
    %59 = vector.extract_strided_slice %40 {offsets = [0, 32], sizes = [17, 32], strides = [1, 1]} : vector<17x384xbf16> to vector<17x32xbf16>
    %60 = vector.extract_strided_slice %40 {offsets = [0, 160], sizes = [17, 32], strides = [1, 1]} : vector<17x384xbf16> to vector<17x32xbf16>
    %61 = vector.extract_strided_slice %40 {offsets = [0, 288], sizes = [17, 32], strides = [1, 1]} : vector<17x384xbf16> to vector<17x32xbf16>
    %cst_25 = arith.constant dense<0.000000e+00> : vector<17x17xf32>
    %62 = tpu.matmul %59, %60, %cst_25 {dimension_numbers = #tpu.dot_dimension_numbers<[1], [1], [0], [0], [0, 0, 1, 0], [], []>} : vector<17x32xbf16>, vector<17x32xbf16>, vector<17x17xf32> -> vector<17x17xf32>
    %cst_26 = arith.constant 0.176776692 : f32
    %63 = vector.broadcast %cst_26 : f32 to vector<17x17xf32>
    %64 = arith.mulf %62, %63 : vector<17x17xf32>
    %cst_27 = arith.constant dense<0xFF800000> : vector<17xf32>
    %65 = vector.multi_reduction <maximumf>, %64, %cst_27 [1] : vector<17x17xf32> to vector<17xf32>
    %66 = vector.shape_cast %65 : vector<17xf32> to vector<17x1xf32>
    %67 = vector.broadcast %66 : vector<17x1xf32> to vector<17x17xf32>
    %68 = arith.subf %64, %67 : vector<17x17xf32>
    %69 = math.exp %68 : vector<17x17xf32>
    %cst_28 = arith.constant dense<0.000000e+00> : vector<17xf32>
    %70 = vector.multi_reduction <add>, %69, %cst_28 [1] : vector<17x17xf32> to vector<17xf32>
    %71 = vector.shape_cast %70 : vector<17xf32> to vector<17x1xf32>
    %72 = tpu.reciprocal %71 {approx = true} : vector<17x1xf32> -> vector<17x1xf32>
    %73 = vector.broadcast %72 : vector<17x1xf32> to vector<17x17xf32>
    %74 = arith.mulf %69, %73 : vector<17x17xf32>
    %75 = arith.truncf %74 : vector<17x17xf32> to vector<17x17xbf16>
    %cst_29 = arith.constant dense<0.000000e+00> : vector<17x32xf32>
    %76 = tpu.matmul %75, %61, %cst_29 {dimension_numbers = #tpu.dot_dimension_numbers<[1], [0], [0], [1], [0, 0, 1, 1], [], []>} : vector<17x17xbf16>, vector<17x32xbf16>, vector<17x32xf32> -> vector<17x32xf32>
    %77 = vector.extract_strided_slice %40 {offsets = [0, 64], sizes = [17, 32], strides = [1, 1]} : vector<17x384xbf16> to vector<17x32xbf16>
    %78 = vector.extract_strided_slice %40 {offsets = [0, 192], sizes = [17, 32], strides = [1, 1]} : vector<17x384xbf16> to vector<17x32xbf16>
    %79 = vector.extract_strided_slice %40 {offsets = [0, 320], sizes = [17, 32], strides = [1, 1]} : vector<17x384xbf16> to vector<17x32xbf16>
    %cst_30 = arith.constant dense<0.000000e+00> : vector<17x17xf32>
    %80 = tpu.matmul %77, %78, %cst_30 {dimension_numbers = #tpu.dot_dimension_numbers<[1], [1], [0], [0], [0, 0, 1, 0], [], []>} : vector<17x32xbf16>, vector<17x32xbf16>, vector<17x17xf32> -> vector<17x17xf32>
    %cst_31 = arith.constant 0.176776692 : f32
    %81 = vector.broadcast %cst_31 : f32 to vector<17x17xf32>
    %82 = arith.mulf %80, %81 : vector<17x17xf32>
    %cst_32 = arith.constant dense<0xFF800000> : vector<17xf32>
    %83 = vector.multi_reduction <maximumf>, %82, %cst_32 [1] : vector<17x17xf32> to vector<17xf32>
    %84 = vector.shape_cast %83 : vector<17xf32> to vector<17x1xf32>
    %85 = vector.broadcast %84 : vector<17x1xf32> to vector<17x17xf32>
    %86 = arith.subf %82, %85 : vector<17x17xf32>
    %87 = math.exp %86 : vector<17x17xf32>
    %cst_33 = arith.constant dense<0.000000e+00> : vector<17xf32>
    %88 = vector.multi_reduction <add>, %87, %cst_33 [1] : vector<17x17xf32> to vector<17xf32>
    %89 = vector.shape_cast %88 : vector<17xf32> to vector<17x1xf32>
    %90 = tpu.reciprocal %89 {approx = true} : vector<17x1xf32> -> vector<17x1xf32>
    %91 = vector.broadcast %90 : vector<17x1xf32> to vector<17x17xf32>
    %92 = arith.mulf %87, %91 : vector<17x17xf32>
    %93 = arith.truncf %92 : vector<17x17xf32> to vector<17x17xbf16>
    %cst_34 = arith.constant dense<0.000000e+00> : vector<17x32xf32>
    %94 = tpu.matmul %93, %79, %cst_34 {dimension_numbers = #tpu.dot_dimension_numbers<[1], [0], [0], [1], [0, 0, 1, 1], [], []>} : vector<17x17xbf16>, vector<17x32xbf16>, vector<17x32xf32> -> vector<17x32xf32>
    %95 = vector.extract_strided_slice %40 {offsets = [0, 96], sizes = [17, 32], strides = [1, 1]} : vector<17x384xbf16> to vector<17x32xbf16>
    %96 = vector.extract_strided_slice %40 {offsets = [0, 224], sizes = [17, 32], strides = [1, 1]} : vector<17x384xbf16> to vector<17x32xbf16>
    %97 = vector.extract_strided_slice %40 {offsets = [0, 352], sizes = [17, 32], strides = [1, 1]} : vector<17x384xbf16> to vector<17x32xbf16>
    %cst_35 = arith.constant dense<0.000000e+00> : vector<17x17xf32>
    %98 = tpu.matmul %95, %96, %cst_35 {dimension_numbers = #tpu.dot_dimension_numbers<[1], [1], [0], [0], [0, 0, 1, 0], [], []>} : vector<17x32xbf16>, vector<17x32xbf16>, vector<17x17xf32> -> vector<17x17xf32>
    %cst_36 = arith.constant 0.176776692 : f32
    %99 = vector.broadcast %cst_36 : f32 to vector<17x17xf32>
    %100 = arith.mulf %98, %99 : vector<17x17xf32>
    %cst_37 = arith.constant dense<0xFF800000> : vector<17xf32>
    %101 = vector.multi_reduction <maximumf>, %100, %cst_37 [1] : vector<17x17xf32> to vector<17xf32>
    %102 = vector.shape_cast %101 : vector<17xf32> to vector<17x1xf32>
    %103 = vector.broadcast %102 : vector<17x1xf32> to vector<17x17xf32>
    %104 = arith.subf %100, %103 : vector<17x17xf32>
    %105 = math.exp %104 : vector<17x17xf32>
    %cst_38 = arith.constant dense<0.000000e+00> : vector<17xf32>
    %106 = vector.multi_reduction <add>, %105, %cst_38 [1] : vector<17x17xf32> to vector<17xf32>
    %107 = vector.shape_cast %106 : vector<17xf32> to vector<17x1xf32>
    %108 = tpu.reciprocal %107 {approx = true} : vector<17x1xf32> -> vector<17x1xf32>
    %109 = vector.broadcast %108 : vector<17x1xf32> to vector<17x17xf32>
    %110 = arith.mulf %105, %109 : vector<17x17xf32>
    %111 = arith.truncf %110 : vector<17x17xf32> to vector<17x17xbf16>
    %cst_39 = arith.constant dense<0.000000e+00> : vector<17x32xf32>
    %112 = tpu.matmul %111, %97, %cst_39 {dimension_numbers = #tpu.dot_dimension_numbers<[1], [0], [0], [1], [0, 0, 1, 1], [], []>} : vector<17x17xbf16>, vector<17x32xbf16>, vector<17x32xf32> -> vector<17x32xf32>
    %113 = tpu.concatenate %58, %76, %94, %112 in 1 : vector<17x32xf32>, vector<17x32xf32>, vector<17x32xf32>, vector<17x32xf32> -> vector<17x128xf32>
    %114 = arith.truncf %113 : vector<17x128xf32> to vector<17x128xbf16>
    %c0_40 = arith.constant 0 : index
    %c0_41 = arith.constant 0 : index
    %c0_42 = arith.constant 0 : index
    %115 = vector.load %arg7[%c0_40, %c0_41, %c0_42] : memref<1x128x128xbf16, #tpu.memory_space<vmem>>, vector<1x128x128xbf16>
    %116 = vector.shape_cast %115 : vector<1x128x128xbf16> to vector<128x128xbf16>
    %cst_43 = arith.constant dense<0.000000e+00> : vector<17x128xf32>
    %117 = tpu.matmul %114, %116, %cst_43 {dimension_numbers = #tpu.dot_dimension_numbers<[1], [0], [0], [1], [0, 0, 1, 1], [], []>} : vector<17x128xbf16>, vector<128x128xbf16>, vector<17x128xf32> -> vector<17x128xf32>
    %118 = arith.addf %5, %117 : vector<17x128xf32>
    %c0_44 = arith.constant 0 : index
    %c0_45 = arith.constant 0 : index
    %c0_46 = arith.constant 0 : index
    %119 = vector.load %arg8[%c0_44, %c0_45, %c0_46] : memref<1x1x128xf32, #tpu.memory_space<vmem>>, vector<1x1x128xf32>
    %120 = vector.shape_cast %119 : vector<1x1x128xf32> to vector<1x128xf32>
    %121 = vector.broadcast %120 : vector<1x128xf32> to vector<17x128xf32>
    %122 = arith.addf %118, %121 : vector<17x128xf32>
    %c0_47 = arith.constant 0 : index
    %c0_48 = arith.constant 0 : index
    %c0_49 = arith.constant 0 : index
    %123 = vector.load %arg9[%c0_47, %c0_48, %c0_49] : memref<1x1x128xf32, #tpu.memory_space<vmem>>, vector<1x1x128xf32>
    %124 = vector.shape_cast %123 : vector<1x1x128xf32> to vector<1x128xf32>
    %c0_50 = arith.constant 0 : index
    %c0_51 = arith.constant 0 : index
    %c0_52 = arith.constant 0 : index
    %125 = vector.load %arg10[%c0_50, %c0_51, %c0_52] : memref<1x1x128xf32, #tpu.memory_space<vmem>>, vector<1x1x128xf32>
    %126 = vector.shape_cast %125 : vector<1x1x128xf32> to vector<1x128xf32>
    %cst_53 = arith.constant dense<0.000000e+00> : vector<17xf32>
    %127 = vector.multi_reduction <add>, %122, %cst_53 [1] : vector<17x128xf32> to vector<17xf32>
    %128 = vector.shape_cast %127 : vector<17xf32> to vector<17x1xf32>
    %cst_54 = arith.constant 1.280000e+02 : f32
    %129 = vector.broadcast %cst_54 : f32 to vector<17x1xf32>
    %130 = arith.divf %128, %129 : vector<17x1xf32>
    %131 = vector.broadcast %130 : vector<17x1xf32> to vector<17x128xf32>
    %132 = arith.subf %122, %131 : vector<17x128xf32>
    %133 = arith.mulf %132, %132 : vector<17x128xf32>
    %cst_55 = arith.constant dense<0.000000e+00> : vector<17xf32>
    %134 = vector.multi_reduction <add>, %133, %cst_55 [1] : vector<17x128xf32> to vector<17xf32>
    %135 = vector.shape_cast %134 : vector<17xf32> to vector<17x1xf32>
    %cst_56 = arith.constant 1.280000e+02 : f32
    %136 = vector.broadcast %cst_56 : f32 to vector<17x1xf32>
    %137 = arith.divf %135, %136 : vector<17x1xf32>
    %138 = vector.broadcast %130 : vector<17x1xf32> to vector<17x128xf32>
    %139 = arith.subf %122, %138 : vector<17x128xf32>
    %cst_57 = arith.constant 9.99999997E-7 : f32
    %140 = vector.broadcast %cst_57 : f32 to vector<17x1xf32>
    %141 = arith.addf %137, %140 : vector<17x1xf32>
    %142 = math.rsqrt %141 : vector<17x1xf32>
    %143 = vector.broadcast %142 : vector<17x1xf32> to vector<17x128xf32>
    %144 = arith.mulf %139, %143 : vector<17x128xf32>
    %145 = vector.broadcast %124 : vector<1x128xf32> to vector<17x128xf32>
    %146 = arith.mulf %144, %145 : vector<17x128xf32>
    %147 = vector.broadcast %126 : vector<1x128xf32> to vector<17x128xf32>
    %148 = arith.addf %146, %147 : vector<17x128xf32>
    %149 = arith.truncf %148 : vector<17x128xf32> to vector<17x128xbf16>
    %c0_58 = arith.constant 0 : index
    %c0_59 = arith.constant 0 : index
    %c0_60 = arith.constant 0 : index
    %150 = vector.load %arg11[%c0_58, %c0_59, %c0_60] : memref<1x128x512xbf16, #tpu.memory_space<vmem>>, vector<1x128x512xbf16>
    %151 = vector.shape_cast %150 : vector<1x128x512xbf16> to vector<128x512xbf16>
    %cst_61 = arith.constant dense<0.000000e+00> : vector<17x512xf32>
    %152 = tpu.matmul %149, %151, %cst_61 {dimension_numbers = #tpu.dot_dimension_numbers<[1], [0], [0], [1], [0, 0, 1, 1], [], []>} : vector<17x128xbf16>, vector<128x512xbf16>, vector<17x512xf32> -> vector<17x512xf32>
    %c0_62 = arith.constant 0 : index
    %c0_63 = arith.constant 0 : index
    %c0_64 = arith.constant 0 : index
    %153 = vector.load %arg12[%c0_62, %c0_63, %c0_64] : memref<1x1x512xf32, #tpu.memory_space<vmem>>, vector<1x1x512xf32>
    %154 = vector.shape_cast %153 : vector<1x1x512xf32> to vector<1x512xf32>
    %155 = vector.broadcast %154 : vector<1x512xf32> to vector<17x512xf32>
    %156 = arith.addf %152, %155 : vector<17x512xf32>
    %cst_65 = arith.constant 5.000000e-01 : f32
    %157 = vector.broadcast %cst_65 : f32 to vector<17x512xf32>
    %158 = arith.mulf %157, %156 : vector<17x512xf32>
    %cst_66 = arith.constant 0.707106769 : f32
    %159 = vector.broadcast %cst_66 : f32 to vector<17x512xf32>
    %160 = arith.mulf %156, %159 : vector<17x512xf32>
    %cst_67 = arith.constant 0.000000e+00 : f32
    %161 = vector.broadcast %cst_67 : f32 to vector<17x512xf32>
    %162 = arith.cmpf oge, %160, %161 : vector<17x512xf32>
    %cst_68 = arith.constant 1.000000e+00 : f32
    %cst_69 = arith.constant -1.000000e+00 : f32
    %163 = vector.broadcast %cst_68 : f32 to vector<17x512xf32>
    %164 = vector.broadcast %cst_69 : f32 to vector<17x512xf32>
    %165 = arith.select %162, %163, %164 : vector<17x512xi1>, vector<17x512xf32>
    %166 = math.absf %160 : vector<17x512xf32>
    %cst_70 = arith.constant 0.327591091 : f32
    %167 = vector.broadcast %cst_70 : f32 to vector<17x512xf32>
    %168 = arith.mulf %167, %166 : vector<17x512xf32>
    %cst_71 = arith.constant 1.000000e+00 : f32
    %169 = vector.broadcast %cst_71 : f32 to vector<17x512xf32>
    %170 = arith.addf %169, %168 : vector<17x512xf32>
    %171 = tpu.reciprocal %170 {approx = true} : vector<17x512xf32> -> vector<17x512xf32>
    %cst_72 = arith.constant 1.06140542 : f32
    %172 = vector.broadcast %cst_72 : f32 to vector<17x512xf32>
    %173 = arith.mulf %172, %171 : vector<17x512xf32>
    %cst_73 = arith.constant -1.45315206 : f32
    %174 = vector.broadcast %cst_73 : f32 to vector<17x512xf32>
    %175 = arith.addf %173, %174 : vector<17x512xf32>
    %176 = arith.mulf %175, %171 : vector<17x512xf32>
    %cst_74 = arith.constant 1.42141378 : f32
    %177 = vector.broadcast %cst_74 : f32 to vector<17x512xf32>
    %178 = arith.addf %176, %177 : vector<17x512xf32>
    %179 = arith.mulf %178, %171 : vector<17x512xf32>
    %cst_75 = arith.constant -0.284496725 : f32
    %180 = vector.broadcast %cst_75 : f32 to vector<17x512xf32>
    %181 = arith.addf %179, %180 : vector<17x512xf32>
    %182 = arith.mulf %181, %171 : vector<17x512xf32>
    %cst_76 = arith.constant 0.254829586 : f32
    %183 = vector.broadcast %cst_76 : f32 to vector<17x512xf32>
    %184 = arith.addf %182, %183 : vector<17x512xf32>
    %185 = arith.mulf %184, %171 : vector<17x512xf32>
    %cst_77 = arith.constant 0.000000e+00 : f32
    %186 = vector.broadcast %cst_77 : f32 to vector<17x512xf32>
    %187 = arith.subf %186, %166 : vector<17x512xf32>
    %188 = arith.mulf %187, %166 : vector<17x512xf32>
    %189 = math.exp %188 : vector<17x512xf32>
    %190 = arith.mulf %185, %189 : vector<17x512xf32>
    %cst_78 = arith.constant 1.000000e+00 : f32
    %191 = vector.broadcast %cst_78 : f32 to vector<17x512xf32>
    %192 = arith.subf %191, %190 : vector<17x512xf32>
    %193 = arith.mulf %165, %192 : vector<17x512xf32>
    %cst_79 = arith.constant 1.000000e+00 : f32
    %194 = vector.broadcast %cst_79 : f32 to vector<17x512xf32>
    %195 = arith.addf %194, %193 : vector<17x512xf32>
    %196 = arith.mulf %158, %195 : vector<17x512xf32>
    %197 = arith.truncf %196 : vector<17x512xf32> to vector<17x512xbf16>
    %c0_80 = arith.constant 0 : index
    %c0_81 = arith.constant 0 : index
    %c0_82 = arith.constant 0 : index
    %198 = vector.load %arg13[%c0_80, %c0_81, %c0_82] : memref<1x512x128xbf16, #tpu.memory_space<vmem>>, vector<1x512x128xbf16>
    %199 = vector.shape_cast %198 : vector<1x512x128xbf16> to vector<512x128xbf16>
    %cst_83 = arith.constant dense<0.000000e+00> : vector<17x128xf32>
    %200 = tpu.matmul %197, %199, %cst_83 {dimension_numbers = #tpu.dot_dimension_numbers<[1], [0], [0], [1], [0, 0, 1, 1], [], []>} : vector<17x512xbf16>, vector<512x128xbf16>, vector<17x128xf32> -> vector<17x128xf32>
    %c0_84 = arith.constant 0 : index
    %c0_85 = arith.constant 0 : index
    %c0_86 = arith.constant 0 : index
    %201 = vector.load %arg14[%c0_84, %c0_85, %c0_86] : memref<1x1x128xf32, #tpu.memory_space<vmem>>, vector<1x1x128xf32>
    %202 = vector.shape_cast %201 : vector<1x1x128xf32> to vector<1x128xf32>
    %203 = vector.broadcast %202 : vector<1x128xf32> to vector<17x128xf32>
    %204 = arith.addf %200, %203 : vector<17x128xf32>
    %205 = arith.addf %122, %204 : vector<17x128xf32>
    %206 = arith.truncf %205 : vector<17x128xf32> to vector<17x128xbf16>
    %c0_87 = arith.constant 0 : index
    %c0_88 = arith.constant 0 : index
    %c0_89 = arith.constant 0 : index
    %207 = vector.load %arg15[%c0_87, %c0_88, %c0_89] : memref<1x17x128xbf16, #tpu.memory_space<vmem>>, vector<1x17x128xbf16>
    %208 = vector.shape_cast %207 : vector<1x17x128xbf16> to vector<17x128xbf16>
    %209 = vector.shape_cast %206 : vector<17x128xbf16> to vector<1x17x128xbf16>
    tpu.vector_store %arg15[%c0_87, %c0_88, %c0_89], %209 {strides = array<i32>} : memref<1x17x128xbf16, #tpu.memory_space<vmem>>, vector<1x17x128xbf16>,
    return
  }
  func.func @transform_0(%arg0: i32, %arg1: i32) -> (i32, i32, i32) {
    %c0_i32 = arith.constant 0 : i32
    %c0_i32_0 = arith.constant 0 : i32
    %c0_i32_1 = arith.constant 0 : i32
    return %arg0, %c0_i32, %c0_i32_0 : i32, i32, i32
  }
  func.func @transform_1(%arg0: i32, %arg1: i32) -> (i32, i32, i32) {
    %c0_i32 = arith.constant 0 : i32
    %c0_i32_0 = arith.constant 0 : i32
    %c0_i32_1 = arith.constant 0 : i32
    return %arg1, %c0_i32, %c0_i32_0 : i32, i32, i32
  }
  func.func @transform_2(%arg0: i32, %arg1: i32) -> (i32, i32, i32) {
    %c0_i32 = arith.constant 0 : i32
    %c0_i32_0 = arith.constant 0 : i32
    %c0_i32_1 = arith.constant 0 : i32
    return %arg1, %c0_i32, %c0_i32_0 : i32, i32, i32
  }
  func.func @transform_3(%arg0: i32, %arg1: i32) -> (i32, i32, i32) {
    %c0_i32 = arith.constant 0 : i32
    %c0_i32_0 = arith.constant 0 : i32
    %c0_i32_1 = arith.constant 0 : i32
    return %arg1, %c0_i32, %c0_i32_0 : i32, i32, i32
  }
  func.func @transform_4(%arg0: i32, %arg1: i32) -> (i32, i32, i32) {
    %c0_i32 = arith.constant 0 : i32
    %c0_i32_0 = arith.constant 0 : i32
    %c0_i32_1 = arith.constant 0 : i32
    return %arg1, %c0_i32, %c0_i32_0 : i32, i32, i32
  }
  func.func @transform_5(%arg0: i32, %arg1: i32) -> (i32, i32, i32) {
    %c0_i32 = arith.constant 0 : i32
    %c0_i32_0 = arith.constant 0 : i32
    %c0_i32_1 = arith.constant 0 : i32
    return %arg1, %c0_i32, %c0_i32_0 : i32, i32, i32
  }
  func.func @transform_6(%arg0: i32, %arg1: i32) -> (i32, i32, i32) {
    %c0_i32 = arith.constant 0 : i32
    %c0_i32_0 = arith.constant 0 : i32
    %c0_i32_1 = arith.constant 0 : i32
    return %arg1, %c0_i32, %c0_i32_0 : i32, i32, i32
  }
  func.func @transform_7(%arg0: i32, %arg1: i32) -> (i32, i32, i32) {
    %c0_i32 = arith.constant 0 : i32
    %c0_i32_0 = arith.constant 0 : i32
    %c0_i32_1 = arith.constant 0 : i32
    return %arg1, %c0_i32, %c0_i32_0 : i32, i32, i32
  }
  func.func @transform_8(%arg0: i32, %arg1: i32) -> (i32, i32, i32) {
    %c0_i32 = arith.constant 0 : i32
    %c0_i32_0 = arith.constant 0 : i32
    %c0_i32_1 = arith.constant 0 : i32
    return %arg1, %c0_i32, %c0_i32_0 : i32, i32, i32
  }
  func.func @transform_9(%arg0: i32, %arg1: i32) -> (i32, i32, i32) {
    %c0_i32 = arith.constant 0 : i32
    %c0_i32_0 = arith.constant 0 : i32
    %c0_i32_1 = arith.constant 0 : i32
    return %arg1, %c0_i32, %c0_i32_0 : i32, i32, i32
  }
  func.func @transform_10(%arg0: i32, %arg1: i32) -> (i32, i32, i32) {
    %c0_i32 = arith.constant 0 : i32
    %c0_i32_0 = arith.constant 0 : i32
    %c0_i32_1 = arith.constant 0 : i32
    return %arg1, %c0_i32, %c0_i32_0 : i32, i32, i32
  }
  func.func @transform_11(%arg0: i32, %arg1: i32) -> (i32, i32, i32) {
    %c0_i32 = arith.constant 0 : i32
    %c0_i32_0 = arith.constant 0 : i32
    %c0_i32_1 = arith.constant 0 : i32
    return %arg1, %c0_i32, %c0_i32_0 : i32, i32, i32
  }
  func.func @transform_12(%arg0: i32, %arg1: i32) -> (i32, i32, i32) {
    %c0_i32 = arith.constant 0 : i32
    %c0_i32_0 = arith.constant 0 : i32
    %c0_i32_1 = arith.constant 0 : i32
    return %arg1, %c0_i32, %c0_i32_0 : i32, i32, i32
  }
  func.func @transform_13(%arg0: i32, %arg1: i32) -> (i32, i32, i32) {
    %c0_i32 = arith.constant 0 : i32
    %c0_i32_0 = arith.constant 0 : i32
    %c0_i32_1 = arith.constant 0 : i32
    return %arg0, %c0_i32, %c0_i32_0 : i32, i32, i32
  }
}

</mosaic_0001>

<bundles_post_ra>
// kernel: _lambda_.5
= control target key start
LH: loop header
LB: loop body
LE: loop exit
PB: predicated region body
PF: predicated region fallthrough
CT: control target
= control target key end

     0   :  { %s409_s15 = smov 0   ;;  %s447_s0 = inlined_call_operand.vmem [shape: bf16[2,16,64], index: 0, kind: input, shape index: {}]   ;;  %s448_s1 = inlined_call_operand.vmem [shape: bf16[64,128], index: 1, kind: input, shape index: {}]   ;;  %s449_s2 = inlined_call_operand.vmem [shape: f32[1,128], index: 2, kind: input, shape index: {}]   ;;  %s450_s3 = inlined_call_operand.vmem [shape: f32[1,16,128], index: 3, kind: input, shape index: {}]   ;;  %s451_s4 = inlined_call_operand.vmem [shape: bf16[2,16,128], index: 4, kind: output, shape index: {}]  }
   0x1 LB: > { %s323_s16 = sadd.s32 4294967295, %s382_s15   ;;  %p327_p0 = scmp.ge.s32.totalorder %s382_s15, 1  ;;  %s382_s15 = sphi %s409_s15, %s14_s15  }
   0x2   : > { %p162_p1 = scmp.lt.s32.totalorder %s382_s15, 3 }
   0x4   : > { %p163_p2 = pnand %p327_p0, %p162_p1 }
   0x5   : > { %p188_p3 = scmp.lt.s32.totalorder (!%p163_p2), %s323_s16, 1 }
   0x6   : > { %166 = sbr.rel (%p163_p2) target bundleno = 168 (0xa8), region = 36 }
   0xb   : > { %v361_v0 = vld [vmem:[%s448_s1 + $0x18] sm:$0xff]  ;;  %v360_v1 = vld [vmem:[%s448_s1 + $0x10] sm:$0xff]  ;;  %s453_s16 = smov (!%p188_p3, %s323_s16), 1  ;;  %v359_v2 = vld [vmem:[%s448_s1 + $0x8] sm:$0xff]  ;;  %vm242_vm0 = vcmask 523264  }
   0xc   : > { %250 = vmatpush.bf16.msra.mxu0 %v361_v0  ;;  %s355_s23 = sshll.u32 %s453_s16, 3  ;;  %v358_v3 = vld [vmem:[%s448_s1] sm:$0xff]  ;;  %v261_v10 = vld [vmem:[%s450_s3 + $0x8] sm:$0xff] }
   0xd   : > { %s192_s28 = scalar_lea.vmem %s447_s0, %s355_s23  ;;  %v375_v6 = vld [vmem:[%s449_s2] ss:$0 sm:$0xff]  ;;  %s197_s11 = scalar_lea.vmem %s451_s4, %s355_s23 }
   0xe   : > { %v357_v4 = vld [vmem:[%s192_s28] sm:$0xff] }
   0xf   : > { %v260_v8 = vld [vmem:[%s450_s3] sm:$0xff] }
  0x10   : > { %251 = vmatpush.bf16.msra.mxu0 %v360_v1 }
  0x14   : > { %252 = vmatpush.bf16.msra.mxu0 %v359_v2 }
  0x18   : > { %253 = vmatpush.bf16.msra.mxu0 %v358_v3 }
  0x1b   : > { %352 = vmatmul.msk.bf16.vlgmr.msra.gmra.mxu0 %vm242_vm0, %v357_v4 }
  0x98   : > { %v255_v5 = vpop.f32.mrf.mxu0 }
  0x99   : > { %v256_v7 = vadd.f32 %v375_v6, %v255_v5 }
  0x9b   : > { %v262_v12 = vadd.f32 %v260_v8, %v256_v7 }
  0xa0   : > { %v257_v9 = vpop.f32.mrf.mxu0 }
  0xa1   : > { %v258_v11 = vadd.f32 %v375_v6, %v257_v9 }
  0xa3   : > { %v263_v13 = vadd.f32 %v261_v10, %v258_v11 }
  0xa5   : > { %v365_v14 = vpack.c.bf16 %v263_v13, %v262_v12 }
  0xa7   : > { %366 = vst [vmem:[%s197_s11] sm:$0xff] %v365_v14  }
  0xa8 PF: > { %s14_s15 = sadd.s32 1, %s382_s15  }
  0xa9   : > { %p11_p4 = scmp.ge.s32.totalorder %s14_s15, 4  }
  0xab   :  { %13 = sbr.rel (!%p11_p4) target bundleno = 1 (0x1), region = 66 }

// kernel: _lambda_.7
= control target key start
LH: loop header
LB: loop body
LE: loop exit
PB: predicated region body
PF: predicated region fallthrough
CT: control target
= control target key end

     0   :  { %s548_s18 = smov 0   ;;  %s608_s0 = inlined_call_operand.vmem [shape: bf16[2,9,128], index: 0, kind: input, shape index: {}]   ;;  %s609_s1 = inlined_call_operand.vmem [shape: f32[1,128], index: 1, kind: input, shape index: {}]   ;;  %s610_s2 = inlined_call_operand.vmem [shape: f32[1,128], index: 2, kind: input, shape index: {}]   ;;  %s611_s3 = inlined_call_operand.vmem [shape: bf16[128,128], index: 3, kind: input, shape index: {}]   ;;  %s612_s4 = inlined_call_operand.vmem [shape: f32[1,128], index: 4, kind: input, shape index: {}]   ;;  %s613_s5 = inlined_call_operand.vmem [shape: bf16[2,9,128], index: 5, kind: output, shape index: {}]  }
   0x1 LB: > { %s438_s19 = sadd.s32 4294967295, %s515_s18   ;;  %p442_p0 = scmp.ge.s32.totalorder %s515_s18, 1  ;;  %s515_s18 = sphi %s548_s18, %s15_s18  }
   0x2   : > { %p187_p1 = scmp.lt.s32.totalorder %s515_s18, 3 }
   0x4   : > { %p188_p2 = pnand %p442_p0, %p187_p1 }
   0x5   : > { %p215_p3 = scmp.lt.s32.totalorder (!%p188_p2), %s438_s19, 1 }
   0x6   : > { %191 = sbr.rel (%p188_p2) target bundleno = 442 (0x1ba), region = 40 }
   0xb   : > { %s615_s19 = smov (!%p215_p3, %s438_s19), 1  ;;  %vm233_vm0 = vcmask 1040384   ;;  %v517_v5 = vmov 128.0   ;;  %v490_v21 = vld [vmem:[%s611_s3 + $0x38] sm:$0xff]  ;;  %v489_v22 = vld [vmem:[%s611_s3 + $0x30] sm:$0xff]  ;;  %v488_v23 = vld [vmem:[%s611_s3 + $0x28] sm:$0xff] }
   0xc   : > { %s481_s20 = sshll.u32 %s615_s19, 3  ;;  %503 = vrcp.f32 %v517_v5  ;;  %360 = vmatpush.bf16.msra.mxu0 %v490_v21  ;;  %v487_v24 = vld [vmem:[%s611_s3 + $0x20] sm:$0xff]  ;;  %v486_v25 = vld [vmem:[%s611_s3 + $0x18] sm:$0xff]  ;;  %v485_v26 = vld [vmem:[%s611_s3 + $0x10] sm:$0xff]  ;;  %vm378_vm8 = vsmask.f32 256 }
   0xd   : > { %s219_s23 = scalar_lea.vmem %s608_s0, %s481_s20  ;;  %v484_v27 = vld [vmem:[%s611_s3 + $0x8] sm:$0xff]  ;;  %v483_v29 = vld [vmem:[%s611_s3] sm:$0xff]  ;;  %s224_s26 = scalar_lea.vmem %s613_s5, %s481_s20  ;;  %vm379_vm9 = vmand %vm233_vm0, %vm378_vm8 }
   0xe   : > { %v226_v0 = vld [vmem:[%s219_s23 + $0x4] sm:$0x1]  ;;  %v225_v3 = vld [vmem:[%s219_s23] sm:$0xf] }
   0xf   : > { %v228_v1 = vunpack.c.l.bf16 %v226_v0  ;;  %v227_v4 = vunpack.c.l.bf16 %v225_v3  ;;  %v500_v48 = vld [vmem:[%s609_s1] ss:$0 sm:$0xff]  ;;  %v380_v0 = vld [vmem:[%s224_s26 + $0x4] sm:$0x1] }
  0x10   : > { %361 = vmatpush.bf16.msra.mxu0 %v489_v22  ;;  %v501_v53 = vld [vmem:[%s610_s2] ss:$0 sm:$0xff] }
  0x11   : > { %v234_v2 = vsel %vm233_vm0, %v228_v1, 0.0  ;;  %v502_v58 = vld [vmem:[%s612_s4] ss:$0 sm:$0xff] }
  0x12   : > { %235 = vadd.xlane.f32.xlu0 %v234_v2  ;;  %v504_v6 = vpop.eup %503 }
  0x13   : > { %v238_v7 = vmul.f32 128.0, %v504_v6  ;;  %vm242_vm1 = vweird.f32 %v504_v6 }
  0x14   : > { %362 = vmatpush.bf16.msra.mxu0 %v488_v23 }
  0x15   : > { %v239_v8 = vsub.f32 1.0, %v238_v7 }
  0x17   : > { %v240_v9 = vmul.f32 %v504_v6, %v239_v8 }
  0x18   : > { %363 = vmatpush.bf16.msra.mxu0 %v487_v24 }
  0x19   : > { %v241_v11 = vadd.f32 %v504_v6, %v240_v9 }
  0x1a   : > { %231 = vadd.xlane.f32.xlu0 %v227_v4 }
  0x1b   : > { %v243_v12 = vsel %vm242_vm1, %v504_v6, %v241_v11 }
  0x1c   : > { %364 = vmatpush.bf16.msra.mxu0 %v486_v25 }
  0x20   : > { %365 = vmatpush.bf16.msra.mxu0 %v485_v26 }
  0x24   : > { %366 = vmatpush.bf16.msra.mxu0 %v484_v27 }
  0x28   : > { %367 = vmatpush.bf16.msra.mxu0 %v483_v29 }
  0x85   : > { %v236_v10 = vpop.xlane.xlu0 %235 }
  0x86   : > { %v245_v15 = vmul.f32 %v243_v12, %v236_v10 }
  0x88   : > { %v247_v18 = vsub.f32 %v228_v1, %v245_v15 }
  0x8a   : > { %v249_v19 = vmul.f32 %v247_v18, %v247_v18 }
  0x8c   : > { %v252_v20 = vsel %vm233_vm0, %v249_v19, 0.0 }
  0x8d   : > { %v232_v13 = vpop.xlane.xlu0 %231 }
  0x8e   : > { %v244_v14 = vmul.f32 %v243_v12, %v232_v13 }
  0x90   : > { %v246_v16 = vsub.f32 %v227_v4, %v244_v14 }
  0x92   : > { %v248_v17 = vmul.f32 %v246_v16, %v246_v16 }
  0x94   : > { %250 = vadd.xlane.f32.xlu1 %v248_v17 }
  0x9c   : > { %253 = vadd.xlane.f32.xlu1 %v252_v20 }
 0x107   : > { %v251_v28 = vpop.xlane.xlu1 %250 }
 0x108   : > { %v255_v30 = vmul.f32 %v251_v28, %v243_v12 }
 0x10a   : > { %v257_v31 = vadd.f32 1e-06, %v255_v30 }
 0x10c   : > { %505 = vrsqrt.f32 %v257_v31  ;;  %vm265_vm3 = vweird.f32 %v257_v31 }
 0x10f   : > { %v254_v32 = vpop.xlane.xlu1 %253 }
 0x110   : > { %v256_v33 = vmul.f32 %v254_v32, %v243_v12 }
 0x112   : > { %v506_v34 = vpop.eup %505  ;;  %v258_v35 = vadd.f32 1e-06, %v256_v33 }
 0x113   : > { %v260_v36 = vmul.f32 %v506_v34, %v257_v31  ;;  %vm266_vm2 = vweird.f32 %v506_v34 }
 0x114   : > { %507 = vrsqrt.f32 %v258_v35  ;;  %vm267_vm4 = vmor %vm265_vm3, %vm266_vm2  ;;  %vm275_vm6 = vweird.f32 %v258_v35 }
 0x115   : > { %v261_v37 = vmul.f32 %v506_v34, %v260_v36 }
 0x117   : > { %v262_v38 = vmul.f32 0.5, %v261_v37 }
 0x119   : > { %v263_v39 = vsub.f32 1.5, %v262_v38 }
 0x11a   : > { %v508_v40 = vpop.eup %507 }
 0x11b   : > { %v264_v41 = vmul.f32 %v506_v34, %v263_v39  ;;  %v270_v42 = vmul.f32 %v508_v40, %v258_v35  ;;  %vm276_vm5 = vweird.f32 %v508_v40 }
 0x11c   : > { %vm277_vm7 = vmor %vm275_vm6, %vm276_vm5 }
 0x11d   : > { %v271_v43 = vmul.f32 %v508_v40, %v270_v42  ;;  %v268_v45 = vsel %vm267_vm4, %v506_v34, %v264_v41 }
 0x11e   : > { %v279_v47 = vmul.f32 %v268_v45, %v246_v16 }
 0x11f   : > { %v272_v44 = vmul.f32 0.5, %v271_v43 }
 0x120   : > { %v284_v52 = vmul.f32 %v500_v48, %v279_v47 }
 0x121   : > { %v273_v46 = vsub.f32 1.5, %v272_v44 }
 0x122   : > { %v289_v55 = vadd.f32 %v501_v53, %v284_v52 }
 0x123   : > { %v274_v49 = vmul.f32 %v508_v40, %v273_v46 }
 0x125   : > { %v278_v50 = vsel %vm277_vm7, %v508_v40, %v274_v49 }
 0x126   : > { %v280_v51 = vmul.f32 %v278_v50, %v247_v18 }
 0x128   : > { %v285_v54 = vmul.f32 %v500_v48, %v280_v51 }
 0x12a   : > { %v290_v56 = vadd.f32 %v501_v53, %v285_v54 }
 0x12c   : > { %v291_v57 = vpack.c.bf16 %v290_v56, %v289_v55 }
 0x12e   : > { %368 = vmatmul.bf16.vlgmr.msra.gmra.mxu0 %v291_v57 }
 0x1ab   : > { %v369_v59 = vpop.f32.mrf.mxu0 }
 0x1ac   : > { %v370_v60 = vadd.f32 %v502_v58, %v369_v59 }
 0x1ae   : > { %v374_v61 = vpack.c.bf16 %v370_v60, %v370_v60 }
 0x1b0   : > { %376 = vst [vmem:[%s224_s26] sm:$0xf] %v374_v61 }
 0x1b3   : > { %v371_v62 = vpop.f32.mrf.mxu0 }
 0x1b4   : > { %v372_v63 = vadd.f32 %v502_v58, %v371_v62 }
 0x1b6   : > { %v375_v1 = vpack.c.bf16 %v372_v63, %v372_v63 }
 0x1b8   : > { %v381_v2 = vsel %vm379_vm9, %v375_v1, %v380_v0 }
 0x1b9   : > { %382 = vst [vmem:[%s224_s26 + $0x4] sm:$0x1] %v381_v2 }
 0x1ba PF: > { %s15_s18 = sadd.s32 1, %s515_s18  }
 0x1bb   : > { %p12_p4 = scmp.ge.s32.totalorder %s15_s18, 4  }
 0x1bd   :  { %14 = sbr.rel (!%p12_p4) target bundleno = 1 (0x1), region = 70 }

// kernel: _lambda_.6
= control target key start
LH: loop header
LB: loop body
LE: loop exit
PB: predicated region body
PF: predicated region fallthrough
CT: control target
= control target key end

     0   :  { %s3179_s25 = smov 0   ;;  %s3181_s26 = smov 0   ;;  %s3775_s0 = inlined_call_operand.vmem [shape: bf16[2,9,128], index: 0, kind: input, shape index: {}]   ;;  %s3776_s1 = inlined_call_operand.vmem [shape: f32[2,1,128], index: 1, kind: input, shape index: {}]   ;;  %s3777_s2 = inlined_call_operand.vmem [shape: f32[2,1,128], index: 2, kind: input, shape index: {}]   ;;  %s3778_s3 = inlined_call_operand.vmem [shape: bf16[2,128,384], index: 3, kind: input, shape index: {}]   ;;  %s3779_s4 = inlined_call_operand.vmem [shape: f32[2,1,384], index: 4, kind: input, shape index: {}]   ;;  %s3780_s5 = inlined_call_operand.vmem [shape: bf16[2,128,128], index: 5, kind: input, shape index: {}]   ;;  %s3781_s6 = inlined_call_operand.vmem [shape: f32[2,1,128], index: 6, kind: input, shape index: {}]   ;;  %s3782_s7 = inlined_call_operand.vmem [shape: f32[2,1,128], index: 7, kind: input, shape index: {}]   ;;  %s3783_s8 = inlined_call_operand.vmem [shape: f32[2,1,128], index: 8, kind: input, shape index: {}]   ;;  %s3784_s9 = inlined_call_operand.vmem [shape: bf16[2,128,512], index: 9, kind: input, shape index: {}]   ;;  %s3785_s10 = inlined_call_operand.vmem [shape: f32[2,1,512], index: 10, kind: input, shape index: {}]   ;;  %s3786_s11 = inlined_call_operand.vmem [shape: bf16[2,512,128], index: 11, kind: input, shape index: {}]   ;;  %s3787_s12 = inlined_call_operand.vmem [shape: f32[2,1,128], index: 12, kind: input, shape index: {}]   ;;  %s3788_s13 = inlined_call_operand.vmem [shape: bf16[2,9,128], index: 13, kind: output, shape index: {}]  }
   0x1   :  { %3793 = sst [smem:[#allocation8_spill]] %s3775_s0  ;;  %s3183_s27 = smov 0  }
   0x2   :  { %3794 = sst [smem:[#allocation9_spill]] %s3777_s2  ;;  %s3185_s28 = smov 0  }
   0x3   :  { %3795 = sst [smem:[#allocation10_spill]] %s3778_s3  ;;  %s3187_s29 = smov 0  }
   0x4   :  { %3796 = sst [smem:[#allocation11_spill]] %s3779_s4 }
   0x5   :  { %3797 = sst [smem:[#allocation12_spill]] %s3780_s5 }
   0x6   :  { %3798 = sst [smem:[#allocation13_spill]] %s3788_s13 }
   0x7 LB: > { %3799 = sst [smem:[#allocation2_spill]] %s3085_s25  ;;  %s32_s30 = sadd.s32 1, %s3093_s27  ;;  %s3101_s29 = sphi %s3187_s29, %s23_s29   ;;  %s3097_s28 = sphi %s3185_s28, %s3822_s28   ;;  %s3093_s27 = sphi %s3183_s27, %s3821_s27   ;;  %s3089_s26 = sphi %s3181_s26, %s3820_s26   ;;  %s3085_s25 = sphi %s3179_s25, %s3819_s25  }
   0x8   : > { %3800 = sst [smem:[#allocation3_spill]] %s3093_s27  ;;  %s35_s14 = sadd.s32 1, %s3097_s28 }
   0x9   : > { %3801 = sst [smem:[#allocation4_spill]] %s3097_s28  ;;  %p33_p0 = scmp.ge.s32.totalorder %s32_s30, 2 }
   0xa   : > { %3802 = sst [smem:[#allocation5_spill]] %s3101_s29  ;;  %p2411_p1 = scmp.ge.s32.totalorder %s3101_s29, 1 }
   0xb   : > { %p505_p2 = scmp.lt.s32.totalorder %s3101_s29, 5  ;;  %s3824_s30 = smov (%p33_p0, %s32_s30), 0 }
   0xc   : > { %3803 = sst [smem:[#allocation6_spill]] %s3824_s30  ;;  %s3826_s14 = smov (!%p33_p0, %s35_s14), %s3097_s28 }
   0xd   : > { %p506_p3 = pnand %p2411_p1, %p505_p2  ;;  %p37_p4 = scmp.ge.s32.totalorder %s3826_s14, 2 }
   0xe   : > { %p595_p5 = scmp.lt.s32.totalorder (!%p506_p3), %s3089_s26, 1  ;;  %p600_p6 = scmp.lt.s32.totalorder (!%p506_p3), %s3085_s25, 1 }
   0xf   : > { %s3828_s14 = smov (%p37_p4, %s3826_s14), 0  ;;  %509 = sbr.rel (%p506_p3) target bundleno = 2347 (0x92b), region = 72 }
  0x10   : > { %3804 = sst [smem:[#allocation7_spill]] %s3828_s14 }
  0x11   : > { %s3805_s0 = sld [smem:[#allocation8_spill]] (!%p506_p3) }
  0x12   : > { %s3807_s3 = sld [smem:[#allocation10_spill]] (!%p506_p3) }
  0x13   : > { %s3808_s5 = sld [smem:[#allocation12_spill]] (!%p506_p3) }
  0x14   : > { %s3830_s26 = smov (!%p595_p5, %s3089_s26), 1  ;;  %s3809_s4 = sld [smem:[#allocation11_spill]] }
  0x15   : > { %s3213_s15 = scalar_select %p600_p6, %s3085_s25, 1 }
  0x16   : > { %s2819_s16 = sshll.u32 %s3830_s26, 3  ;;  %s3811_s17 = sld [smem:[#allocation2_spill]] }
  0x17   : > { %s599_s19 = scalar_lea.vmem %s3805_s0, %s2819_s16  ;;  %s2920_s30 = smul.u32 192, %s3213_s15 }
  0x18   : > { %s2921_s28 = smul.u32 3, %s3213_s15  ;;  %s2820_s27 = sshll.u32 %s3213_s15, 6 }
  0x19   : > { %s3232_s26 = scalar_lea.vmem %s3807_s3, %s2920_s30  ;;  %s3237_s18 = scalar_lea.vmem %s3808_s5, %s2820_s27 }
  0x1a   : > { %s3242_s22 = scalar_lea.vmem %s3809_s4, %s2921_s28  ;;  %s2821_s13 = sshll.u32 %s3213_s15, 8 }
  0x1b   : > { %s2419_s27 = sshll.u32 %s3213_s15, 2  ;;  %s3261_s20 = scalar_lea.vmem %s3784_s9, %s2821_s13 }
  0x1c   : > { %s3266_s23 = scalar_lea.vmem %s3785_s10, %s2419_s27  ;;  %s3271_s0 = scalar_lea.vmem %s3786_s11, %s2821_s13 }
  0x1d   : > { %s645_s30 = scalar_lea.vmem %s3787_s12, %s3213_s15  ;;  %s3810_s4 = sld [smem:[#allocation13_spill]] }
  0x1e   : > { %p2424_p7 = scmp.ne.s32.totalorder %s3811_s17, 0 }
  0x20   : > { %655 = sbr.rel (%p2424_p7) target bundleno = 42 (0x2a), region = 76 }
  0x23   : > { %s3280_s5 = scalar_lea.vmem %s3810_s4, %s2819_s16 }
  0x25   : > { %v656_v0 = vld [vmem:[%s599_s19] sm:$0xf]  ;;  %v657_v1 = vld [vmem:[%s599_s19 + $0x4] sm:$0x1]  ;;  %vm659_vm0 = vcmask 1040384  }
  0x26   : > { %658 = vst [vmem:[%s3280_s5] sm:$0xf] %v656_v0  ;;  %vm660_vm1 = vsmask.f32 256  ;;  %v662_v2 = vld [vmem:[%s3280_s5 + $0x4] sm:$0x1] }
  0x27   : > { %vm661_vm2 = vmand %vm659_vm0, %vm660_vm1 }
  0x28   : > { %v663_v3 = vsel %vm661_vm2, %v657_v1, %v662_v2 }
  0x29   : > { %664 = vst [vmem:[%s3280_s5 + $0x4] sm:$0x1] %v663_v3 }
  0x2a PF: > { %vm673_vm3 = vcmask 1040384   ;;  %v3103_v9 = vmov 128.0   ;;  %v2511_v25 = vld [vmem:[%s3232_s26 + $0xa8] sm:$0xf]  ;;  %v2846_v26 = vld [vmem:[%s3232_s26 + $0xb0] sm:$0xf0]  ;;  %s3812_s14 = scalar_lea.vmem %s3776_s1, %s3213_s15  ;;  %s3815_s21 = scalar_lea.vmem %s3781_s6, %s3213_s15 }
  0x2b   : > { %2989 = vrcp.f32 %v3103_v9  ;;  %v2845_v27 = vld [vmem:[%s3232_s26 + $0xac] sm:$0xf]  ;;  %v2512_v28 = vor.u32 %v2846_v26, %v2511_v25  ;;  %v2513_v29 = vld [vmem:[%s3232_s26 + $0xb4] sm:$0xf0]  ;;  %v2519_v30 = vld [vmem:[%s3232_s26 + $0xb0] sm:$0xf]  ;;  %s3816_s2 = scalar_lea.vmem %s3782_s7, %s3213_s15  ;;  %s3817_s3 = scalar_lea.vmem %s3783_s8, %s3213_s15 }
  0x2c   : > { %v2847_v31 = vld [vmem:[%s3232_s26 + $0xb8] sm:$0xf0]  ;;  %v2516_v32 = vor.u32 %v2845_v27, %v2513_v29  ;;  %v2499_v34 = vld [vmem:[%s3232_s26 + $0x90] sm:$0xf]  ;;  %v2842_v36 = vld [vmem:[%s3232_s26 + $0x94] sm:$0xf] }
  0x2d   : > { %v665_v7 = vld [vmem:[%s3280_s5] sm:$0xf]  ;;  %v2520_v33 = vor.u32 %v2847_v31, %v2519_v30  ;;  %900 = vmatpush.bf16.msra.mxu0 %v2512_v28  ;;  %v2843_v35 = vld [vmem:[%s3232_s26 + $0x98] sm:$0xf0]  ;;  %v2507_v39 = vld [vmem:[%s3232_s26 + $0x98] sm:$0xf] }
  0x2e   : > { %v3292_v8 = vunpack.c.l.bf16 %v665_v7  ;;  %914 = vmatpush.bf16.msra.mxu1 %v2516_v32  ;;  %v2500_v37 = vor.u32 %v2843_v35, %v2499_v34  ;;  %v2501_v38 = vld [vmem:[%s3232_s26 + $0x9c] sm:$0xf0]  ;;  %v2844_v40 = vld [vmem:[%s3232_s26 + $0xa0] sm:$0xf0]  ;;  %v2487_v43 = vld [vmem:[%s3232_s26 + $0x78] sm:$0xf] }
  0x2f   : > { %928 = vmatpush.bf16.msra.mxu2 %v2520_v33  ;;  %v2504_v41 = vor.u32 %v2842_v36, %v2501_v38  ;;  %v2508_v42 = vor.u32 %v2844_v40, %v2507_v39  ;;  %v2840_v44 = vld [vmem:[%s3232_s26 + $0x80] sm:$0xf0]  ;;  %v2839_v45 = vld [vmem:[%s3232_s26 + $0x7c] sm:$0xf]  ;;  %v2489_v47 = vld [vmem:[%s3232_s26 + $0x84] sm:$0xf0] }
  0x30   : > { %v666_v4 = vld [vmem:[%s3280_s5 + $0x4] sm:$0x1]  ;;  %v2488_v46 = vor.u32 %v2840_v44, %v2487_v43  ;;  %v2495_v48 = vld [vmem:[%s3232_s26 + $0x80] sm:$0xf]  ;;  %v2841_v49 = vld [vmem:[%s3232_s26 + $0x88] sm:$0xf0]  ;;  %v2492_v50 = vor.u32 %v2839_v45, %v2489_v47 }
  0x31   : > { %v3287_v5 = vunpack.c.l.bf16 %v666_v4  ;;  %v2990_v10 = vpop.eup %2989  ;;  %901 = vmatpush.bf16.msra.mxu0 %v2500_v37  ;;  %v2496_v51 = vor.u32 %v2841_v49, %v2495_v48  ;;  %v2475_v52 = vld [vmem:[%s3232_s26 + $0x60] sm:$0xf]  ;;  %v2837_v53 = vld [vmem:[%s3232_s26 + $0x68] sm:$0xf0]  ;;  %v2836_v54 = vld [vmem:[%s3232_s26 + $0x64] sm:$0xf] }
  0x32   : > { %v678_v11 = vmul.f32 128.0, %v2990_v10  ;;  %vm682_vm4 = vweird.f32 %v2990_v10  ;;  %915 = vmatpush.bf16.msra.mxu1 %v2504_v41  ;;  %v2476_v55 = vor.u32 %v2837_v53, %v2475_v52  ;;  %v2477_v56 = vld [vmem:[%s3232_s26 + $0x6c] sm:$0xf0]  ;;  %v2483_v57 = vld [vmem:[%s3232_s26 + $0x68] sm:$0xf]  ;;  %vm954_vm11 = vcmask 261120  }
  0x33   : > { %v674_v6 = vsel %vm673_vm3, %v3287_v5, 0.0  ;;  %929 = vmatpush.bf16.msra.mxu2 %v2508_v42  ;;  %v2838_v58 = vld [vmem:[%s3232_s26 + $0x70] sm:$0xf0]  ;;  %v2480_v59 = vor.u32 %v2836_v54, %v2477_v56  ;;  %v2463_v61 = vld [vmem:[%s3232_s26 + $0x48] sm:$0xf]  ;;  %vm1010_vm12 = vcmask 1043456  }
  0x34   : > { %675 = vadd.xlane.f32.xlu0 %v674_v6  ;;  %v679_v12 = vsub.f32 1.0, %v678_v11  ;;  %v2484_v60 = vor.u32 %v2838_v58, %v2483_v57  ;;  %v2834_v62 = vld [vmem:[%s3232_s26 + $0x50] sm:$0xf0]  ;;  %v2833_v63 = vld [vmem:[%s3232_s26 + $0x4c] sm:$0xf]  ;;  %vm1011_vm13 = vcmask 1044480  }
  0x35   : > { %902 = vmatpush.bf16.msra.mxu0 %v2488_v46  ;;  %v2464_v0 = vor.u32 %v2834_v62, %v2463_v61  ;;  %v2465_v1 = vld [vmem:[%s3232_s26 + $0x54] sm:$0xf0]  ;;  %v2471_v2 = vld [vmem:[%s3232_s26 + $0x50] sm:$0xf]  ;;  %v2835_v3 = vld [vmem:[%s3232_s26 + $0x58] sm:$0xf0] }
  0x36   : > { %v680_v13 = vmul.f32 %v2990_v10, %v679_v12  ;;  %916 = vmatpush.bf16.msra.mxu1 %v2492_v50  ;;  %v2468_v4 = vor.u32 %v2833_v63, %v2465_v1  ;;  %v2472_v6 = vor.u32 %v2835_v3, %v2471_v2  ;;  %v2451_v7 = vld [vmem:[%s3232_s26 + $0x30] sm:$0xf]  ;;  %v2831_v9 = vld [vmem:[%s3232_s26 + $0x38] sm:$0xf0]  ;;  %v2453_v12 = vld [vmem:[%s3232_s26 + $0x3c] sm:$0xf0] }
  0x37   : > { %930 = vmatpush.bf16.msra.mxu2 %v2496_v51  ;;  %v2452_v11 = vor.u32 %v2831_v9, %v2451_v7  ;;  %v2447_v25 = vld [vmem:[%s3232_s26 + $0x20] sm:$0xf]  ;;  %v2829_v26 = vld [vmem:[%s3232_s26 + $0x28] sm:$0xf0]  ;;  %v2824_v31 = vld [vmem:[%s3232_s26 + $0x4] sm:$0xf] }
  0x38   : > { %v681_v15 = vadd.f32 %v2990_v10, %v680_v13  ;;  %v2459_v13 = vld [vmem:[%s3232_s26 + $0x38] sm:$0xf]  ;;  %v2448_v28 = vor.u32 %v2829_v26, %v2447_v25  ;;  %v2427_v29 = vld [vmem:[%s3232_s26] sm:$0xf]  ;;  %v2825_v30 = vld [vmem:[%s3232_s26 + $0x8] sm:$0xf0] }
  0x39   : > { %903 = vmatpush.bf16.msra.mxu0 %v2476_v55  ;;  %v2428_v33 = vor.u32 %v2825_v30, %v2427_v29  ;;  %v2429_v34 = vld [vmem:[%s3232_s26 + $0xc] sm:$0xf0]  ;;  %v2435_v35 = vld [vmem:[%s3232_s26 + $0x8] sm:$0xf]  ;;  %v2826_v36 = vld [vmem:[%s3232_s26 + $0x10] sm:$0xf0] }
  0x3a   : > { %v3295_v16 = vsel %vm682_vm4, %v2990_v10, %v681_v15  ;;  %917 = vmatpush.bf16.msra.mxu1 %v2480_v59  ;;  %v2830_v10 = vld [vmem:[%s3232_s26 + $0x34] sm:$0xf]  ;;  %v2432_v38 = vor.u32 %v2824_v31, %v2429_v34  ;;  %v2436_v39 = vor.u32 %v2826_v36, %v2435_v35  ;;  %v2983_v57 = vld [vmem:[%s3812_s14] ss:$0 sm:$0xff]  ;;  %vm977_vm14 = vcmask 72704   ;;  %s3106_s13 = smov 32  }
  0x3b   : > { %931 = vmatpush.bf16.msra.mxu2 %v2484_v60  ;;  %v2456_v15 = vor.u32 %v2830_v10, %v2453_v12  ;;  %v764_v2 = vld [vmem:[%s3242_s22] sm:$0x7]  ;;  %s3104_s22 = smov 96   ;;  %vm981_vm15 = vcmask 65536   ;;  %s3107_s27 = smov 64   ;;  %vm1270_vm0 = vcmask 523264  }
  0x3c   : > { %671 = vadd.xlane.f32.xlu0 %v3292_v8  ;;  %v767_v7 = vperm.slane %v764_v2, 1  ;;  %vm1273_vm1 = vcmask 785408  }
  0x3d   : > { %904 = vmatpush.bf16.msra.mxu0 %v2464_v0 }
  0x3e   : > { %918 = vmatpush.bf16.msra.mxu1 %v2468_v4 }
  0x3f   : > { %932 = vmatpush.bf16.msra.mxu2 %v2472_v6  ;;  %v766_v6 = vperm.slane %v764_v2, 0 }
  0x41   : > { %905 = vmatpush.bf16.msra.mxu0 %v2452_v11  ;;  %v768_v11 = vperm.slane %v764_v2, 2 }
  0x42   : > { %919 = vmatpush.bf16.msra.mxu1 %v2456_v15 }
  0xa7   : > { %v676_v14 = vpop.xlane.xlu0 %675 }
  0xa8   : > { %v685_v19 = vmul.f32 %v3295_v16, %v676_v14  ;;  %v2832_v14 = vld [vmem:[%s3232_s26 + $0x40] sm:$0xf0] }
  0xaa   : > { %v3305_v22 = vsub.f32 %v3287_v5, %v685_v19  ;;  %v2828_v19 = vld [vmem:[%s3232_s26 + $0x20] sm:$0xf0] }
  0xac   : > { %v689_v23 = vmul.f32 %v3305_v22, %v3305_v22 }
  0xae   : > { %v692_v24 = vsel %vm673_vm3, %v689_v23, 0.0 }
  0xaf   : > { %v672_v17 = vpop.xlane.xlu0 %671 }
  0xb0   : > { %v684_v18 = vmul.f32 %v3295_v16, %v672_v17  ;;  %v2460_v17 = vor.u32 %v2832_v14, %v2459_v13 }
  0xb2   : > { %v3300_v20 = vsub.f32 %v3292_v8, %v684_v18  ;;  %933 = vmatpush.bf16.msra.mxu2 %v2460_v17  ;;  %v2439_v18 = vld [vmem:[%s3232_s26 + $0x18] sm:$0xf] }
  0xb3   : > { %v2440_v23 = vor.u32 %v2828_v19, %v2439_v18 }
  0xb4   : > { %v688_v21 = vmul.f32 %v3300_v20, %v3300_v20 }
  0xb5   : > { %906 = vmatpush.bf16.msra.mxu0 %v2440_v23 }
  0xb6   : > { %690 = vadd.xlane.f32.xlu1 %v688_v21  ;;  %v2827_v21 = vld [vmem:[%s3232_s26 + $0x1c] sm:$0xf]  ;;  %934 = vmatpush.bf16.msra.mxu2 %v2448_v28 }
  0xb9   : > { %907 = vmatpush.bf16.msra.mxu0 %v2428_v33  ;;  %v3105_v33 = vmov 65535  }
  0xba   : > { %935 = vmatpush.bf16.msra.mxu2 %v2436_v39  ;;  %v1012_v34 = vsel %vm1010_vm12, 4294967295, %v3105_v33 }
  0xbe   : > { %693 = vadd.xlane.f32.xlu1 %v692_v24  ;;  %v2441_v24 = vld [vmem:[%s3232_s26 + $0x24] sm:$0xf0]  ;;  %s3813_s26 = sld [smem:[#allocation9_spill]] }
  0xbf   : > { %v2444_v27 = vor.u32 %v2827_v21, %v2441_v24 }
  0xc1   : > { %920 = vmatpush.bf16.msra.mxu1 %v2444_v27 }
  0xc4   : > { %s3814_s25 = scalar_lea.vmem %s3813_s26, %s3213_s15 }
  0xc5   : > { %921 = vmatpush.bf16.msra.mxu1 %v2432_v38  ;;  %v2984_v62 = vld [vmem:[%s3814_s25] ss:$0 sm:$0xff] }
 0x129   : > { %v691_v32 = vpop.xlane.xlu1 %690 }
 0x12a   : > { %v695_v37 = vmul.f32 %v691_v32, %v3295_v16 }
 0x12c   : > { %v697_v40 = vadd.f32 1e-06, %v695_v37  ;;  %v3375_v37 = vsel %vm1011_vm13, %v1012_v34, 0 }
 0x12e   : > { %2991 = vrsqrt.f32 %v697_v40  ;;  %vm705_vm6 = vweird.f32 %v697_v40 }
 0x131   : > { %v694_v41 = vpop.xlane.xlu1 %693 }
 0x132   : > { %v696_v42 = vmul.f32 %v694_v41, %v3295_v16 }
 0x134   : > { %v2992_v43 = vpop.eup %2991  ;;  %v698_v44 = vadd.f32 1e-06, %v696_v42 }
 0x135   : > { %v700_v45 = vmul.f32 %v2992_v43, %v697_v40  ;;  %vm706_vm5 = vweird.f32 %v2992_v43 }
 0x136   : > { %2993 = vrsqrt.f32 %v698_v44  ;;  %vm707_vm7 = vmor %vm705_vm6, %vm706_vm5  ;;  %vm715_vm9 = vweird.f32 %v698_v44 }
 0x137   : > { %v701_v46 = vmul.f32 %v2992_v43, %v700_v45 }
 0x139   : > { %v702_v47 = vmul.f32 0.5, %v701_v46 }
 0x13b   : > { %v703_v48 = vsub.f32 1.5, %v702_v47 }
 0x13c   : > { %v2994_v49 = vpop.eup %2993 }
 0x13d   : > { %v704_v50 = vmul.f32 %v2992_v43, %v703_v48  ;;  %v710_v51 = vmul.f32 %v2994_v49, %v698_v44  ;;  %vm716_vm8 = vweird.f32 %v2994_v49 }
 0x13e   : > { %vm717_vm10 = vmor %vm715_vm9, %vm716_vm8 }
 0x13f   : > { %v711_v52 = vmul.f32 %v2994_v49, %v710_v51  ;;  %v708_v53 = vsel %vm707_vm7, %v2992_v43, %v704_v50 }
 0x140   : > { %v719_v56 = vmul.f32 %v708_v53, %v3300_v20 }
 0x141   : > { %v712_v54 = vmul.f32 0.5, %v711_v52 }
 0x142   : > { %v724_v61 = vmul.f32 %v2983_v57, %v719_v56 }
 0x143   : > { %v713_v55 = vsub.f32 1.5, %v712_v54 }
 0x144   : > { %v729_v20 = vadd.f32 %v2984_v62, %v724_v61 }
 0x145   : > { %v714_v58 = vmul.f32 %v2994_v49, %v713_v55 }
 0x147   : > { %v718_v59 = vsel %vm717_vm10, %v2994_v49, %v714_v58 }
 0x148   : > { %v720_v60 = vmul.f32 %v718_v59, %v3305_v22 }
 0x14a   : > { %v725_v63 = vmul.f32 %v2983_v57, %v720_v60 }
 0x14c   : > { %v730_v0 = vadd.f32 %v2984_v62, %v725_v63 }
 0x14e   : > { %v731_v1 = vpack.c.bf16 %v730_v0, %v729_v20 }
 0x150   : > { %908 = vmatmul.bf16.vlgmr.msra.gmra.mxu0 %v731_v1  ;;  %922 = vmatmul.bf16.vlgmr.msra.gmra.mxu1 %v731_v1 }
 0x151   : > { %936 = vmatmul.bf16.vlgmr.msra.gmra.mxu2 %v731_v1 }
 0x1cd   : > { %v909_v3 = vpop.f32.mrf.mxu0  ;;  %v923_v4 = vpop.f32.mrf.mxu1 }
 0x1ce   : > { %v910_v9 = vadd.f32 %v909_v3, %v766_v6  ;;  %v924_v22 = vadd.f32 %v923_v4, %v767_v7 }
 0x1d0   : > { %v942_v14 = vpack.c.bf16 %v924_v22, %v910_v9 }
 0x1d2   : > { %v948_v21 = vunpack.c.l.b16 %v942_v14  ;;  %v951_v23 = vunpack.c.h.b16 %v942_v14 }
 0x1d4   : > { %v937_v10 = vpop.f32.mrf.mxu2 }
 0x1d5   : > { %v911_v12 = vpop.f32.mrf.mxu0  ;;  %v925_v13 = vpop.f32.mrf.mxu1  ;;  %v938_v19 = vadd.f32 %v937_v10, %v768_v11 }
 0x1d6   : > { %v912_v15 = vadd.f32 %v911_v12, %v766_v6  ;;  %v926_v17 = vadd.f32 %v925_v13, %v767_v7 }
 0x1d7   : > { %v943_v29 = vpack.c.bf16 %v938_v19, %v938_v19 }
 0x1d8   : > { %v944_v18 = vpack.c.bf16 %v926_v17, %v912_v15 }
 0x1d9   : > { %v1004_v35 = vunpack.c.l.b16 %v943_v29 }
 0x1da   : > { %v949_v24 = vunpack.c.l.b16 %v944_v18  ;;  %v952_v25 = vunpack.c.h.b16 %v944_v18 }
 0x1dc   : > { %v950_v26 = vpack.c.b16 %v949_v24, %v948_v21  ;;  %v953_v27 = vpack.c.b16 %v952_v25, %v951_v23  ;;  %v939_v28 = vpop.f32.mrf.mxu2 }
 0x1dd   : > { %v940_v30 = vadd.f32 %v939_v28, %v768_v11 }
 0x1de   : > { %1031 = vrot.lane.b32.xlu0 %v950_v26, %s3104_s22  ;;  %v959_v31 = vsel %vm954_vm11, %v953_v27, 0 }
 0x1df   : > { %v945_v32 = vpack.c.bf16 %v940_v30, %v940_v30  ;;  %968 = vmatpush.bf16.xpose.msra.mxu3 %v959_v31 }
 0x1e1   : > { %v1005_v36 = vunpack.c.l.b16 %v945_v32 }
 0x1e3   : > { %v3377_v38 = vpack.c.b16 %v1005_v36, %v1004_v35 }
 0x1e5   : > { %v1015_v39 = vand.u32 %v3375_v37, %v3377_v38 }
 0x1e6   : > { %2521 = vmatmul.msk.bf16.vlgmr.msra.gmra.mxu3 %vm954_vm11, %v950_v26 }
 0x1e7   : > { %1024 = vmatpush.bf16.msrb.mxu3 %v1015_v39 }
 0x250   : > { %v1032_v58 = vpop.permute.xlu0 %1031 }
 0x269   : > { %v970_v40 = vpop.f32.mrf.mxu3 }
 0x26a   : > { %v975_v41 = vmul.f32 0.17677669, %v970_v40 }
 0x26c   : > { %v978_v42 = vsel %vm977_vm14, %v975_v41, -inf }
 0x26d   : > { %979 = vmax.xlane.f32.xlu2 %v978_v42 }
 0x271   : > { %v972_v43 = vpop.f32.mrf.mxu3 }
 0x272   : > { %v976_v44 = vmul.f32 0.17677669, %v972_v43 }
 0x274   : > { %v982_v45 = vsel %vm981_vm15, %v976_v44, -inf }
 0x275   : > { %983 = vmax.xlane.f32.xlu2 %v982_v45 }
 0x28d   : > { %1033 = vrot.lane.b32.xlu2 %v953_v27, %s3104_s22 }
 0x295   : > { %1175 = vrot.lane.b32.xlu2 %v953_v27, %s3106_s13 }
 0x29d   : > { %1173 = vrot.lane.b32.xlu2 %v950_v26, %s3106_s13 }
 0x2e0   : > { %v980_v46 = vpop.xlane.xlu2 %979 }
 0x2e1   : > { %v985_v47 = vsub.f32 %v975_v41, %v980_v46 }
 0x2e3   : > { %v987_v48 = vmul.f32 1.442695, %v985_v47 }
 0x2e5   : > { %2995 = vpow2.f32 %v987_v48 }
 0x2e8   : > { %v984_v49 = vpop.xlane.xlu2 %983 }
 0x2e9   : > { %v986_v50 = vsub.f32 %v976_v44, %v984_v49 }
 0x2eb   : > { %v2996_v51 = vpop.eup %2995  ;;  %v989_v52 = vmul.f32 1.442695, %v986_v50 }
 0x2ec   : > { %v991_v53 = vsel %vm977_vm14, %v2996_v51, 0.0 }
 0x2ed   : > { %2997 = vpow2.f32 %v989_v52  ;;  %992 = vadd.xlane.f32.xlu0 %v991_v53 }
 0x2f0   : > { %v1034_v54 = vpop.permute.xlu2 %1033 }
 0x2f1   : > { %v1039_v55 = vsel %vm954_vm11, %v1034_v54, 0 }
 0x2f2   : > { %1048 = vmatpush.bf16.xpose.msra.mxu3 %v1039_v55 }
 0x2f3   : > { %v2998_v56 = vpop.eup %2997 }
 0x2f4   : > { %v994_v57 = vsel %vm981_vm15, %v2998_v56, 0.0 }
 0x2f5   : > { %995 = vadd.xlane.f32.xlu1 %v994_v57 }
 0x2f8   : > { %v1176_v0 = vpop.permute.xlu2 %1175 }
 0x2f9   : > { %v1181_v2 = vsel %vm954_vm11, %v1176_v0, 0 }
 0x300   : > { %v1174_v7 = vpop.permute.xlu2 %1173 }
 0x301   : > { %1102 = vrot.lane.b32.xlu0 %v950_v26, %s3107_s27 }
 0x30e   : > { %1104 = vrot.lane.b32.xlu1 %v953_v27, %s3107_s27 }
 0x360   : > { %v993_v59 = vpop.xlane.xlu0 %992 }
 0x361   : > { %2999 = vrcp.f32 %v993_v59 }
 0x367   : > { %v3000_v61 = vpop.eup %2999 }
 0x368   : > { %v996_v60 = vpop.xlane.xlu1 %995  ;;  %v999_v63 = vmul.f32 %v3000_v61, %v2996_v51 }
 0x369   : > { %3001 = vrcp.f32 %v996_v60 }
 0x36f   : > { %v3002_v62 = vpop.eup %3001 }
 0x370   : > { %v1000_v20 = vmul.f32 %v3002_v62, %v2998_v56 }
 0x372   : > { %v1001_v1 = vpack.c.bf16 %v1000_v20, %v999_v63 }
 0x373   : > { %v1103_v6 = vpop.permute.xlu0 %1102 }
 0x374   : > { %2522 = vmatmul.msk.bf16.vlgmr.msrb.gmra.mxu3 %vm977_vm14, %v1001_v1 }
 0x375   : > { %1190 = vmatpush.bf16.xpose.msrb.mxu3 %v1181_v2 }
 0x380   : > { %v1105_v3 = vpop.permute.xlu1 %1104 }
 0x381   : > { %v1110_v4 = vsel %vm954_vm11, %v1105_v3, 0 }
 0x382   : > { %1119 = vmatpush.bf16.xpose.msrb.mxu2 %v1110_v4 }
 0x384   : > { %2523 = vmatmul.msk.bf16.vlgmr.msra.gmra.mxu3 %vm954_vm11, %v1032_v58 }
 0x389   : > { %2525 = vmatmul.msk.bf16.vlgmr.msrb.gmra.mxu2 %vm954_vm11, %v1103_v6 }
 0x394   : > { %2527 = vmatmul.msk.bf16.vlgmr.msrb.gmra.mxu3 %vm954_vm11, %v1174_v7 }
 0x3f7   : > { %v3398_v9 = vpop.f32.mrf.mxu3 }
 0x3ff   : > { %v3400_v22 = vpop.f32.mrf.mxu3 }
 0x407   : > { %v1050_v10 = vpop.f32.mrf.mxu3 }
 0x408   : > { %v1055_v11 = vmul.f32 0.17677669, %v1050_v10 }
 0x40a   : > { %v1057_v12 = vsel %vm977_vm14, %v1055_v11, -inf }
 0x40b   : > { %1058 = vmax.xlane.f32.xlu1 %v1057_v12 }
 0x40c   : > { %v1121_v13 = vpop.f32.mrf.mxu2 }
 0x40d   : > { %v1126_v14 = vmul.f32 0.17677669, %v1121_v13 }
 0x40f   : > { %v1052_v15 = vpop.f32.mrf.mxu3  ;;  %v1128_v17 = vsel %vm977_vm14, %v1126_v14, -inf }
 0x410   : > { %v1056_v18 = vmul.f32 0.17677669, %v1052_v15  ;;  %1129 = vmax.xlane.f32.xlu2 %v1128_v17 }
 0x412   : > { %v1060_v19 = vsel %vm981_vm15, %v1056_v18, -inf }
 0x413   : > { %1061 = vmax.xlane.f32.xlu0 %v1060_v19 }
 0x414   : > { %v1123_v21 = vpop.f32.mrf.mxu2 }
 0x415   : > { %v1127_v23 = vmul.f32 0.17677669, %v1123_v21 }
 0x417   : > { %v1192_v24 = vpop.f32.mrf.mxu3  ;;  %v1131_v25 = vsel %vm981_vm15, %v1127_v23, -inf }
 0x418   : > { %v1197_v26 = vmul.f32 0.17677669, %v1192_v24  ;;  %1132 = vmax.xlane.f32.xlu1 %v1131_v25 }
 0x41a   : > { %v1199_v27 = vsel %vm977_vm14, %v1197_v26, -inf }
 0x41b   : > { %1200 = vmax.xlane.f32.xlu0 %v1199_v27 }
 0x41f   : > { %v1194_v28 = vpop.f32.mrf.mxu3 }
 0x420   : > { %v1198_v29 = vmul.f32 0.17677669, %v1194_v28 }
 0x422   : > { %v1202_v30 = vsel %vm981_vm15, %v1198_v29, -inf }
 0x423   : > { %1203 = vmax.xlane.f32.xlu2 %v1202_v30  ;;  %v2855_v30 = vld [vmem:[%s3237_s18 + $0x38] sm:$0xff] }
 0x424   : > { %1341 = vmatpush.bf16.msrb.mxu1 %v2855_v30  ;;  %v2882_v30 = vld [vmem:[%s3261_s20 + $0xcc] sm:$0xf0] }
 0x43b   : > { %1080 = vrot.lane.b32.xlu2 %v3377_v38, %s3104_s22 }
 0x443   : > { %1222 = vrot.lane.b32.xlu2 %v3377_v38, %s3106_s13 }
 0x47e   : > { %v1059_v31 = vpop.xlane.xlu1 %1058 }
 0x47f   : > { %v1063_v34 = vsub.f32 %v1055_v11, %v1059_v31 }
 0x481   : > { %v1065_v39 = vmul.f32 1.442695, %v1063_v34 }
 0x483   : > { %v1130_v32 = vpop.xlane.xlu2 %1129 }
 0x484   : > { %v1134_v33 = vsub.f32 %v1126_v14, %v1130_v32 }
 0x486   : > { %v1136_v35 = vmul.f32 1.442695, %v1134_v33  ;;  %v1062_v36 = vpop.xlane.xlu0 %1061 }
 0x487   : > { %v1064_v43 = vsub.f32 %v1056_v18, %v1062_v36 }
 0x488   : > { %3003 = vpow2.f32 %v1136_v35 }
 0x489   : > { %3005 = vpow2.f32 %v1065_v39  ;;  %v1067_v46 = vmul.f32 1.442695, %v1064_v43  ;;  %v2852_v43 = vld [vmem:[%s3237_s18 + $0x20] sm:$0xff] }
 0x48b   : > { %v1133_v40 = vpop.xlane.xlu1 %1132 }
 0x48c   : > { %v1135_v41 = vsub.f32 %v1127_v23, %v1133_v40 }
 0x48e   : > { %v3004_v42 = vpop.eup %3003  ;;  %v1138_v44 = vmul.f32 1.442695, %v1135_v41  ;;  %v1201_v47 = vpop.xlane.xlu0 %1200  ;;  %v2854_v41 = vld [vmem:[%s3237_s18 + $0x30] sm:$0xff] }
 0x48f   : > { %v1140_v45 = vsel %vm977_vm14, %v3004_v42, 0.0  ;;  %v3006_v48 = vpop.eup %3005  ;;  %v1205_v50 = vsub.f32 %v1197_v26, %v1201_v47  ;;  %1342 = vmatpush.bf16.msrb.mxu1 %v2854_v41  ;;  %v2848_v47 = vld [vmem:[%s3237_s18] sm:$0xff] }
 0x490   : > { %3007 = vpow2.f32 %v1138_v44  ;;  %1141 = vadd.xlane.f32.xlu1 %v1140_v45  ;;  %v1069_v53 = vsel %vm977_vm14, %v3006_v48, 0.0  ;;  %v2851_v44 = vld [vmem:[%s3237_s18 + $0x18] sm:$0xff]  ;;  %v2850_v45 = vld [vmem:[%s3237_s18 + $0x10] sm:$0xff] }
 0x491   : > { %3009 = vpow2.f32 %v1067_v46  ;;  %v1207_v54 = vmul.f32 1.442695, %v1205_v50  ;;  %v2849_v46 = vld [vmem:[%s3237_s18 + $0x8] sm:$0xff] }
 0x493   : > { %3011 = vpow2.f32 %v1207_v54 }
 0x496   : > { %v3008_v49 = vpop.eup %3007  ;;  %v1204_v51 = vpop.xlane.xlu2 %1203 }
 0x497   : > { %v1143_v52 = vsel %vm981_vm15, %v3008_v49, 0.0  ;;  %v3010_v55 = vpop.eup %3009  ;;  %v1206_v56 = vsub.f32 %v1198_v29, %v1204_v51 }
 0x498   : > { %1144 = vadd.xlane.f32.xlu0 %v1143_v52  ;;  %1070 = vadd.xlane.f32.xlu1 %v1069_v53  ;;  %v1072_v59 = vsel %vm981_vm15, %v3010_v55, 0.0 }
 0x499   : > { %v1209_v60 = vmul.f32 1.442695, %v1206_v56  ;;  %v3012_v61 = vpop.eup %3011 }
 0x49a   : > { %v1211_v20 = vsel %vm977_vm14, %v3012_v61, 0.0 }
 0x49b   : > { %3013 = vpow2.f32 %v1209_v60 }
 0x49e   : > { %v1081_v57 = vpop.permute.xlu2 %1080 }
 0x49f   : > { %v1086_v58 = vand.u32 %v1081_v57, %v3375_v37 }
 0x4a0   : > { %1073 = vadd.xlane.f32.xlu0 %v1072_v59 }
 0x4a1   : > { %1095 = vmatpush.bf16.msrb.mxu0 %v1086_v58  ;;  %v3014_v0 = vpop.eup %3013 }
 0x4a2   : > { %v1214_v1 = vsel %vm981_vm15, %v3014_v0, 0.0 }
 0x4a6   : > { %v1223_v62 = vpop.permute.xlu2 %1222 }
 0x4a7   : > { %v1228_v63 = vand.u32 %v1223_v62, %v3375_v37 }
 0x4a8   : > { %1212 = vadd.xlane.f32.xlu0 %v1211_v20 }
 0x4a9   : > { %1237 = vmatpush.bf16.msra.mxu0 %v1228_v63 }
 0x4b0   : > { %1215 = vadd.xlane.f32.xlu0 %v1214_v1 }
 0x4b1   : > { %1151 = vrot.lane.b32.xlu1 %v3377_v38, %s3107_s27 }
 0x503   : > { %v1142_v2 = vpop.xlane.xlu1 %1141 }
 0x50b   : > { %v1145_v3 = vpop.xlane.xlu0 %1144  ;;  %v1071_v4 = vpop.xlane.xlu1 %1070 }
 0x50c   : > { %3015 = vrcp.f32 %v1071_v4 }
 0x512   : > { %v3016_v7 = vpop.eup %3015 }
 0x513   : > { %v1074_v6 = vpop.xlane.xlu0 %1073  ;;  %v1077_v11 = vmul.f32 %v3016_v7, %v3006_v48 }
 0x514   : > { %3017 = vrcp.f32 %v1074_v6 }
 0x515   : > { %3019 = vrcp.f32 %v1145_v3 }
 0x516   : > { %3021 = vrcp.f32 %v1142_v2 }
 0x51a   : > { %v3018_v10 = vpop.eup %3017 }
 0x51b   : > { %v1078_v12 = vmul.f32 %v3018_v10, %v3010_v55  ;;  %v1213_v13 = vpop.xlane.xlu0 %1212  ;;  %v3020_v15 = vpop.eup %3019 }
 0x51c   : > { %v3022_v17 = vpop.eup %3021  ;;  %3023 = vrcp.f32 %v1213_v13  ;;  %v1149_v38 = vmul.f32 %v3020_v15, %v3008_v49  ;;  %v2675_v15 = vld [vmem:[%s3261_s20 + $0xe0] sm:$0xf] }
 0x51d   : > { %v1079_v14 = vpack.c.bf16 %v1078_v12, %v1077_v11  ;;  %v1148_v23 = vmul.f32 %v3022_v17, %v3004_v42  ;;  %v2853_v42 = vld [vmem:[%s3237_s18 + $0x28] sm:$0xff]  ;;  %v2886_v17 = vld [vmem:[%s3261_s20 + $0xec] sm:$0xf0] }
 0x51e   : > { %1343 = vmatpush.bf16.msrb.mxu1 %v2853_v42  ;;  %v2643_v42 = vld [vmem:[%s3261_s20 + $0xa0] sm:$0xf] }
 0x51f   : > { %2524 = vmatmul.msk.bf16.vlgmr.msrb.gmra.mxu0 %vm977_vm14, %v1079_v14  ;;  %v1150_v24 = vpack.c.bf16 %v1149_v38, %v1148_v23  ;;  %v2884_v38 = vld [vmem:[%s3261_s20 + $0xe4] sm:$0xf]  ;;  %v2887_v23 = vld [vmem:[%s3261_s20 + $0xf4] sm:$0xf0] }
 0x522   : > { %v3024_v25 = vpop.eup %3023  ;;  %1344 = vmatpush.bf16.msrb.mxu1 %v2852_v43  ;;  %v2878_v43 = vld [vmem:[%s3261_s20 + $0xac] sm:$0xf0] }
 0x523   : > { %v1152_v18 = vpop.permute.xlu1 %1151  ;;  %v1216_v19 = vpop.xlane.xlu0 %1215  ;;  %v1219_v27 = vmul.f32 %v3024_v25, %v3012_v61 }
 0x524   : > { %v1157_v21 = vand.u32 %v1152_v18, %v3375_v37  ;;  %3025 = vrcp.f32 %v1216_v19  ;;  %v2676_v18 = vor.u32 %v2886_v17, %v2675_v15  ;;  %v2677_v19 = vld [vmem:[%s3261_s20 + $0xf0] sm:$0xf0]  ;;  %v2595_v17 = vld [vmem:[%s3261_s20 + $0x40] sm:$0xf] }
 0x526   : > { %1166 = vmatpush.bf16.msra.mxu2 %v1157_v21  ;;  %1345 = vmatpush.bf16.msrb.mxu1 %v2851_v44  ;;  %v2683_v21 = vld [vmem:[%s3261_s20 + $0xe8] sm:$0xf]  ;;  %v2876_v44 = vld [vmem:[%s3261_s20 + $0xa4] sm:$0xf] }
 0x527   : > { %v2684_v25 = vor.u32 %v2887_v23, %v2683_v21  ;;  %v2597_v21 = vld [vmem:[%s3261_s20 + $0x50] sm:$0xf0]  ;;  %v2603_v23 = vld [vmem:[%s3261_s20 + $0x48] sm:$0xf] }
 0x529   : > { %2526 = vmatmul.msk.bf16.vlgmr.msra.gmra.mxu2 %vm977_vm14, %v1150_v24  ;;  %v2680_v24 = vor.u32 %v2884_v38, %v2677_v19  ;;  %1648 = vmatpush.bf16.msrb.mxu0 %v2684_v25  ;;  %v2866_v38 = vld [vmem:[%s3261_s20 + $0x4c] sm:$0xf0] }
 0x52a   : > { %v3026_v26 = vpop.eup %3025  ;;  %1346 = vmatpush.bf16.msrb.mxu1 %v2850_v45  ;;  %1620 = vmatpush.bf16.msrb.mxu2 %v2676_v18  ;;  %v2644_v45 = vor.u32 %v2878_v43, %v2643_v42  ;;  %v2864_v18 = vld [vmem:[%s3261_s20 + $0x44] sm:$0xf]  ;;  %v2596_v19 = vor.u32 %v2866_v38, %v2595_v17  ;;  %v2861_v42 = vld [vmem:[%s3261_s20 + $0x2c] sm:$0xf]  ;;  %v2589_v43 = vld [vmem:[%s3261_s20 + $0x38] sm:$0xf0] }
 0x52b   : > { %v1220_v28 = vmul.f32 %v3026_v26, %v3014_v0  ;;  %v2885_v26 = vld [vmem:[%s3261_s20 + $0xec] sm:$0xf]  ;;  %1634 = vmatpush.bf16.msra.mxu3 %v2680_v24  ;;  %v2867_v24 = vld [vmem:[%s3261_s20 + $0x54] sm:$0xf0]  ;;  %v2600_v25 = vor.u32 %v2864_v18, %v2597_v21  ;;  %v2987_v17 = vld [vmem:[%s3817_s3] ss:$0 sm:$0xff] }
 0x52c   : > { %v3547_v21 = vld [vmem:[%s3266_s23] sm:$0xf] }
 0x52d   : > { %v1221_v29 = vpack.c.bf16 %v1220_v28, %v1219_v27  ;;  %v2685_v27 = vld [vmem:[%s3261_s20 + $0xf8] sm:$0xf0] }
 0x52e   : > { %1347 = vmatpush.bf16.msrb.mxu1 %v2849_v46  ;;  %v2688_v28 = vor.u32 %v2885_v26, %v2685_v27  ;;  %v2645_v46 = vld [vmem:[%s3261_s20 + $0xb0] sm:$0xf0]  ;;  %v2604_v26 = vor.u32 %v2867_v24, %v2603_v23  ;;  %v2865_v27 = vld [vmem:[%s3261_s20 + $0x4c] sm:$0xf]  ;;  %v1454_v23 = vperm.slane %v3547_v21, 2 }
 0x52f   : > { %2528 = vmatmul.msk.bf16.vlgmr.msra.gmra.mxu0 %vm977_vm14, %v1221_v29  ;;  %v2659_v29 = vld [vmem:[%s3261_s20 + $0xc0] sm:$0xf] }
 0x532   : > { %1348 = vmatpush.bf16.msrb.mxu1 %v2848_v47  ;;  %v2651_v47 = vld [vmem:[%s3261_s20 + $0xa8] sm:$0xf] }
 0x536   : > { %1662 = vmatpush.bf16.msra.mxu1 %v2688_v28  ;;  %v2605_v28 = vld [vmem:[%s3261_s20 + $0x58] sm:$0xf0] }
 0x59c   : > { %v1097_v31 = vpop.f32.mrf.mxu0 }
 0x5a4   : > { %v1099_v37 = vpop.f32.mrf.mxu0 }
 0x5a5   : > { %v2968_v32 = vpack.i.bf16 %v1099_v37, %v1097_v31  ;;  %v2880_v31 = vld [vmem:[%s3261_s20 + $0xc4] sm:$0xf]  ;;  %v2660_v37 = vor.u32 %v2882_v30, %v2659_v29  ;;  %v2608_v29 = vor.u32 %v2865_v27, %v2605_v28  ;;  %v1452_v28 = vperm.slane %v3547_v21, 0 }
 0x5a7   : > { %2969 = vrot.lane.b32.xlu0 %v2968_v32, %s3106_s13  ;;  %v2661_v32 = vld [vmem:[%s3261_s20 + $0xd0] sm:$0xf0]  ;;  %1621 = vmatpush.bf16.msrb.mxu2 %v2660_v37  ;;  %v2862_v37 = vld [vmem:[%s3261_s20 + $0x2c] sm:$0xf0] }
 0x5ab   : > { %1622 = vmatpush.bf16.msrb.mxu2 %v2644_v45 }
 0x5ac   : > { %v1168_v33 = vpop.f32.mrf.mxu2  ;;  %v1239_v34 = vpop.f32.mrf.mxu0 }
 0x5b4   : > { %v1170_v35 = vpop.f32.mrf.mxu2  ;;  %v1241_v36 = vpop.f32.mrf.mxu0 }
 0x5b5   : > { %v2973_v39 = vpack.i.bf16 %v1170_v35, %v1168_v33  ;;  %v2978_v40 = vpack.i.bf16 %v1241_v36, %v1239_v34  ;;  %v2667_v33 = vld [vmem:[%s3261_s20 + $0xc8] sm:$0xf]  ;;  %v2883_v34 = vld [vmem:[%s3261_s20 + $0xd4] sm:$0xf0]  ;;  %v2664_v35 = vor.u32 %v2880_v31, %v2661_v32  ;;  %v2579_v31 = vld [vmem:[%s3261_s20 + $0x20] sm:$0xf] }
 0x5b6   : > { %v2668_v36 = vor.u32 %v2883_v34, %v2667_v33  ;;  %v2860_v32 = vld [vmem:[%s3261_s20 + $0x24] sm:$0xf]  ;;  %v2580_v34 = vor.u32 %v2862_v37, %v2579_v31 }
 0x5b7   : > { %2974 = vrot.lane.b32.xlu2 %v2973_v39, %s3107_s27  ;;  %2979 = vrot.lane.b32.xlu1 %v2978_v40, %s3104_s22  ;;  %v2881_v39 = vld [vmem:[%s3261_s20 + $0xcc] sm:$0xf]  ;;  %v2669_v40 = vld [vmem:[%s3261_s20 + $0xd8] sm:$0xf0] }
 0x5b8   : > { %v2672_v41 = vor.u32 %v2881_v39, %v2669_v40  ;;  %1635 = vmatpush.bf16.msra.mxu3 %v2664_v35  ;;  %1649 = vmatpush.bf16.msrb.mxu0 %v2668_v36  ;;  %v2581_v35 = vld [vmem:[%s3261_s20 + $0x30] sm:$0xf0]  ;;  %v2587_v36 = vld [vmem:[%s3261_s20 + $0x28] sm:$0xf]  ;;  %v2863_v39 = vld [vmem:[%s3261_s20 + $0x34] sm:$0xf0] }
 0x5b9   : > { %v2584_v40 = vor.u32 %v2860_v32, %v2581_v35 }
 0x5ba   : > { %1663 = vmatpush.bf16.msra.mxu1 %v2672_v41  ;;  %v2588_v41 = vor.u32 %v2863_v39, %v2587_v36 }
 0x611   : > { %v2975_v51 = vpop.permute.xlu2 %2974 }
 0x612   : > { %v2977_v54 = vunpack.i.h.bf16 %v2975_v51  ;;  %v2976_v55 = vunpack.i.l.bf16 %v2975_v51  ;;  %v2877_v51 = vld [vmem:[%s3261_s20 + $0xac] sm:$0xf] }
 0x619   : > { %v2970_v48 = vpop.permute.xlu0 %2969 }
 0x61a   : > { %v2972_v49 = vunpack.i.h.bf16 %v2970_v48  ;;  %v2971_v50 = vunpack.i.l.bf16 %v2970_v48  ;;  %v2879_v48 = vld [vmem:[%s3261_s20 + $0xb4] sm:$0xf0] }
 0x61c   : > { %v1269_v52 = vsel %vm954_vm11, %v3400_v22, %v2972_v49  ;;  %v1268_v53 = vsel %vm954_vm11, %v3398_v9, %v2971_v50  ;;  %v2985_v22 = vld [vmem:[%s3815_s21] ss:$0 sm:$0xff]  ;;  %v2648_v49 = vor.u32 %v2876_v44, %v2645_v46  ;;  %v2652_v50 = vor.u32 %v2879_v48, %v2651_v47  ;;  %v2858_v47 = vld [vmem:[%s3261_s20 + $0xc] sm:$0xf0]  ;;  %v2856_v48 = vld [vmem:[%s3261_s20 + $0x4] sm:$0xf] }
 0x61d   : > { %v1271_v59 = vsel %vm1270_vm0, %v1268_v53, %v2976_v55  ;;  %v1272_v60 = vsel %vm1270_vm0, %v1269_v52, %v2977_v54  ;;  %v2653_v52 = vld [vmem:[%s3261_s20 + $0xb8] sm:$0xf0]  ;;  %v2627_v54 = vld [vmem:[%s3261_s20 + $0x80] sm:$0xf]  ;;  %v2874_v55 = vld [vmem:[%s3261_s20 + $0x8c] sm:$0xf0]  ;;  %v2592_v46 = vor.u32 %v2861_v42, %v2589_v43 }
 0x61e   : > { %v2656_v53 = vor.u32 %v2877_v51, %v2653_v52  ;;  %1636 = vmatpush.bf16.msra.mxu3 %v2648_v49  ;;  %1650 = vmatpush.bf16.msrb.mxu0 %v2652_v50  ;;  %v2563_v44 = vld [vmem:[%s3261_s20] sm:$0xf]  ;;  %v2565_v50 = vld [vmem:[%s3261_s20 + $0x10] sm:$0xf0]  ;;  %v2571_v51 = vld [vmem:[%s3261_s20 + $0x8] sm:$0xf] }
 0x61f   : > { %v2564_v49 = vor.u32 %v2858_v47, %v2563_v44  ;;  %v2859_v52 = vld [vmem:[%s3261_s20 + $0x14] sm:$0xf0] }
 0x620   : > { %1664 = vmatpush.bf16.msra.mxu1 %v2656_v53  ;;  %v2568_v53 = vor.u32 %v2856_v48, %v2565_v50 }
 0x629   : > { %v2980_v56 = vpop.permute.xlu1 %2979 }
 0x62a   : > { %v2982_v57 = vunpack.i.h.bf16 %v2980_v56  ;;  %v2981_v58 = vunpack.i.l.bf16 %v2980_v56  ;;  %v2872_v56 = vld [vmem:[%s3261_s20 + $0x84] sm:$0xf] }
 0x62c   : > { %v1274_v61 = vsel %vm1273_vm1, %v1271_v59, %v2981_v58  ;;  %v1275_v62 = vsel %vm1273_vm1, %v1272_v60, %v2982_v57  ;;  %v2628_v57 = vor.u32 %v2874_v55, %v2627_v54  ;;  %v2629_v58 = vld [vmem:[%s3261_s20 + $0x90] sm:$0xf0]  ;;  %v2635_v59 = vld [vmem:[%s3261_s20 + $0x88] sm:$0xf]  ;;  %v2875_v60 = vld [vmem:[%s3261_s20 + $0x94] sm:$0xf0]  ;;  %v2572_v54 = vor.u32 %v2859_v52, %v2571_v51 }
 0x62d   : > { %v1276_v63 = vpack.c.bf16 %v1275_v62, %v1274_v61  ;;  %v2632_v61 = vor.u32 %v2872_v56, %v2629_v58  ;;  %v2636_v62 = vor.u32 %v2875_v60, %v2635_v59  ;;  %v2857_v55 = vld [vmem:[%s3261_s20 + $0xc] sm:$0xf]  ;;  %v2573_v56 = vld [vmem:[%s3261_s20 + $0x18] sm:$0xf0]  ;;  %vm2210_vm1 = vsmask.f32 256 }
 0x62e   : > { %1623 = vmatpush.bf16.msrb.mxu2 %v2628_v57  ;;  %v2576_v57 = vor.u32 %v2857_v55, %v2573_v56 }
 0x62f   : > { %1349 = vmatmul.bf16.vlgmr.msrb.gmra.mxu1 %v1276_v63  ;;  %v2873_v63 = vld [vmem:[%s3261_s20 + $0x8c] sm:$0xf]  ;;  %1637 = vmatpush.bf16.msra.mxu3 %v2632_v61 }
 0x630   : > { %1651 = vmatpush.bf16.msrb.mxu0 %v2636_v62 }
 0x6ac   : > { %v1350_v20 = vpop.f32.mrf.mxu1 }
 0x6ad   : > { %v1355_v9 = vadd.f32 %v1350_v20, %v3292_v8 }
 0x6af   : > { %v3447_v0 = vadd.f32 %v2985_v22, %v1355_v9  ;;  %v2611_v9 = vld [vmem:[%s3261_s20 + $0x60] sm:$0xf] }
 0x6b1   : > { %1365 = vadd.xlane.f32.xlu1 %v3447_v0 }
 0x6b4   : > { %v1352_v1 = vpop.f32.mrf.mxu1 }
 0x6b5   : > { %v1356_v2 = vadd.f32 %v1352_v1, %v3287_v5  ;;  %v2870_v1 = vld [vmem:[%s3261_s20 + $0x6c] sm:$0xf0] }
 0x6b7   : > { %v3451_v3 = vadd.f32 %v2985_v22, %v1356_v2  ;;  %v2637_v22 = vld [vmem:[%s3261_s20 + $0x98] sm:$0xf0]  ;;  %v2868_v2 = vld [vmem:[%s3261_s20 + $0x64] sm:$0xf] }
 0x6b8   : > { %v2640_v20 = vor.u32 %v2873_v63, %v2637_v22 }
 0x6b9   : > { %v1367_v4 = vsel %vm673_vm3, %v3451_v3, 0.0 }
 0x6ba   : > { %1368 = vadd.xlane.f32.xlu2 %v1367_v4  ;;  %1665 = vmatpush.bf16.msra.mxu1 %v2640_v20  ;;  %v2612_v4 = vor.u32 %v2870_v1, %v2611_v9 }
 0x6bc   : > { %1624 = vmatpush.bf16.msrb.mxu2 %v2612_v4 }
 0x6c0   : > { %1625 = vmatpush.bf16.msrb.mxu2 %v2596_v19 }
 0x6c4   : > { %1626 = vmatpush.bf16.msrb.mxu2 %v2580_v34 }
 0x6c8   : > { %1627 = vmatpush.bf16.msrb.mxu2 %v2564_v49 }
 0x724   : > { %v1366_v6 = vpop.xlane.xlu1 %1365 }
 0x725   : > { %v1370_v8 = vmul.f32 %v1366_v6, %v3295_v16  ;;  %v2613_v6 = vld [vmem:[%s3261_s20 + $0x70] sm:$0xf0] }
 0x727   : > { %v3457_v7 = vsub.f32 %v3447_v0, %v1370_v8  ;;  %v2619_v8 = vld [vmem:[%s3261_s20 + $0x68] sm:$0xf] }
 0x729   : > { %v1374_v5 = vmul.f32 %v3457_v7, %v3457_v7 }
 0x72b   : > { %1376 = vadd.xlane.f32.xlu0 %v1374_v5  ;;  %v2871_v5 = vld [vmem:[%s3261_s20 + $0x74] sm:$0xf0] }
 0x72d   : > { %v1369_v10 = vpop.xlane.xlu2 %1368 }
 0x72e   : > { %v1371_v11 = vmul.f32 %v1369_v10, %v3295_v16  ;;  %v2616_v10 = vor.u32 %v2868_v2, %v2613_v6 }
 0x730   : > { %v3463_v12 = vsub.f32 %v3451_v3, %v1371_v11  ;;  %v2620_v11 = vor.u32 %v2871_v5, %v2619_v8  ;;  %1638 = vmatpush.bf16.msra.mxu3 %v2616_v10  ;;  %v2986_v10 = vld [vmem:[%s3816_s2] ss:$0 sm:$0xff] }
 0x732   : > { %v1375_v13 = vmul.f32 %v3463_v12, %v3463_v12  ;;  %1652 = vmatpush.bf16.msrb.mxu0 %v2620_v11 }
 0x734   : > { %v1378_v14 = vsel %vm673_vm3, %v1375_v13, 0.0  ;;  %v2869_v13 = vld [vmem:[%s3261_s20 + $0x6c] sm:$0xf]  ;;  %1639 = vmatpush.bf16.msra.mxu3 %v2600_v25 }
 0x735   : > { %1379 = vadd.xlane.f32.xlu2 %v1378_v14  ;;  %v2621_v14 = vld [vmem:[%s3261_s20 + $0x78] sm:$0xf0] }
 0x736   : > { %v2624_v15 = vor.u32 %v2869_v13, %v2621_v14  ;;  %1653 = vmatpush.bf16.msrb.mxu0 %v2604_v26 }
 0x738   : > { %1666 = vmatpush.bf16.msra.mxu1 %v2624_v15  ;;  %1640 = vmatpush.bf16.msra.mxu3 %v2584_v40 }
 0x73a   : > { %1654 = vmatpush.bf16.msrb.mxu0 %v2588_v41 }
 0x73c   : > { %1667 = vmatpush.bf16.msra.mxu1 %v2608_v29  ;;  %1641 = vmatpush.bf16.msra.mxu3 %v2568_v53  ;;  %v1453_v29 = vperm.slane %v3547_v21, 1 }
 0x73e   : > { %1655 = vmatpush.bf16.msrb.mxu0 %v2572_v54 }
 0x740   : > { %1668 = vmatpush.bf16.msra.mxu1 %v2592_v46 }
 0x744   : > { %1669 = vmatpush.bf16.msra.mxu1 %v2576_v57  ;;  %v2911_v57 = vld [vmem:[%s3271_s0 + $0xb8] sm:$0xff] }
 0x745   : > { %2176 = vmatpush.bf16.msra.mxu0 %v2911_v57 }
 0x79e   : > { %v1377_v30 = vpop.xlane.xlu0 %1376 }
 0x79f   : > { %v1381_v33 = vmul.f32 %v1377_v30, %v3295_v16 }
 0x7a1   : > { %v1383_v45 = vadd.f32 1e-06, %v1381_v33 }
 0x7a3   : > { %3027 = vrsqrt.f32 %v1383_v45  ;;  %vm1391_vm4 = vweird.f32 %v1383_v45 }
 0x7a8   : > { %v1380_v58 = vpop.xlane.xlu2 %1379 }
 0x7a9   : > { %v3028_v59 = vpop.eup %3027  ;;  %v1382_v60 = vmul.f32 %v1380_v58, %v3295_v16 }
 0x7aa   : > { %v1386_v61 = vmul.f32 %v3028_v59, %v1383_v45  ;;  %vm1392_vm2 = vweird.f32 %v3028_v59 }
 0x7ab   : > { %v1384_v62 = vadd.f32 1e-06, %v1382_v60  ;;  %vm1393_vm5 = vmor %vm1391_vm4, %vm1392_vm2  ;;  %v2919_v60 = vld [vmem:[%s3271_s0 + $0xf8] sm:$0xff] }
 0x7ac   : > { %v1387_v63 = vmul.f32 %v3028_v59, %v1386_v61  ;;  %2190 = vmatpush.bf16.msrb.mxu1 %v2919_v60  ;;  %vm2211_vm2 = vmand %vm673_vm3, %vm2210_vm1 }
 0x7ad   : > { %3029 = vrsqrt.f32 %v1384_v62  ;;  %vm1401_vm7 = vweird.f32 %v1384_v62 }
 0x7ae   : > { %v1388_v22 = vmul.f32 0.5, %v1387_v63 }
 0x7b0   : > { %v1389_v20 = vsub.f32 1.5, %v1388_v22 }
 0x7b2   : > { %v1390_v1 = vmul.f32 %v3028_v59, %v1389_v20 }
 0x7b3   : > { %v3030_v9 = vpop.eup %3029 }
 0x7b4   : > { %v1396_v2 = vmul.f32 %v3030_v9, %v1384_v62  ;;  %v1394_v6 = vsel %vm1393_vm5, %v3028_v59, %v1390_v1  ;;  %vm1402_vm6 = vweird.f32 %v3030_v9 }
 0x7b5   : > { %v1405_v16 = vmul.f32 %v1394_v6, %v3457_v7  ;;  %vm1403_vm8 = vmor %vm1401_vm7, %vm1402_vm6  ;;  %v2910_v6 = vld [vmem:[%s3271_s0 + $0xb0] sm:$0xff] }
 0x7b6   : > { %v1397_v4 = vmul.f32 %v3030_v9, %v1396_v2  ;;  %2177 = vmatpush.bf16.msra.mxu0 %v2910_v6 }
 0x7b7   : > { %v1410_v15 = vmul.f32 %v2986_v10, %v1405_v16 }
 0x7b8   : > { %v1398_v8 = vmul.f32 0.5, %v1397_v4 }
 0x7b9   : > { %v1415_v7 = vadd.f32 %v2987_v17, %v1410_v15 }
 0x7ba   : > { %v1399_v5 = vsub.f32 1.5, %v1398_v8 }
 0x7bc   : > { %v1400_v11 = vmul.f32 %v3030_v9, %v1399_v5 }
 0x7be   : > { %v1404_v13 = vsel %vm1403_vm8, %v3030_v9, %v1400_v11  ;;  %v2918_v11 = vld [vmem:[%s3271_s0 + $0xf0] sm:$0xff] }
 0x7bf   : > { %v1406_v14 = vmul.f32 %v1404_v13, %v3463_v12  ;;  %v1455_v12 = vperm.slane %v3547_v21, 3  ;;  %2191 = vmatpush.bf16.msrb.mxu1 %v2918_v11  ;;  %v2893_v11 = vld [vmem:[%s3271_s0 + $0x28] sm:$0xff] }
 0x7c1   : > { %v1411_v38 = vmul.f32 %v2986_v10, %v1406_v14 }
 0x7c3   : > { %v1416_v18 = vadd.f32 %v2987_v17, %v1411_v38 }
 0x7c5   : > { %v1417_v19 = vpack.c.bf16 %v1416_v18, %v1415_v7  ;;  %v2895_v7 = vld [vmem:[%s3271_s0 + $0x38] sm:$0xff] }
 0x7c6   : > { %v2903_v18 = vld [vmem:[%s3271_s0 + $0x78] sm:$0xff]  ;;  %2148 = vmatpush.bf16.msra.mxu2 %v2895_v7  ;;  %v2901_v7 = vld [vmem:[%s3271_s0 + $0x68] sm:$0xff] }
 0x7c7   : > { %1628 = vmatmul.bf16.vlgmr.msrb.gmra.mxu2 %v1417_v19  ;;  %1642 = vmatmul.bf16.vlgmr.msra.gmra.mxu3 %v1417_v19 }
 0x7c8   : > { %1656 = vmatmul.bf16.vlgmr.msrb.gmra.mxu0 %v1417_v19  ;;  %1670 = vmatmul.bf16.vlgmr.msra.gmra.mxu1 %v1417_v19 }
 0x7c9   : > { %2162 = vmatpush.bf16.msrb.mxu3 %v2903_v18 }
 0x845   : > { %v1657_v24 = vpop.f32.mrf.mxu0  ;;  %v1671_v25 = vpop.f32.mrf.mxu1 }
 0x846   : > { %v1658_v26 = vadd.f32 %v1657_v24, %v1454_v23  ;;  %v1672_v27 = vadd.f32 %v1671_v25, %v1455_v12 }
 0x848   : > { %v3553_v30 = vmul.f32 0.70710677, %v1658_v26  ;;  %v3555_v31 = vmul.f32 0.70710677, %v1672_v27  ;;  %v3605_v8 = vmul.f32 0.5, %v1658_v26 }
 0x84a   : > { %v1710_v37 = vand.u32 2147483647, %v3553_v30  ;;  %v1711_v32 = vand.u32 2147483647, %v3555_v31  ;;  %v1629_v33 = vpop.f32.mrf.mxu2  ;;  %v1643_v34 = vpop.f32.mrf.mxu3  ;;  %vm1694_vm9 = vcmp.ge.f32.partialorder %v3553_v30, 0.0  ;;  %vm1695_vm10 = vcmp.ge.f32.partialorder %v3555_v31, 0.0 }
 0x84b   : > { %v3559_v35 = vadd.f32 %v1629_v33, %v1452_v28  ;;  %v3563_v36 = vadd.f32 %v1643_v34, %v1453_v29 }
 0x84c   : > { %v1718_v39 = vmul.f32 0.3275911, %v1710_v37  ;;  %v1719_v40 = vmul.f32 0.3275911, %v1711_v32  ;;  %v1814_v63 = vsub.f32 0.0, %v1710_v37  ;;  %v1815_v22 = vsub.f32 0.0, %v1711_v32 }
 0x84d   : > { %v3566_v41 = vmul.f32 0.70710677, %v3559_v35  ;;  %v3569_v42 = vmul.f32 0.70710677, %v3563_v36  ;;  %v1659_v47 = vpop.f32.mrf.mxu0  ;;  %v1673_v48 = vpop.f32.mrf.mxu1 }
 0x84e   : > { %v1726_v43 = vadd.f32 1.0, %v1718_v39  ;;  %v1727_v44 = vadd.f32 1.0, %v1719_v40  ;;  %v3579_v51 = vadd.f32 %v1659_v47, %v1454_v23  ;;  %v3581_v53 = vadd.f32 %v1673_v48, %v1455_v12 }
 0x84f   : > { %v3572_v45 = vand.u32 2147483647, %v3566_v41  ;;  %v3575_v46 = vand.u32 2147483647, %v3569_v42  ;;  %v1822_v15 = vmul.f32 %v1814_v63, %v1710_v37  ;;  %v1823_v17 = vmul.f32 %v1815_v22, %v1711_v32  ;;  %v2909_v37 = vld [vmem:[%s3271_s0 + $0xa8] sm:$0xff]  ;;  %v2916_v63 = vld [vmem:[%s3271_s0 + $0xe0] sm:$0xff] }
 0x850   : > { %3031 = vrcp.f32 %v1726_v43  ;;  %v3584_v55 = vmul.f32 0.70710677, %v3579_v51  ;;  %v3587_v56 = vmul.f32 0.70710677, %v3581_v53  ;;  %v3618_v23 = vmul.f32 0.5, %v1672_v27  ;;  %2178 = vmatpush.bf16.msra.mxu0 %v2909_v37  ;;  %v2917_v43 = vld [vmem:[%s3271_s0 + $0xe8] sm:$0xff] }
 0x851   : > { %3033 = vrcp.f32 %v1727_v44  ;;  %v1716_v49 = vmul.f32 0.3275911, %v3572_v45  ;;  %v1717_v50 = vmul.f32 0.3275911, %v3575_v46  ;;  %v1832_v39 = vmul.f32 1.442695, %v1822_v15  ;;  %2192 = vmatpush.bf16.msrb.mxu1 %v2917_v43 }
 0x852   : > { %v3593_v59 = vand.u32 2147483647, %v3584_v55  ;;  %v1631_v20 = vpop.f32.mrf.mxu2  ;;  %v3602_v4 = vand.u32 2147483647, %v3587_v56  ;;  %v1834_v40 = vmul.f32 1.442695, %v1823_v17  ;;  %v1645_v60 = vpop.f32.mrf.mxu3 }
 0x853   : > { %v1724_v52 = vadd.f32 1.0, %v1716_v49  ;;  %v1725_v54 = vadd.f32 1.0, %v1717_v50  ;;  %v3607_v10 = vadd.f32 %v1631_v20, %v1452_v28  ;;  %v2894_v44 = vld [vmem:[%s3271_s0 + $0x30] sm:$0xff]  ;;  %v1812_v6 = vsub.f32 0.0, %v3572_v45  ;;  %v2900_v43 = vld [vmem:[%s3271_s0 + $0x60] sm:$0xff] }
 0x854   : > { %v1722_v1 = vmul.f32 0.3275911, %v3593_v59  ;;  %v1723_v38 = vmul.f32 0.3275911, %v3602_v4  ;;  %v1818_v49 = vsub.f32 0.0, %v3593_v59  ;;  %2149 = vmatpush.bf16.msra.mxu2 %v2894_v44  ;;  %vm1692_vm11 = vcmp.ge.f32.partialorder %v3566_v41, 0.0 }
 0x855   : > { %3035 = vrcp.f32 %v1724_v52  ;;  %v3626_v33 = vmul.f32 0.70710677, %v3607_v10  ;;  %v2902_v52 = vld [vmem:[%s3271_s0 + $0x70] sm:$0xff]  ;;  %2193 = vmatpush.bf16.msrb.mxu1 %v2916_v63  ;;  %vm1698_vm12 = vcmp.ge.f32.partialorder %v3584_v55, 0.0  ;;  %vm1699_vm13 = vcmp.ge.f32.partialorder %v3587_v56, 0.0 }
 0x856   : > { %v3590_v58 = vpop.eup %3031  ;;  %3037 = vrcp.f32 %v1725_v54  ;;  %v1730_v16 = vadd.f32 1.0, %v1722_v1  ;;  %v1731_v28 = vadd.f32 1.0, %v1723_v38  ;;  %2163 = vmatpush.bf16.msrb.mxu3 %v2902_v52  ;;  %v3652_v38 = vadd.f32 %v1645_v60, %v1453_v29  ;;  %v2906_v52 = vld [vmem:[%s3271_s0 + $0x90] sm:$0xff] }
 0x857   : > { %v3596_v61 = vpop.eup %3033  ;;  %v1742_v62 = vmul.f32 1.0614054, %v3590_v58  ;;  %v3635_v50 = vand.u32 2147483647, %v3626_v33  ;;  %v1826_v37 = vmul.f32 %v1818_v49, %v3593_v59  ;;  %v1813_v60 = vsub.f32 0.0, %v3575_v46 }
 0x858   : > { %v1743_v9 = vmul.f32 1.0614054, %v3596_v61  ;;  %3039 = vrcp.f32 %v1730_v16  ;;  %v1819_v16 = vsub.f32 0.0, %v3602_v4  ;;  %2150 = vmatpush.bf16.msra.mxu2 %v2893_v11  ;;  %v3668_v59 = vmul.f32 0.70710677, %v3652_v38 }
 0x859   : > { %v1750_v2 = vadd.f32 -1.4531521, %v1742_v62  ;;  %3041 = vrcp.f32 %v1731_v28  ;;  %v2908_v62 = vld [vmem:[%s3271_s0 + $0xa0] sm:$0xff]  ;;  %v1720_v1 = vmul.f32 0.3275911, %v3635_v50  ;;  %v1816_v11 = vsub.f32 0.0, %v3635_v50 }
 0x85a   : > { %v1751_v5 = vadd.f32 -1.4531521, %v1743_v9  ;;  %2179 = vmatpush.bf16.msra.mxu0 %v2908_v62  ;;  %3043 = vpow2.f32 %v1832_v39  ;;  %2164 = vmatpush.bf16.msrb.mxu3 %v2901_v7  ;;  %v2892_v39 = vld [vmem:[%s3271_s0 + $0x20] sm:$0xff]  ;;  %v1840_v30 = vmul.f32 1.442695, %v1826_v37  ;;  %vm1696_vm14 = vcmp.ge.f32.partialorder %v3626_v33, 0.0 }
 0x85b   : > { %v3610_v13 = vpop.eup %3035  ;;  %v1758_v14 = vmul.f32 %v3590_v58, %v1750_v2  ;;  %v1728_v17 = vadd.f32 1.0, %v1720_v1  ;;  %v2891_v1 = vld [vmem:[%s3271_s0 + $0x18] sm:$0xff]  ;;  %v1676_v33 = vmul.f32 0.5, %v3559_v35  ;;  %vm1693_vm15 = vcmp.ge.f32.partialorder %v3569_v42, 0.0 }
 0x85c   : > { %v3616_v19 = vpop.eup %3037  ;;  %v1759_v12 = vmul.f32 %v3596_v61, %v1751_v5  ;;  %v1740_v24 = vmul.f32 1.0614054, %v3610_v13  ;;  %2151 = vmatpush.bf16.msra.mxu2 %v2892_v39  ;;  %vm1697_vm0 = vcmp.ge.f32.partialorder %v3668_v59, 0.0 }
 0x85d   : > { %v1766_v25 = vadd.f32 1.4214138, %v1758_v14  ;;  %v1741_v26 = vmul.f32 1.0614054, %v3616_v19  ;;  %3045 = vrcp.f32 %v1728_v17 }
 0x85e   : > { %v1767_v27 = vadd.f32 1.4214138, %v1759_v12  ;;  %v1748_v32 = vadd.f32 -1.4531521, %v1740_v24  ;;  %v3640_v22 = vpop.eup %3039  ;;  %3047 = vpow2.f32 %v1834_v40  ;;  %2165 = vmatpush.bf16.msrb.mxu3 %v2900_v43  ;;  %v1824_v43 = vmul.f32 %v1816_v11, %v3635_v50 }
 0x85f   : > { %v1774_v34 = vmul.f32 %v3590_v58, %v1766_v25  ;;  %v1749_v57 = vadd.f32 -1.4531521, %v1741_v26  ;;  %v1746_v5 = vmul.f32 1.0614054, %v3640_v22  ;;  %v3655_v18 = vpop.eup %3041  ;;  %v2907_v25 = vld [vmem:[%s3271_s0 + $0x98] sm:$0xff]  ;;  %3049 = vpow2.f32 %v1840_v30 }
 0x860   : > { %v1775_v47 = vmul.f32 %v3596_v61, %v1767_v27  ;;  %v1756_v48 = vmul.f32 %v3610_v13, %v1748_v32  ;;  %v2915_v26 = vld [vmem:[%s3271_s0 + $0xd8] sm:$0xff]  ;;  %v1747_v21 = vmul.f32 1.0614054, %v3655_v18  ;;  %v1820_v27 = vmul.f32 %v1812_v6, %v3572_v45  ;;  %2180 = vmatpush.bf16.msra.mxu0 %v2907_v25  ;;  %2152 = vmatpush.bf16.msra.mxu2 %v2891_v1 }
 0x861   : > { %v1782_v54 = vadd.f32 -0.28449672, %v1774_v34  ;;  %v1754_v24 = vadd.f32 -1.4531521, %v1746_v5  ;;  %v1757_v28 = vmul.f32 %v3616_v19, %v1749_v57  ;;  %v1827_v34 = vmul.f32 %v1819_v16, %v3602_v4  ;;  %2194 = vmatpush.bf16.msrb.mxu1 %v2915_v26 }
 0x862   : > { %v1783_v20 = vadd.f32 -0.28449672, %v1775_v47  ;;  %v1764_v9 = vadd.f32 1.4214138, %v1756_v48  ;;  %v1755_v47 = vadd.f32 -1.4531521, %v1747_v21  ;;  %v1821_v30 = vmul.f32 %v1813_v60, %v3575_v46 }
 0x863   : > { %v1790_v2 = vmul.f32 %v3590_v58, %v1782_v54  ;;  %v1762_v32 = vmul.f32 %v3640_v22, %v1754_v24  ;;  %v3108_v48 = vmov -1.0   ;;  %v2914_v54 = vld [vmem:[%s3271_s0 + $0xd0] sm:$0xff]  ;;  %v1765_v57 = vadd.f32 1.4214138, %v1757_v28  ;;  %v2913_v24 = vld [vmem:[%s3271_s0 + $0xc8] sm:$0xff] }
 0x864   : > { %v1791_v14 = vmul.f32 %v3596_v61, %v1783_v20  ;;  %v1772_v15 = vmul.f32 %v3610_v13, %v1764_v9  ;;  %v3673_v49 = vsel %vm1694_vm9, 1.0, %v3108_v48  ;;  %v1763_v62 = vmul.f32 %v3655_v18, %v1755_v47  ;;  %2181 = vmatpush.bf16.msra.mxu0 %v2906_v52  ;;  %v2904_v52 = vld [vmem:[%s3271_s0 + $0x80] sm:$0xff] }
 0x865   : > { %v1798_v12 = vadd.f32 0.2548296, %v1790_v2  ;;  %v1770_v4 = vadd.f32 1.4214138, %v1762_v32  ;;  %v1828_v40 = vmul.f32 1.442695, %v1820_v27  ;;  %2195 = vmatpush.bf16.msrb.mxu1 %v2914_v54  ;;  %v1773_v25 = vmul.f32 %v3616_v19, %v1765_v57 }
 0x866   : > { %v1780_v29 = vadd.f32 -0.28449672, %v1772_v15  ;;  %v1799_v44 = vadd.f32 0.2548296, %v1791_v14  ;;  %v1842_v9 = vmul.f32 1.442695, %v1827_v34 }
 0x867   : > { %v1806_v45 = vmul.f32 %v3590_v58, %v1798_v12  ;;  %v3044_v58 = vpop.eup %3043  ;;  %v1778_v20 = vmul.f32 %v3640_v22, %v1770_v4  ;;  %v2899_v2 = vld [vmem:[%s3271_s0 + $0x58] sm:$0xff]  ;;  %v1771_v16 = vadd.f32 1.4214138, %v1763_v62  ;;  %v3691_v14 = vand.u32 2147483647, %v3668_v59  ;;  %v2905_v12 = vld [vmem:[%s3271_s0 + $0x88] sm:$0xff] }
 0x868   : > { %v1788_v63 = vmul.f32 %v3610_v13, %v1780_v29  ;;  %v3686_v6 = vpop.eup %3045  ;;  %v1807_v5 = vmul.f32 %v3596_v61, %v1799_v44  ;;  %2166 = vmatpush.bf16.msrb.mxu3 %v2899_v2  ;;  %3051 = vpow2.f32 %v1828_v40  ;;  %2182 = vmatpush.bf16.msra.mxu0 %v2905_v12  ;;  %v2890_v27 = vld [vmem:[%s3271_s0 + $0x10] sm:$0xff]  ;;  %v2912_v54 = vld [vmem:[%s3271_s0 + $0xc0] sm:$0xff]  ;;  %v1781_v57 = vadd.f32 -0.28449672, %v1773_v25  ;;  %v2889_v40 = vld [vmem:[%s3271_s0 + $0x8] sm:$0xff] }
 0x869   : > { %v1846_v15 = vmul.f32 %v3044_v58, %v1806_v45  ;;  %v1786_v17 = vadd.f32 -0.28449672, %v1778_v20  ;;  %v1744_v7 = vmul.f32 1.0614054, %v3686_v6  ;;  %v1779_v61 = vmul.f32 %v3655_v18, %v1771_v16  ;;  %v3048_v28 = vpop.eup %3047  ;;  %v2898_v32 = vld [vmem:[%s3271_s0 + $0x50] sm:$0xff]  ;;  %2196 = vmatpush.bf16.msrb.mxu1 %v2913_v24  ;;  %2153 = vmatpush.bf16.msra.mxu2 %v2890_v27  ;;  %v2897_v20 = vld [vmem:[%s3271_s0 + $0x48] sm:$0xff] }
 0x86a   : > { %v1721_v26 = vmul.f32 0.3275911, %v3691_v14  ;;  %v1796_v37 = vadd.f32 0.2548296, %v1788_v63  ;;  %v1847_v34 = vmul.f32 %v3048_v28, %v1807_v5  ;;  %3053 = vpow2.f32 %v1842_v9  ;;  %v3050_v9 = vpop.eup %3049  ;;  %v2988_v59 = vld [vmem:[%s645_s30] ss:$0 sm:$0xff] }
 0x86b   : > { %v1794_v21 = vmul.f32 %v3640_v22, %v1786_v17  ;;  %v1752_v29 = vadd.f32 -1.4531521, %v1744_v7  ;;  %v1787_v39 = vadd.f32 -0.28449672, %v1779_v61  ;;  %v1854_v47 = vsub.f32 1.0, %v1846_v15  ;;  %v2888_v15 = vld [vmem:[%s3271_s0] sm:$0xff] }
 0x86c   : > { %v1729_v44 = vadd.f32 1.0, %v1721_v26  ;;  %2167 = vmatpush.bf16.msrb.mxu3 %v2898_v32  ;;  %v1804_v50 = vmul.f32 %v3610_v13, %v1796_v37  ;;  %2183 = vmatpush.bf16.msra.mxu0 %v2904_v52  ;;  %v1703_v46 = vsel %vm1695_vm10, 1.0, %v3108_v48  ;;  %v1855_v60 = vsub.f32 1.0, %v1847_v34 }
 0x86d   : > { %v1802_v45 = vadd.f32 0.2548296, %v1794_v21  ;;  %v1760_v4 = vmul.f32 %v3686_v6, %v1752_v29  ;;  %v1795_v62 = vmul.f32 %v3655_v18, %v1787_v39  ;;  %v1836_v2 = vmul.f32 1.442695, %v1824_v43  ;;  %2197 = vmatpush.bf16.msrb.mxu1 %v2912_v54  ;;  %2154 = vmatpush.bf16.msra.mxu2 %v2889_v40 }
 0x86e   : > { %3055 = vrcp.f32 %v1729_v44  ;;  %v3052_v5 = vpop.eup %3051  ;;  %v1862_v13 = vmul.f32 %v1854_v47, %v3673_v49  ;;  %v1789_v31 = vmul.f32 %v3616_v19, %v1781_v57  ;;  %v1830_v17 = vmul.f32 1.442695, %v1821_v30  ;;  %v2896_v49 = vld [vmem:[%s3271_s0 + $0x40] sm:$0xff] }
 0x86f   : > { %v1810_v58 = vmul.f32 %v3640_v22, %v1802_v45  ;;  %v1768_v63 = vadd.f32 1.4214138, %v1760_v4  ;;  %v1803_v1 = vadd.f32 0.2548296, %v1795_v62  ;;  %v1700_v22 = vsel %vm1692_vm11, 1.0, %v3108_v48 }
 0x870   : > { %v1706_v7 = vsel %vm1698_vm12, 1.0, %v3108_v48  ;;  %2168 = vmatpush.bf16.msrb.mxu3 %v2897_v20  ;;  %v3054_v24 = vpop.eup %3053  ;;  %v1844_v41 = vmul.f32 %v3052_v5, %v1804_v50  ;;  %v1863_v28 = vmul.f32 %v1855_v60, %v1703_v46  ;;  %3057 = vpow2.f32 %v1836_v2 }
 0x871   : > { %v1850_v16 = vmul.f32 %v3050_v9, %v1810_v58  ;;  %v1776_v11 = vmul.f32 %v3686_v6, %v1768_v63  ;;  %v1811_v12 = vmul.f32 %v3655_v18, %v1803_v1  ;;  %v1817_v21 = vsub.f32 0.0, %v3691_v14  ;;  %2155 = vmatpush.bf16.msra.mxu2 %v2888_v15 }
 0x872   : > { %v1870_v29 = vadd.f32 1.0, %v1862_v13  ;;  %v1797_v18 = vadd.f32 0.2548296, %v1789_v31  ;;  %v1682_v34 = vmul.f32 0.5, %v3579_v51  ;;  %v1707_v39 = vsel %vm1699_vm13, 1.0, %v3108_v48 }
 0x873   : > { %v1858_v25 = vsub.f32 1.0, %v1850_v16  ;;  %v1784_v61 = vadd.f32 -0.28449672, %v1776_v11  ;;  %v1851_v37 = vmul.f32 %v3054_v24, %v1811_v12  ;;  %v1852_v56 = vsub.f32 1.0, %v1844_v41 }
 0x874   : > { %v3056_v26 = vpop.eup %3055  ;;  %2169 = vmatpush.bf16.msrb.mxu3 %v2896_v49  ;;  %v1871_v4 = vadd.f32 1.0, %v1863_v28  ;;  %3059 = vpow2.f32 %v1830_v17  ;;  %v1825_v54 = vmul.f32 %v1817_v21, %v3691_v14  ;;  %v1878_v57 = vmul.f32 %v1870_v29, %v3605_v8 }
 0x875   : > { %v1866_v27 = vmul.f32 %v1858_v25, %v1706_v7  ;;  %v1792_v55 = vmul.f32 %v3686_v6, %v1784_v61  ;;  %v1745_v32 = vmul.f32 1.0614054, %v3056_v26  ;;  %v1859_v43 = vsub.f32 1.0, %v1851_v37 }
 0x876   : > { %v3058_v51 = vpop.eup %3057  ;;  %v1805_v58 = vmul.f32 %v3616_v19, %v1797_v18  ;;  %v1683_v63 = vmul.f32 0.5, %v3581_v53  ;;  %v1860_v20 = vmul.f32 %v1852_v56, %v1700_v22  ;;  %v1879_v14 = vmul.f32 %v1871_v4, %v3618_v23 }
 0x877   : > { %v1874_v44 = vadd.f32 1.0, %v1866_v27  ;;  %v1800_v47 = vadd.f32 0.2548296, %v1792_v55  ;;  %v1753_v45 = vadd.f32 -1.4531521, %v1745_v32  ;;  %v1867_v52 = vmul.f32 %v1859_v43, %v1707_v39 }
 0x878   : > { %v1838_v8 = vmul.f32 1.442695, %v1825_v54  ;;  %v1704_v19 = vsel %vm1696_vm14, 1.0, %v3108_v48  ;;  %v1868_v16 = vadd.f32 1.0, %v1860_v20  ;;  %v1680_v22 = vmul.f32 0.5, %v3607_v10 }
 0x879   : > { %v1882_v30 = vmul.f32 %v1874_v44, %v1682_v34  ;;  %v1808_v62 = vmul.f32 %v3686_v6, %v1800_v47  ;;  %v1761_v50 = vmul.f32 %v3056_v26, %v1753_v45  ;;  %v1875_v40 = vadd.f32 1.0, %v1867_v52 }
 0x87a   : > { %v3060_v6 = vpop.eup %3059  ;;  %3061 = vpow2.f32 %v1838_v8  ;;  %v1876_v17 = vmul.f32 %v1868_v16, %v1676_v33  ;;  %v1701_v61 = vsel %vm1693_vm15, 1.0, %v3108_v48  ;;  %v1705_v37 = vsel %vm1697_vm0, 1.0, %v3108_v48 }
 0x87b   : > { %v1886_v9 = vpack.c.bf16 %v1882_v30, %v1878_v57  ;;  %v1848_v46 = vmul.f32 %v3058_v51, %v1808_v62  ;;  %v1769_v60 = vadd.f32 1.4214138, %v1761_v50  ;;  %v1883_v1 = vmul.f32 %v1875_v40, %v1683_v63  ;;  %v2212_v63 = vld [vmem:[%s3280_s5 + $0x4] sm:$0x1] }
 0x87c   : > { %v1845_v53 = vmul.f32 %v3060_v6, %v1805_v58  ;;  %v1677_v29 = vmul.f32 0.5, %v3563_v36  ;;  %v1681_v27 = vmul.f32 0.5, %v3652_v38 }
 0x87d   : > { %v1856_v2 = vsub.f32 1.0, %v1848_v46  ;;  %v1777_v5 = vmul.f32 %v3056_v26, %v1769_v60  ;;  %2184 = vmatmul.bf16.vlgmr.msra.gmra.mxu0 %v1886_v9  ;;  %v1887_v13 = vpack.c.bf16 %v1883_v1, %v1879_v14 }
 0x87e   : > { %v1853_v7 = vsub.f32 1.0, %v1845_v53 }
 0x87f   : > { %v1864_v11 = vmul.f32 %v1856_v2, %v1704_v19  ;;  %v1785_v15 = vadd.f32 -0.28449672, %v1777_v5  ;;  %2198 = vmatmul.bf16.vlgmr.msrb.gmra.mxu1 %v1887_v13 }
 0x880   : > { %v3062_v25 = vpop.eup %3061  ;;  %v1861_v28 = vmul.f32 %v1853_v7, %v1701_v61 }
 0x881   : > { %v1872_v23 = vadd.f32 1.0, %v1864_v11  ;;  %v1793_v31 = vmul.f32 %v3056_v26, %v1785_v15 }
 0x882   : > { %v1869_v21 = vadd.f32 1.0, %v1861_v28 }
 0x883   : > { %v1880_v12 = vmul.f32 %v1872_v23, %v1680_v22  ;;  %v1801_v49 = vadd.f32 0.2548296, %v1793_v31 }
 0x885   : > { %v1884_v24 = vpack.c.bf16 %v1880_v12, %v1876_v17  ;;  %v1809_v41 = vmul.f32 %v3056_v26, %v1801_v49  ;;  %v1877_v26 = vmul.f32 %v1869_v21, %v1677_v29 }
 0x887   : > { %v1849_v35 = vmul.f32 %v3062_v25, %v1809_v41  ;;  %2156 = vmatmul.bf16.vlgmr.msra.gmra.mxu2 %v1884_v24 }
 0x889   : > { %v1857_v10 = vsub.f32 1.0, %v1849_v35 }
 0x88b   : > { %v1865_v42 = vmul.f32 %v1857_v10, %v1705_v37 }
 0x88d   : > { %v1873_v55 = vadd.f32 1.0, %v1865_v42 }
 0x88f   : > { %v1881_v32 = vmul.f32 %v1873_v55, %v1681_v27 }
 0x891   : > { %v1885_v18 = vpack.c.bf16 %v1881_v32, %v1877_v26 }
 0x893   : > { %2170 = vmatmul.bf16.vlgmr.msrb.gmra.mxu3 %v1885_v18 }
 0x8fa   : > { %v2185_v48 = vpop.f32.mrf.mxu0 }
 0x8fc   : > { %v2199_v44 = vpop.f32.mrf.mxu1 }
 0x902   : > { %v2187_v30 = vpop.f32.mrf.mxu0 }
 0x904   : > { %v2201_v50 = vpop.f32.mrf.mxu1 }
 0x90a   : > { %v2157_v34 = vpop.f32.mrf.mxu2 }
 0x90b   : > { %v2158_v39 = vadd.f32 %v2988_v59, %v2157_v34 }
 0x912   : > { %v2159_v36 = vpop.f32.mrf.mxu2 }
 0x913   : > { %v2160_v45 = vadd.f32 %v2988_v59, %v2159_v36 }
 0x916   : > { %v2171_v43 = vpop.f32.mrf.mxu3 }
 0x917   : > { %v2172_v56 = vadd.f32 %v2171_v43, %v2158_v39 }
 0x919   : > { %v2186_v38 = vadd.f32 %v2185_v48, %v2172_v56 }
 0x91b   : > { %v2200_v47 = vadd.f32 %v2199_v44, %v2186_v38 }
 0x91d   : > { %v2204_v4 = vadd.f32 %v2200_v47, %v3447_v0 }
 0x91e   : > { %v2173_v52 = vpop.f32.mrf.mxu3 }
 0x91f   : > { %v2206_v54 = vpack.c.bf16 %v2204_v4, %v2204_v4  ;;  %v2174_v57 = vadd.f32 %v2173_v52, %v2160_v45 }
 0x921   : > { %2208 = vst [vmem:[%s3280_s5] sm:$0xf] %v2206_v54  ;;  %v2188_v62 = vadd.f32 %v2187_v30, %v2174_v57 }
 0x923   : > { %v2202_v51 = vadd.f32 %v2201_v50, %v2188_v62 }
 0x925   : > { %v2205_v58 = vadd.f32 %v2202_v51, %v3451_v3 }
 0x927   : > { %v2207_v40 = vpack.c.bf16 %v2205_v58, %v2205_v58 }
 0x929   : > { %v2213_v20 = vsel %vm2211_vm2, %v2207_v40, %v2212_v63 }
 0x92a   : > { %2214 = vst [vmem:[%s3280_s5 + $0x4] sm:$0x1] %v2213_v20 }
 0x92b PF: > { %s3818_s15 = sld [smem:[#allocation5_spill]] }
 0x92c   : > { %s3819_s25 = sld [smem:[#allocation3_spill]] }
 0x92d   : > { %s3820_s26 = sld [smem:[#allocation4_spill]] }
 0x92e   : > { %s3821_s27 = sld [smem:[#allocation6_spill]] }
 0x92f   : > { %s3822_s28 = sld [smem:[#allocation7_spill]] }
 0x931   : > { %s23_s29 = sadd.s32 1, %s3818_s15  }
 0x932   : > { %p20_p8 = scmp.ge.s32.totalorder %s23_s29, 6  }
 0x934   :  { %22 = sbr.rel (!%p20_p8) target bundleno = 7 (0x7), region = 142 }

// kernel: _lambda_.9
= control target key start
LH: loop header
LB: loop body
LE: loop exit
PB: predicated region body
PF: predicated region fallthrough
CT: control target
= control target key end

     0   :  { %s585_s18 = smov 0   ;;  %s656_s0 = inlined_call_operand.vmem [shape: bf16[2,17,128], index: 0, kind: input, shape index: {}]   ;;  %s657_s1 = inlined_call_operand.vmem [shape: f32[1,128], index: 1, kind: input, shape index: {}]   ;;  %s658_s2 = inlined_call_operand.vmem [shape: f32[1,128], index: 2, kind: input, shape index: {}]   ;;  %s659_s3 = inlined_call_operand.vmem [shape: bf16[128,64], index: 3, kind: input, shape index: {}]   ;;  %s660_s4 = inlined_call_operand.vmem [shape: f32[1,64], index: 4, kind: input, shape index: {}]   ;;  %s661_s5 = inlined_call_operand.vmem [shape: f32[2,17,64], index: 5, kind: output, shape index: {}]  }
   0x1 LB: > { %s463_s19 = sadd.s32 4294967295, %s552_s18   ;;  %p467_p0 = scmp.ge.s32.totalorder %s552_s18, 1  ;;  %s552_s18 = sphi %s585_s18, %s15_s18  }
   0x2   : > { %p187_p1 = scmp.lt.s32.totalorder %s552_s18, 3 }
   0x4   : > { %p188_p2 = pnand %p467_p0, %p187_p1 }
   0x5   : > { %p215_p3 = scmp.lt.s32.totalorder (!%p188_p2), %s463_s19, 1 }
   0x6   : > { %191 = sbr.rel (%p188_p2) target bundleno = 436 (0x1b4), region = 40 }
   0xb   : > { %s663_s19 = smov (!%p215_p3, %s463_s19), 1  ;;  %vm237_vm0 = vcmask 1040384   ;;  %v554_v6 = vmov 128.0   ;;  %v511_v26 = vld [vmem:[%s659_s3 + $0x38] sm:$0xff]  ;;  %v510_v27 = vld [vmem:[%s659_s3 + $0x30] sm:$0xff]  ;;  %v509_v28 = vld [vmem:[%s659_s3 + $0x28] sm:$0xff] }
   0xc   : > { %s524_s20 = smul.u32 12, %s663_s19  ;;  %538 = vrcp.f32 %v554_v6  ;;  %385 = vmatpush.bf16.msra.mxu0 %v511_v26  ;;  %516 = vmatpush.bf16.msra.mxu1 %v511_v26  ;;  %v508_v29 = vld [vmem:[%s659_s3 + $0x20] sm:$0xff]  ;;  %v507_v30 = vld [vmem:[%s659_s3 + $0x18] sm:$0xff]  ;;  %v506_v31 = vld [vmem:[%s659_s3 + $0x10] sm:$0xff]  ;;  %vm403_vm11 = vcmask 523264   ;;  %vm406_vm12 = vcmask 516096  }
   0xd   : > { %v505_v32 = vld [vmem:[%s659_s3 + $0x8] sm:$0xff]  ;;  %v504_v35 = vld [vmem:[%s659_s3] sm:$0xff]  ;;  %s525_s21 = smul.u32 24, %s663_s19 }
   0xe   : > { %s219_s23 = scalar_lea.vmem %s656_s0, %s524_s20  ;;  %v535_v57 = vld [vmem:[%s657_s1] ss:$0 sm:$0xff] }
   0xf   : > { %v513_v0 = vld [vmem:[%s219_s23] sm:$0xff]   ;;  %v227_v1 = vld [vmem:[%s219_s23 + $0x8] sm:$0x1]  ;;  %s224_s26 = scalar_lea.vmem %s661_s5, %s525_s21 }
  0x10   : > { %v514_v2 = vunpack.c.l.bf16 %v513_v0  ;;  %v230_v3 = vunpack.c.l.bf16 %v227_v1  ;;  %v515_v5 = vunpack.c.h.bf16 %v513_v0  ;;  %386 = vmatpush.bf16.msra.mxu0 %v510_v27  ;;  %517 = vmatpush.bf16.msra.mxu1 %v510_v27  ;;  %v536_v0 = vld [vmem:[%s658_s2] ss:$0 sm:$0xff] }
  0x12   : > { %233 = vadd.xlane.f32.xlu0 %v514_v2  ;;  %v238_v4 = vsel %vm237_vm0, %v230_v3, 0.0  ;;  %v539_v7 = vpop.eup %538 }
  0x13   : > { %239 = vadd.xlane.f32.xlu1 %v238_v4  ;;  %v242_v8 = vmul.f32 128.0, %v539_v7  ;;  %vm246_vm1 = vweird.f32 %v539_v7 }
  0x14   : > { %387 = vmatpush.bf16.msra.mxu0 %v509_v28  ;;  %518 = vmatpush.bf16.msra.mxu1 %v509_v28 }
  0x15   : > { %v243_v9 = vsub.f32 1.0, %v242_v8 }
  0x17   : > { %v244_v10 = vmul.f32 %v539_v7, %v243_v9 }
  0x18   : > { %388 = vmatpush.bf16.msra.mxu0 %v508_v29  ;;  %519 = vmatpush.bf16.msra.mxu1 %v508_v29 }
  0x19   : > { %v245_v11 = vadd.f32 %v539_v7, %v244_v10 }
  0x1a   : > { %235 = vadd.xlane.f32.xlu0 %v515_v5 }
  0x1b   : > { %v247_v12 = vsel %vm246_vm1, %v539_v7, %v245_v11 }
  0x1c   : > { %389 = vmatpush.bf16.msra.mxu0 %v507_v30  ;;  %520 = vmatpush.bf16.msra.mxu1 %v507_v30 }
  0x20   : > { %390 = vmatpush.bf16.msra.mxu0 %v506_v31  ;;  %521 = vmatpush.bf16.msra.mxu1 %v506_v31 }
  0x24   : > { %391 = vmatpush.bf16.msra.mxu0 %v505_v32  ;;  %522 = vmatpush.bf16.msra.mxu1 %v505_v32 }
  0x28   : > { %392 = vmatpush.bf16.msra.mxu0 %v504_v35  ;;  %523 = vmatpush.bf16.msra.mxu1 %v504_v35 }
  0x85   : > { %v234_v13 = vpop.xlane.xlu0 %233 }
  0x86   : > { %v248_v14 = vmul.f32 %v247_v12, %v234_v13  ;;  %v240_v17 = vpop.xlane.xlu1 %239  ;;  %v537_v13 = vld [vmem:[%s660_s4] ss:$0 sm:$0xff] }
  0x87   : > { %v250_v19 = vmul.f32 %v247_v12, %v240_v17 }
  0x88   : > { %v600_v15 = vsub.f32 %v514_v2, %v248_v14 }
  0x89   : > { %v606_v22 = vsub.f32 %v230_v3, %v250_v19 }
  0x8a   : > { %v254_v16 = vmul.f32 %v600_v15, %v600_v15 }
  0x8b   : > { %v256_v24 = vmul.f32 %v606_v22, %v606_v22 }
  0x8c   : > { %257 = vadd.xlane.f32.xlu1 %v254_v16 }
  0x8d   : > { %v236_v18 = vpop.xlane.xlu0 %235  ;;  %v261_v25 = vsel %vm237_vm0, %v256_v24, 0.0 }
  0x8e   : > { %v249_v20 = vmul.f32 %v247_v12, %v236_v18 }
  0x90   : > { %v604_v21 = vsub.f32 %v515_v5, %v249_v20 }
  0x92   : > { %v255_v23 = vmul.f32 %v604_v21, %v604_v21 }
  0x94   : > { %259 = vadd.xlane.f32.xlu2 %v255_v23 }
  0x9c   : > { %262 = vadd.xlane.f32.xlu2 %v261_v25 }
  0xff   : > { %v258_v33 = vpop.xlane.xlu1 %257 }
 0x100   : > { %v264_v34 = vmul.f32 %v258_v33, %v247_v12 }
 0x102   : > { %v267_v36 = vadd.f32 1e-06, %v264_v34 }
 0x104   : > { %540 = vrsqrt.f32 %v267_v36  ;;  %vm276_vm3 = vweird.f32 %v267_v36 }
 0x107   : > { %v260_v37 = vpop.xlane.xlu2 %259 }
 0x108   : > { %v265_v38 = vmul.f32 %v260_v37, %v247_v12 }
 0x10a   : > { %v541_v39 = vpop.eup %540  ;;  %v268_v40 = vadd.f32 1e-06, %v265_v38 }
 0x10b   : > { %v271_v41 = vmul.f32 %v541_v39, %v267_v36  ;;  %vm277_vm2 = vweird.f32 %v541_v39 }
 0x10c   : > { %542 = vrsqrt.f32 %v268_v40  ;;  %vm278_vm4 = vmor %vm276_vm3, %vm277_vm2  ;;  %vm286_vm6 = vweird.f32 %v268_v40 }
 0x10d   : > { %v272_v42 = vmul.f32 %v541_v39, %v271_v41 }
 0x10f   : > { %v273_v43 = vmul.f32 0.5, %v272_v42  ;;  %v263_v44 = vpop.xlane.xlu2 %262 }
 0x110   : > { %v266_v45 = vmul.f32 %v263_v44, %v247_v12 }
 0x111   : > { %v274_v46 = vsub.f32 1.5, %v273_v43 }
 0x112   : > { %v543_v47 = vpop.eup %542  ;;  %v269_v48 = vadd.f32 1e-06, %v266_v45 }
 0x113   : > { %v275_v49 = vmul.f32 %v541_v39, %v274_v46  ;;  %v281_v50 = vmul.f32 %v543_v47, %v268_v40  ;;  %vm287_vm5 = vweird.f32 %v543_v47 }
 0x114   : > { %544 = vrsqrt.f32 %v269_v48  ;;  %vm288_vm7 = vmor %vm286_vm6, %vm287_vm5  ;;  %vm296_vm9 = vweird.f32 %v269_v48 }
 0x115   : > { %v282_v51 = vmul.f32 %v543_v47, %v281_v50  ;;  %v279_v53 = vsel %vm278_vm4, %v541_v39, %v275_v49 }
 0x116   : > { %v300_v56 = vmul.f32 %v279_v53, %v600_v15 }
 0x117   : > { %v283_v52 = vmul.f32 0.5, %v282_v51 }
 0x118   : > { %v306_v63 = vmul.f32 %v535_v57, %v300_v56 }
 0x119   : > { %v284_v54 = vsub.f32 1.5, %v283_v52 }
 0x11a   : > { %v545_v55 = vpop.eup %544  ;;  %v312_v4 = vadd.f32 %v536_v0, %v306_v63 }
 0x11b   : > { %v285_v58 = vmul.f32 %v543_v47, %v284_v54  ;;  %v291_v59 = vmul.f32 %v545_v55, %v269_v48  ;;  %vm297_vm8 = vweird.f32 %v545_v55 }
 0x11c   : > { %vm298_vm10 = vmor %vm296_vm9, %vm297_vm8 }
 0x11d   : > { %v292_v60 = vmul.f32 %v545_v55, %v291_v59  ;;  %v289_v61 = vsel %vm288_vm7, %v543_v47, %v285_v58 }
 0x11e   : > { %v301_v62 = vmul.f32 %v289_v61, %v604_v21 }
 0x11f   : > { %v293_v1 = vmul.f32 0.5, %v292_v60 }
 0x120   : > { %v307_v2 = vmul.f32 %v535_v57, %v301_v62 }
 0x121   : > { %v294_v3 = vsub.f32 1.5, %v293_v1 }
 0x122   : > { %v313_v5 = vadd.f32 %v536_v0, %v307_v2 }
 0x123   : > { %v295_v6 = vmul.f32 %v545_v55, %v294_v3 }
 0x124   : > { %v315_v7 = vpack.c.bf16 %v313_v5, %v312_v4 }
 0x125   : > { %v299_v8 = vsel %vm298_vm10, %v545_v55, %v295_v6 }
 0x126   : > { %393 = vmatmul.bf16.vlgmr.msra.gmra.mxu0 %v315_v7  ;;  %v302_v9 = vmul.f32 %v299_v8, %v606_v22 }
 0x128   : > { %v308_v10 = vmul.f32 %v535_v57, %v302_v9 }
 0x12a   : > { %v314_v11 = vadd.f32 %v536_v0, %v308_v10 }
 0x12c   : > { %v316_v12 = vpack.c.bf16 %v314_v11, %v314_v11 }
 0x12e   : > { %398 = vmatmul.bf16.vlgmr.msra.gmra.mxu1 %v316_v12 }
 0x1a3   : > { %v394_v14 = vpop.f32.mrf.mxu0 }
 0x1a4   : > { %v395_v15 = vadd.f32 %v537_v13, %v394_v14 }
 0x1a6   : > { %404 = vst.msk [vmem:[%s224_s26] sm:$0xff] %vm403_vm11, %v395_v15 }
 0x1ab   : > { %v396_v16 = vpop.f32.mrf.mxu0  ;;  %v399_v17 = vpop.f32.mrf.mxu1 }
 0x1ac   : > { %v397_v18 = vadd.f32 %v537_v13, %v396_v16  ;;  %v400_v19 = vadd.f32 %v537_v13, %v399_v17 }
 0x1ae   : > { %405 = vst.msk [vmem:[%s224_s26 + $0x8] sm:$0xff] %vm403_vm11, %v397_v18 }
 0x1af   : > { %407 = vst.msk [vmem:[%s224_s26 + $0x10] sm:$0x1] %vm406_vm12, %v400_v19 }
 0x1b3   : > { %v401_v20 = vpop.f32.mrf.mxu1 }
 0x1b4 PF: > { %s15_s18 = sadd.s32 1, %s552_s18  }
 0x1b5   : > { %p12_p4 = scmp.ge.s32.totalorder %s15_s18, 4  }
 0x1b7   :  { %14 = sbr.rel (!%p12_p4) target bundleno = 1 (0x1), region = 70 }

// kernel: _lambda_.8
= control target key start
LH: loop header
LB: loop body
LE: loop exit
PB: predicated region body
PF: predicated region fallthrough
CT: control target
= control target key end

     0   :  { %s3606_s25 = smov 0   ;;  %s3608_s26 = smov 0   ;;  %s4451_s0 = inlined_call_operand.vmem [shape: bf16[2,17,128], index: 0, kind: input, shape index: {}]   ;;  %s4452_s1 = inlined_call_operand.vmem [shape: f32[2,1,128], index: 1, kind: input, shape index: {}]   ;;  %s4453_s2 = inlined_call_operand.vmem [shape: f32[2,1,128], index: 2, kind: input, shape index: {}]   ;;  %s4454_s3 = inlined_call_operand.vmem [shape: bf16[2,128,384], index: 3, kind: input, shape index: {}]   ;;  %s4455_s4 = inlined_call_operand.vmem [shape: f32[2,1,384], index: 4, kind: input, shape index: {}]   ;;  %s4456_s5 = inlined_call_operand.vmem [shape: bf16[2,128,128], index: 5, kind: input, shape index: {}]   ;;  %s4457_s6 = inlined_call_operand.vmem [shape: f32[2,1,128], index: 6, kind: input, shape index: {}]   ;;  %s4458_s7 = inlined_call_operand.vmem [shape: f32[2,1,128], index: 7, kind: input, shape index: {}]   ;;  %s4459_s8 = inlined_call_operand.vmem [shape: f32[2,1,128], index: 8, kind: input, shape index: {}]   ;;  %s4460_s9 = inlined_call_operand.vmem [shape: bf16[2,128,512], index: 9, kind: input, shape index: {}]   ;;  %s4461_s10 = inlined_call_operand.vmem [shape: f32[2,1,512], index: 10, kind: input, shape index: {}]   ;;  %s4462_s11 = inlined_call_operand.vmem [shape: bf16[2,512,128], index: 11, kind: input, shape index: {}]   ;;  %s4463_s12 = inlined_call_operand.vmem [shape: f32[2,1,128], index: 12, kind: input, shape index: {}]   ;;  %s4464_s13 = inlined_call_operand.vmem [shape: bf16[2,17,128], index: 13, kind: output, shape index: {}]  }
   0x1   :  { %4469 = sst [smem:[#allocation8_spill]] %s4451_s0  ;;  %s3610_s27 = smov 0  }
   0x2   :  { %4470 = sst [smem:[#allocation9_spill]] %s4453_s2  ;;  %s3612_s28 = smov 0  }
   0x3   :  { %4471 = sst [smem:[#allocation10_spill]] %s4454_s3  ;;  %s3614_s29 = smov 0  }
   0x4   :  { %4472 = sst [smem:[#allocation11_spill]] %s4455_s4 }
   0x5   :  { %4473 = sst [smem:[#allocation12_spill]] %s4456_s5 }
   0x6   :  { %4474 = sst [smem:[#allocation13_spill]] %s4464_s13 }
   0x7 LB: > { %4475 = sst [smem:[#allocation2_spill]] %s3512_s25  ;;  %s32_s30 = sadd.s32 1, %s3520_s27  ;;  %s3528_s29 = sphi %s3614_s29, %s23_s29   ;;  %s3524_s28 = sphi %s3612_s28, %s4498_s28   ;;  %s3520_s27 = sphi %s3610_s27, %s4497_s27   ;;  %s3516_s26 = sphi %s3608_s26, %s4496_s26   ;;  %s3512_s25 = sphi %s3606_s25, %s4495_s25  }
   0x8   : > { %4476 = sst [smem:[#allocation3_spill]] %s3520_s27  ;;  %s35_s14 = sadd.s32 1, %s3524_s28 }
   0x9   : > { %4477 = sst [smem:[#allocation4_spill]] %s3524_s28  ;;  %p33_p0 = scmp.ge.s32.totalorder %s32_s30, 2 }
   0xa   : > { %4478 = sst [smem:[#allocation5_spill]] %s3528_s29  ;;  %p2788_p1 = scmp.ge.s32.totalorder %s3528_s29, 1 }
   0xb   : > { %p505_p2 = scmp.lt.s32.totalorder %s3528_s29, 5  ;;  %s4500_s30 = smov (%p33_p0, %s32_s30), 0 }
   0xc   : > { %4479 = sst [smem:[#allocation6_spill]] %s4500_s30  ;;  %s4502_s14 = smov (!%p33_p0, %s35_s14), %s3524_s28 }
   0xd   : > { %p506_p3 = pnand %p2788_p1, %p505_p2  ;;  %p37_p4 = scmp.ge.s32.totalorder %s4502_s14, 2 }
   0xe   : > { %p595_p5 = scmp.lt.s32.totalorder (!%p506_p3), %s3516_s26, 1  ;;  %p600_p6 = scmp.lt.s32.totalorder (!%p506_p3), %s3512_s25, 1 }
   0xf   : > { %s4504_s14 = smov (%p37_p4, %s4502_s14), 0  ;;  %509 = sbr.rel (%p506_p3) target bundleno = 2134 (0x856), region = 72 }
  0x10   : > { %4480 = sst [smem:[#allocation7_spill]] %s4504_s14 }
  0x11   : > { %s4482_s0 = sld [smem:[#allocation8_spill]] (!%p506_p3) }
  0x12   : > { %s4483_s3 = sld [smem:[#allocation10_spill]] (!%p506_p3) }
  0x13   : > { %s4484_s5 = sld [smem:[#allocation12_spill]] (!%p506_p3) }
  0x14   : > { %s4506_s26 = smov (!%p595_p5, %s3516_s26), 1  ;;  %s4485_s4 = sld [smem:[#allocation11_spill]] }
  0x15   : > { %s3640_s15 = scalar_select %p600_p6, %s3512_s25, 1 }
  0x16   : > { %s3310_s16 = smul.u32 12, %s4506_s26  ;;  %s4487_s17 = sld [smem:[#allocation2_spill]] }
  0x17   : > { %s3311_s30 = smul.u32 192, %s3640_s15  ;;  %s3202_s27 = sshll.u32 %s3640_s15, 6 }
  0x18   : > { %s599_s14 = scalar_lea.vmem %s4482_s0, %s3310_s16  ;;  %s3312_s28 = smul.u32 3, %s3640_s15 }
  0x19   : > { %s3659_s26 = scalar_lea.vmem %s4483_s3, %s3311_s30  ;;  %s3664_s18 = scalar_lea.vmem %s4484_s5, %s3202_s27 }
  0x1a   : > { %s3669_s22 = scalar_lea.vmem %s4485_s4, %s3312_s28  ;;  %s3203_s13 = sshll.u32 %s3640_s15, 8 }
  0x1b   : > { %s2795_s27 = sshll.u32 %s3640_s15, 2  ;;  %s3688_s20 = scalar_lea.vmem %s4460_s9, %s3203_s13 }
  0x1c   : > { %s3693_s23 = scalar_lea.vmem %s4461_s10, %s2795_s27  ;;  %s3698_s0 = scalar_lea.vmem %s4462_s11, %s3203_s13 }
  0x1d   : > { %s645_s30 = scalar_lea.vmem %s4463_s12, %s3640_s15  ;;  %s4486_s4 = sld [smem:[#allocation13_spill]] }
  0x1e   : > { %p2799_p7 = scmp.ne.s32.totalorder %s4487_s17, 0 }
  0x20   : > { %655 = sbr.rel (%p2799_p7) target bundleno = 41 (0x29), region = 76 }
  0x23   : > { %s3707_s5 = scalar_lea.vmem %s4486_s4, %s3310_s16 }
  0x25   : > { %v656_v0 = vld [vmem:[%s599_s14] sm:$0xff]   ;;  %v658_v1 = vld [vmem:[%s599_s14 + $0x8] sm:$0x1]  ;;  %vm661_vm0 = vcmask 1040384   ;;  %vm662_vm1 = vsmask.f32 256 }
  0x26   : > { %659 = vst [vmem:[%s3707_s5] sm:$0xff] %v656_v0   ;;  %vm663_vm2 = vmand %vm661_vm0, %vm662_vm1  ;;  %v664_v2 = vld [vmem:[%s3707_s5 + $0x8] sm:$0x1] }
  0x27   : > { %v665_v3 = vsel %vm663_vm2, %v658_v1, %v664_v2 }
  0x28   : > { %666 = vst [vmem:[%s3707_s5 + $0x8] sm:$0x1] %v665_v3 }
  0x29 PF: > { %vm679_vm3 = vcmask 1040384   ;;  %v3530_v10 = vmov 128.0   ;;  %v2886_v30 = vld [vmem:[%s3659_s26 + $0xa8] sm:$0xf]  ;;  %v3227_v31 = vld [vmem:[%s3659_s26 + $0xb0] sm:$0xf0]  ;;  %s4488_s14 = scalar_lea.vmem %s4452_s1, %s3640_s15  ;;  %s4491_s21 = scalar_lea.vmem %s4457_s6, %s3640_s15 }
  0x2a   : > { %3380 = vrcp.f32 %v3530_v10  ;;  %v3226_v32 = vld [vmem:[%s3659_s26 + $0xac] sm:$0xf]  ;;  %v2887_v33 = vor.u32 %v3227_v31, %v2886_v30  ;;  %v2888_v34 = vld [vmem:[%s3659_s26 + $0xb4] sm:$0xf0]  ;;  %v2894_v35 = vld [vmem:[%s3659_s26 + $0xb0] sm:$0xf]  ;;  %s4492_s2 = scalar_lea.vmem %s4458_s7, %s3640_s15  ;;  %s4493_s3 = scalar_lea.vmem %s4459_s8, %s3640_s15 }
  0x2b   : > { %v3228_v36 = vld [vmem:[%s3659_s26 + $0xb8] sm:$0xf0]  ;;  %v2891_v37 = vor.u32 %v3226_v32, %v2888_v34  ;;  %v2874_v39 = vld [vmem:[%s3659_s26 + $0x90] sm:$0xf]  ;;  %v3223_v41 = vld [vmem:[%s3659_s26 + $0x94] sm:$0xf] }
  0x2c   : > { %v2895_v38 = vor.u32 %v3228_v36, %v2894_v35  ;;  %927 = vmatpush.bf16.msra.mxu0 %v2887_v33  ;;  %v3224_v40 = vld [vmem:[%s3659_s26 + $0x98] sm:$0xf0]  ;;  %v2876_v43 = vld [vmem:[%s3659_s26 + $0x9c] sm:$0xf0]  ;;  %v2882_v44 = vld [vmem:[%s3659_s26 + $0x98] sm:$0xf] }
  0x2d   : > { %v3302_v4 = vld [vmem:[%s3707_s5] sm:$0xff]   ;;  %945 = vmatpush.bf16.msra.mxu1 %v2891_v37  ;;  %v2875_v42 = vor.u32 %v3224_v40, %v2874_v39  ;;  %v2879_v46 = vor.u32 %v3223_v41, %v2876_v43  ;;  %v2862_v48 = vld [vmem:[%s3659_s26 + $0x78] sm:$0xf]  ;;  %v3220_v50 = vld [vmem:[%s3659_s26 + $0x7c] sm:$0xf]  ;;  %vm1000_vm14 = vcmask 261120  }
  0x2e   : > { %v3715_v6 = vunpack.c.l.bf16 %v3302_v4  ;;  %v3722_v9 = vunpack.c.h.bf16 %v3302_v4  ;;  %963 = vmatpush.bf16.msra.mxu2 %v2895_v38  ;;  %v3225_v45 = vld [vmem:[%s3659_s26 + $0xa0] sm:$0xf0]  ;;  %v2864_v52 = vld [vmem:[%s3659_s26 + $0x84] sm:$0xf0]  ;;  %v2870_v53 = vld [vmem:[%s3659_s26 + $0x80] sm:$0xf] }
  0x2f   : > { %v669_v5 = vld [vmem:[%s3707_s5 + $0x8] sm:$0x1]  ;;  %v2883_v47 = vor.u32 %v3225_v45, %v2882_v44  ;;  %v3221_v49 = vld [vmem:[%s3659_s26 + $0x80] sm:$0xf0]  ;;  %v3222_v54 = vld [vmem:[%s3659_s26 + $0x88] sm:$0xf0]  ;;  %v2867_v55 = vor.u32 %v3220_v50, %v2864_v52 }
  0x30   : > { %v3717_v7 = vunpack.c.l.bf16 %v669_v5  ;;  %675 = vadd.xlane.f32.xlu0 %v3715_v6  ;;  %v3381_v11 = vpop.eup %3380  ;;  %928 = vmatpush.bf16.msra.mxu0 %v2875_v42  ;;  %v2863_v51 = vor.u32 %v3221_v49, %v2862_v48  ;;  %v2871_v56 = vor.u32 %v3222_v54, %v2870_v53  ;;  %v2850_v57 = vld [vmem:[%s3659_s26 + $0x60] sm:$0xf]  ;;  %v3218_v58 = vld [vmem:[%s3659_s26 + $0x68] sm:$0xf0]  ;;  %v3217_v59 = vld [vmem:[%s3659_s26 + $0x64] sm:$0xf] }
  0x31   : > { %v684_v12 = vmul.f32 128.0, %v3381_v11  ;;  %vm688_vm4 = vweird.f32 %v3381_v11  ;;  %946 = vmatpush.bf16.msra.mxu1 %v2879_v46  ;;  %v2851_v60 = vor.u32 %v3218_v58, %v2850_v57  ;;  %v2852_v61 = vld [vmem:[%s3659_s26 + $0x6c] sm:$0xf0]  ;;  %v2858_v62 = vld [vmem:[%s3659_s26 + $0x68] sm:$0xf]  ;;  %s3532_s13 = smov 64  }
  0x32   : > { %v680_v8 = vsel %vm679_vm3, %v3717_v7, 0.0  ;;  %964 = vmatpush.bf16.msra.mxu2 %v2883_v47  ;;  %v3219_v63 = vld [vmem:[%s3659_s26 + $0x70] sm:$0xf0]  ;;  %v2855_v0 = vor.u32 %v3217_v59, %v2852_v61  ;;  %v2838_v2 = vld [vmem:[%s3659_s26 + $0x48] sm:$0xf]  ;;  %s3534_s27 = smov 32  }
  0x33   : > { %681 = vadd.xlane.f32.xlu1 %v680_v8  ;;  %v685_v13 = vsub.f32 1.0, %v684_v12  ;;  %v2859_v1 = vor.u32 %v3219_v63, %v2858_v62  ;;  %v3215_v3 = vld [vmem:[%s3659_s26 + $0x50] sm:$0xf0]  ;;  %v3214_v4 = vld [vmem:[%s3659_s26 + $0x4c] sm:$0xf]  ;;  %vm1034_vm15 = vcmask 138240  }
  0x34   : > { %929 = vmatpush.bf16.msra.mxu0 %v2863_v51  ;;  %v2839_v5 = vor.u32 %v3215_v3, %v2838_v2  ;;  %v2840_v8 = vld [vmem:[%s3659_s26 + $0x54] sm:$0xf0]  ;;  %v2846_v10 = vld [vmem:[%s3659_s26 + $0x50] sm:$0xf]  ;;  %v2816_v31 = vld [vmem:[%s3659_s26 + $0x24] sm:$0xf0] }
  0x35   : > { %v686_v14 = vmul.f32 %v3381_v11, %v685_v13  ;;  %947 = vmatpush.bf16.msra.mxu1 %v2867_v55  ;;  %v2843_v12 = vor.u32 %v3214_v4, %v2840_v8  ;;  %v2822_v32 = vld [vmem:[%s3659_s26 + $0x20] sm:$0xf]  ;;  %v3210_v33 = vld [vmem:[%s3659_s26 + $0x28] sm:$0xf0]  ;;  %v3205_v40 = vld [vmem:[%s3659_s26 + $0x4] sm:$0xf] }
  0x36   : > { %965 = vmatpush.bf16.msra.mxu2 %v2871_v56  ;;  %v2823_v35 = vor.u32 %v3210_v33, %v2822_v32  ;;  %v2802_v38 = vld [vmem:[%s3659_s26] sm:$0xf]  ;;  %v3206_v39 = vld [vmem:[%s3659_s26 + $0x8] sm:$0xf0]  ;;  %v2804_v42 = vld [vmem:[%s3659_s26 + $0xc] sm:$0xf0] }
  0x37   : > { %v687_v15 = vadd.f32 %v3381_v11, %v686_v14  ;;  %v2826_v14 = vld [vmem:[%s3659_s26 + $0x30] sm:$0xf]  ;;  %v2803_v41 = vor.u32 %v3206_v39, %v2802_v38  ;;  %v2810_v43 = vld [vmem:[%s3659_s26 + $0x8] sm:$0xf]  ;;  %v3207_v44 = vld [vmem:[%s3659_s26 + $0x10] sm:$0xf0]  ;;  %v2807_v46 = vor.u32 %v3205_v40, %v2804_v42 }
  0x38   : > { %677 = vadd.xlane.f32.xlu0 %v3722_v9  ;;  %930 = vmatpush.bf16.msra.mxu0 %v2851_v60  ;;  %v2811_v47 = vor.u32 %v3207_v44, %v2810_v43  ;;  %v3374_v4 = vld [vmem:[%s4488_s14] ss:$0 sm:$0xff]  ;;  %vm1041_vm0 = vcmask 131072   ;;  %vm1472_vm1 = vcmask 523264   ;;  %vm1476_vm2 = vcmask 785408  }
  0x39   : > { %v3725_v16 = vsel %vm688_vm4, %v3381_v11, %v687_v15  ;;  %948 = vmatpush.bf16.msra.mxu1 %v2855_v0  ;;  %v3216_v11 = vld [vmem:[%s3659_s26 + $0x58] sm:$0xf0] }
  0x3a   : > { %966 = vmatpush.bf16.msra.mxu2 %v2859_v1  ;;  %v2847_v13 = vor.u32 %v3216_v11, %v2846_v10  ;;  %v3212_v15 = vld [vmem:[%s3659_s26 + $0x38] sm:$0xf0] }
  0x3c   : > { %931 = vmatpush.bf16.msra.mxu0 %v2839_v5 }
  0x3d   : > { %949 = vmatpush.bf16.msra.mxu1 %v2843_v12 }
  0x3e   : > { %967 = vmatpush.bf16.msra.mxu2 %v2847_v13 }
  0xa3   : > { %v676_v17 = vpop.xlane.xlu0 %675 }
  0xa4   : > { %v690_v18 = vmul.f32 %v3725_v16, %v676_v17  ;;  %v3211_v17 = vld [vmem:[%s3659_s26 + $0x34] sm:$0xf] }
  0xa6   : > { %v3729_v19 = vsub.f32 %v3715_v6, %v690_v18  ;;  %v682_v21 = vpop.xlane.xlu1 %681  ;;  %v2827_v18 = vor.u32 %v3212_v15, %v2826_v14 }
  0xa7   : > { %v692_v23 = vmul.f32 %v3725_v16, %v682_v21  ;;  %v2834_v21 = vld [vmem:[%s3659_s26 + $0x38] sm:$0xf] }
  0xa8   : > { %v696_v20 = vmul.f32 %v3729_v19, %v3729_v19  ;;  %932 = vmatpush.bf16.msra.mxu0 %v2827_v18 }
  0xa9   : > { %v3739_v26 = vsub.f32 %v3717_v7, %v692_v23 }
  0xaa   : > { %699 = vadd.xlane.f32.xlu1 %v696_v20  ;;  %v2828_v20 = vld [vmem:[%s3659_s26 + $0x3c] sm:$0xf0] }
  0xab   : > { %v678_v22 = vpop.xlane.xlu0 %677  ;;  %v698_v28 = vmul.f32 %v3739_v26, %v3739_v26  ;;  %v2831_v23 = vor.u32 %v3211_v17, %v2828_v20 }
  0xac   : > { %v691_v24 = vmul.f32 %v3725_v16, %v678_v22  ;;  %v3213_v22 = vld [vmem:[%s3659_s26 + $0x40] sm:$0xf0] }
  0xad   : > { %v703_v29 = vsel %vm679_vm3, %v698_v28, 0.0  ;;  %950 = vmatpush.bf16.msra.mxu1 %v2831_v23  ;;  %v3209_v28 = vld [vmem:[%s3659_s26 + $0x20] sm:$0xf0] }
  0xae   : > { %v3736_v25 = vsub.f32 %v3722_v9, %v691_v24  ;;  %v2835_v24 = vor.u32 %v3213_v22, %v2834_v21 }
  0xb0   : > { %v697_v27 = vmul.f32 %v3736_v25, %v3736_v25  ;;  %968 = vmatpush.bf16.msra.mxu2 %v2835_v24 }
  0xb2   : > { %701 = vadd.xlane.f32.xlu2 %v697_v27  ;;  %v2814_v27 = vld [vmem:[%s3659_s26 + $0x18] sm:$0xf] }
  0xb3   : > { %v2815_v30 = vor.u32 %v3209_v28, %v2814_v27 }
  0xb4   : > { %969 = vmatpush.bf16.msra.mxu2 %v2823_v35 }
  0xb5   : > { %933 = vmatpush.bf16.msra.mxu0 %v2815_v30 }
  0xb8   : > { %970 = vmatpush.bf16.msra.mxu2 %v2811_v47 }
  0xb9   : > { %934 = vmatpush.bf16.msra.mxu0 %v2803_v41 }
  0xba   : > { %704 = vadd.xlane.f32.xlu2 %v703_v29  ;;  %v3208_v29 = vld [vmem:[%s3659_s26 + $0x1c] sm:$0xf]  ;;  %s4489_s26 = sld [smem:[#allocation9_spill]] }
  0xbb   : > { %v2819_v34 = vor.u32 %v3208_v29, %v2816_v31  ;;  %v791_v29 = vld [vmem:[%s3669_s22] sm:$0x7]  ;;  %s3531_s22 = smov 96  }
  0xbc   : > { %v793_v32 = vperm.slane %v791_v29, 0  ;;  %v794_v33 = vperm.slane %v791_v29, 1 }
  0xbd   : > { %951 = vmatpush.bf16.msra.mxu1 %v2819_v34 }
  0xc0   : > { %s4490_s25 = scalar_lea.vmem %s4489_s26, %s3640_s15 }
  0xc1   : > { %952 = vmatpush.bf16.msra.mxu1 %v2807_v46  ;;  %v3375_v14 = vld [vmem:[%s4490_s25] ss:$0 sm:$0xff] }
 0x11d   : > { %v700_v36 = vpop.xlane.xlu1 %699 }
 0x11e   : > { %v706_v37 = vmul.f32 %v700_v36, %v3725_v16 }
 0x120   : > { %v709_v45 = vadd.f32 1e-06, %v706_v37 }
 0x122   : > { %3382 = vrsqrt.f32 %v709_v45  ;;  %vm718_vm6 = vweird.f32 %v709_v45 }
 0x125   : > { %v702_v48 = vpop.xlane.xlu2 %701 }
 0x126   : > { %v707_v49 = vmul.f32 %v702_v48, %v3725_v16 }
 0x128   : > { %v3383_v50 = vpop.eup %3382  ;;  %v710_v51 = vadd.f32 1e-06, %v707_v49 }
 0x129   : > { %v713_v52 = vmul.f32 %v3383_v50, %v709_v45  ;;  %vm719_vm5 = vweird.f32 %v3383_v50 }
 0x12a   : > { %3384 = vrsqrt.f32 %v710_v51  ;;  %vm720_vm7 = vmor %vm718_vm6, %vm719_vm5  ;;  %vm728_vm9 = vweird.f32 %v710_v51 }
 0x12b   : > { %v714_v53 = vmul.f32 %v3383_v50, %v713_v52 }
 0x12d   : > { %v715_v54 = vmul.f32 0.5, %v714_v53  ;;  %v705_v55 = vpop.xlane.xlu2 %704 }
 0x12e   : > { %v708_v56 = vmul.f32 %v705_v55, %v3725_v16 }
 0x12f   : > { %v716_v57 = vsub.f32 1.5, %v715_v54 }
 0x130   : > { %v3385_v58 = vpop.eup %3384  ;;  %v711_v59 = vadd.f32 1e-06, %v708_v56  ;;  %v795_v56 = vperm.slane %v791_v29, 2 }
 0x131   : > { %v717_v60 = vmul.f32 %v3383_v50, %v716_v57  ;;  %v723_v61 = vmul.f32 %v3385_v58, %v710_v51  ;;  %vm729_vm8 = vweird.f32 %v3385_v58 }
 0x132   : > { %3386 = vrsqrt.f32 %v711_v59  ;;  %vm730_vm10 = vmor %vm728_vm9, %vm729_vm8  ;;  %vm738_vm11 = vweird.f32 %v711_v59 }
 0x133   : > { %v724_v62 = vmul.f32 %v3385_v58, %v723_v61  ;;  %v721_v63 = vsel %vm720_vm7, %v3383_v50, %v717_v60 }
 0x134   : > { %v742_v3 = vmul.f32 %v721_v63, %v3729_v19 }
 0x135   : > { %v725_v0 = vmul.f32 0.5, %v724_v62 }
 0x136   : > { %v748_v13 = vmul.f32 %v3374_v4, %v742_v3 }
 0x137   : > { %v726_v1 = vsub.f32 1.5, %v725_v0 }
 0x138   : > { %v3387_v2 = vpop.eup %3386  ;;  %v754_v18 = vadd.f32 %v3375_v14, %v748_v13 }
 0x139   : > { %v727_v5 = vmul.f32 %v3385_v58, %v726_v1  ;;  %v733_v8 = vmul.f32 %v3387_v2, %v711_v59  ;;  %vm739_vm12 = vweird.f32 %v3387_v2 }
 0x13a   : > { %vm740_vm13 = vmor %vm738_vm11, %vm739_vm12 }
 0x13b   : > { %v731_v10 = vsel %vm730_vm10, %v3385_v58, %v727_v5  ;;  %v734_v11 = vmul.f32 %v3387_v2, %v733_v8  ;;  %v3533_v8 = vmov 0  }
 0x13c   : > { %v743_v12 = vmul.f32 %v731_v10, %v3736_v25  ;;  %v3820_v10 = vsel %vm679_vm3, 65535, %v3533_v8 }
 0x13d   : > { %v735_v19 = vmul.f32 0.5, %v734_v11 }
 0x13e   : > { %v749_v15 = vmul.f32 %v3374_v4, %v743_v12 }
 0x13f   : > { %v736_v17 = vsub.f32 1.5, %v735_v19 }
 0x140   : > { %v755_v20 = vadd.f32 %v3375_v14, %v749_v15 }
 0x141   : > { %v737_v21 = vmul.f32 %v3387_v2, %v736_v17 }
 0x142   : > { %v757_v22 = vpack.c.bf16 %v755_v20, %v754_v18 }
 0x143   : > { %v741_v23 = vsel %vm740_vm13, %v3387_v2, %v737_v21 }
 0x144   : > { %935 = vmatmul.bf16.vlgmr.msra.gmra.mxu0 %v757_v22  ;;  %953 = vmatmul.bf16.vlgmr.msra.gmra.mxu1 %v757_v22  ;;  %v744_v25 = vmul.f32 %v741_v23, %v3739_v26 }
 0x145   : > { %971 = vmatmul.bf16.vlgmr.msra.gmra.mxu2 %v757_v22 }
 0x146   : > { %v750_v24 = vmul.f32 %v3374_v4, %v744_v25 }
 0x148   : > { %v756_v27 = vadd.f32 %v3375_v14, %v750_v24 }
 0x14a   : > { %v758_v28 = vpack.c.bf16 %v756_v27, %v756_v27 }
 0x154   : > { %940 = vmatmul.bf16.gmra.mxu0 %v758_v28  ;;  %958 = vmatmul.bf16.gmra.mxu1 %v758_v28 }
 0x155   : > { %976 = vmatmul.bf16.gmra.mxu2 %v758_v28 }
 0x1c1   : > { %v936_v30 = vpop.f32.mrf.mxu0  ;;  %v954_v31 = vpop.f32.mrf.mxu1 }
 0x1c2   : > { %v937_v34 = vadd.f32 %v936_v30, %v793_v32  ;;  %v955_v35 = vadd.f32 %v954_v31, %v794_v33 }
 0x1c4   : > { %v981_v39 = vpack.c.bf16 %v955_v35, %v937_v34 }
 0x1c6   : > { %v990_v42 = vunpack.c.l.b16 %v981_v39  ;;  %v995_v43 = vunpack.c.h.b16 %v981_v39 }
 0x1c8   : > { %v972_v36 = vpop.f32.mrf.mxu2 }
 0x1c9   : > { %v938_v37 = vpop.f32.mrf.mxu0  ;;  %v956_v38 = vpop.f32.mrf.mxu1  ;;  %v973_v2 = vadd.f32 %v972_v36, %v795_v56 }
 0x1ca   : > { %v939_v40 = vadd.f32 %v938_v37, %v793_v32  ;;  %v957_v41 = vadd.f32 %v956_v38, %v794_v33 }
 0x1cb   : > { %v982_v11 = vpack.c.bf16 %v973_v2, %v973_v2 }
 0x1cc   : > { %v983_v26 = vpack.c.bf16 %v957_v41, %v939_v40 }
 0x1cd   : > { %v1074_v15 = vunpack.c.l.b16 %v982_v11 }
 0x1ce   : > { %v991_v44 = vunpack.c.l.b16 %v983_v26  ;;  %v996_v45 = vunpack.c.h.b16 %v983_v26 }
 0x1d0   : > { %v993_v46 = vpack.c.b16 %v991_v44, %v990_v42  ;;  %v998_v47 = vpack.c.b16 %v996_v45, %v995_v43  ;;  %v974_v48 = vpop.f32.mrf.mxu2 }
 0x1d1   : > { %v941_v49 = vpop.f32.mrf.mxu0  ;;  %v959_v50 = vpop.f32.mrf.mxu1  ;;  %v975_v63 = vadd.f32 %v974_v48, %v795_v56 }
 0x1d2   : > { %v942_v51 = vadd.f32 %v941_v49, %v793_v32  ;;  %v960_v52 = vadd.f32 %v959_v50, %v794_v33  ;;  %1113 = vrot.lane.b32.xlu1 %v998_v47, %s3531_s22  ;;  %1109 = vrot.lane.b32.xlu2 %v993_v46, %s3531_s22  ;;  %v1008_v14 = vsel %vm1000_vm14, %v998_v47, 0 }
 0x1d3   : > { %v984_v4 = vpack.c.bf16 %v975_v63, %v975_v63 }
 0x1d4   : > { %v985_v53 = vpack.c.bf16 %v960_v52, %v942_v51 }
 0x1d5   : > { %v1075_v13 = vunpack.c.l.b16 %v984_v4 }
 0x1d6   : > { %v992_v54 = vunpack.c.l.b16 %v985_v53  ;;  %v997_v55 = vunpack.c.h.b16 %v985_v53 }
 0x1d7   : > { %v3828_v17 = vpack.c.b16 %v1075_v13, %v1074_v15 }
 0x1d8   : > { %v994_v57 = vpack.c.b16 %v992_v54, %v992_v54  ;;  %v999_v58 = vpack.c.b16 %v997_v55, %v997_v55  ;;  %v977_v59 = vpop.f32.mrf.mxu2 }
 0x1d9   : > { %v978_v60 = vadd.f32 %v977_v59, %v795_v56  ;;  %v943_v61 = vpop.f32.mrf.mxu0  ;;  %v961_v62 = vpop.f32.mrf.mxu1 }
 0x1da   : > { %1221 = vrot.lane.b32.xlu2 %v998_v47, %s3532_s13  ;;  %1115 = vrot.lane.b32.xlu0 %v999_v58, %s3531_s22  ;;  %v1011_v0 = vsel %vm1000_vm14, %v999_v58, 0 }
 0x1db   : > { %v986_v1 = vpack.c.bf16 %v978_v60, %v978_v60  ;;  %1111 = vrot.lane.b32.xlu1 %v994_v57, %s3531_s22  ;;  %1019 = vmatpush.bf16.xpose.msra.mxu3 %v1011_v0 }
 0x1dd   : > { %v1076_v3 = vunpack.c.l.b16 %v986_v1 }
 0x1df   : > { %v3817_v5 = vpack.c.b16 %v1076_v3, %v1076_v3 }
 0x1e0   : > { %v979_v12 = vpop.f32.mrf.mxu2 }
 0x1e1   : > { %v1089_v19 = vand.u32 %v3820_v10, %v3817_v5 }
 0x1e2   : > { %1217 = vrot.lane.b32.xlu2 %v993_v46, %s3532_s13  ;;  %1223 = vrot.lane.b32.xlu0 %v999_v58, %s3532_s13 }
 0x1e3   : > { %1329 = vrot.lane.b32.xlu1 %v998_v47, %s3534_s27  ;;  %1020 = vmatpush.bf16.xpose.msra.mxu3 %v1008_v14 }
 0x1ea   : > { %1331 = vrot.lane.b32.xlu0 %v999_v58, %s3534_s27  ;;  %2896 = vmatmul.msk.bf16.vlgmr.msra.gmra.mxu3 %vm1000_vm14, %v993_v46 }
 0x1eb   : > { %1097 = vmatpush.bf16.msrb.mxu3 %v1089_v19  ;;  %1219 = vrot.lane.b32.xlu2 %v994_v57, %s3532_s13 }
 0x1ec   : > { %1327 = vrot.lane.b32.xlu1 %v994_v57, %s3534_s27 }
 0x1ef   : > { %1098 = vmatpush.bf16.msrb.mxu3 %v3828_v17 }
 0x1f2   : > { %1325 = vrot.lane.b32.xlu0 %v993_v46, %s3534_s27 }
 0x1fa   : > { %2897 = vmatmul.msk.bf16.gmra.mxu3 %vm1000_vm14, %v994_v57 }
 0x22c   : > { %v1110_v22 = vpop.permute.xlu2 %1109 }
 0x234   : > { %v1222_v28 = vpop.permute.xlu2 %1221 }
 0x235   : > { %v1232_v31 = vsel %vm1000_vm14, %v1222_v28, 0 }
 0x23c   : > { %v1218_v33 = vpop.permute.xlu2 %1217 }
 0x244   : > { %v1114_v21 = vpop.permute.xlu1 %1113 }
 0x245   : > { %v1124_v25 = vsel %vm1000_vm14, %v1114_v21, 0  ;;  %v1220_v38 = vpop.permute.xlu2 %1219 }
 0x24c   : > { %v1116_v18 = vpop.permute.xlu0 %1115 }
 0x24d   : > { %v1127_v20 = vsel %vm1000_vm14, %v1116_v18, 0  ;;  %v1112_v27 = vpop.permute.xlu1 %1111 }
 0x24e   : > { %1135 = vmatpush.bf16.xpose.msrb.mxu0 %v1127_v20 }
 0x254   : > { %v1224_v23 = vpop.permute.xlu0 %1223 }
 0x255   : > { %v1235_v24 = vsel %vm1000_vm14, %v1224_v23, 0  ;;  %v1330_v32 = vpop.permute.xlu1 %1329 }
 0x256   : > { %1136 = vmatpush.bf16.xpose.msrb.mxu0 %v1124_v25  ;;  %1243 = vmatpush.bf16.xpose.msrb.mxu2 %v1235_v24  ;;  %v1340_v34 = vsel %vm1000_vm14, %v1330_v32, 0 }
 0x25c   : > { %v1332_v29 = vpop.permute.xlu0 %1331 }
 0x25d   : > { %v1343_v30 = vsel %vm1000_vm14, %v1332_v29, 0  ;;  %2900 = vmatmul.msk.bf16.vlgmr.msrb.gmra.mxu0 %vm1000_vm14, %v1110_v22 }
 0x25e   : > { %1244 = vmatpush.bf16.xpose.msrb.mxu2 %v1232_v31  ;;  %1351 = vmatpush.bf16.xpose.msra.mxu0 %v1343_v30  ;;  %v1328_v46 = vpop.permute.xlu1 %1327 }
 0x264   : > { %v1326_v26 = vpop.permute.xlu0 %1325 }
 0x265   : > { %2904 = vmatmul.msk.bf16.vlgmr.msrb.gmra.mxu2 %vm1000_vm14, %v1218_v33 }
 0x266   : > { %1352 = vmatpush.bf16.xpose.msra.mxu0 %v1340_v34 }
 0x26d   : > { %v1022_v35 = vpop.f32.mrf.mxu3  ;;  %2901 = vmatmul.msk.bf16.gmra.mxu0 %vm1000_vm14, %v1112_v27 }
 0x26e   : > { %v1031_v36 = vmul.f32 0.17677669, %v1022_v35 }
 0x270   : > { %v1035_v37 = vsel %vm1034_vm15, %v1031_v36, -inf }
 0x271   : > { %1036 = vmax.xlane.f32.xlu0 %v1035_v37 }
 0x275   : > { %v1024_v39 = vpop.f32.mrf.mxu3  ;;  %2905 = vmatmul.msk.bf16.gmra.mxu2 %vm1000_vm14, %v1220_v38 }
 0x276   : > { %v1032_v40 = vmul.f32 0.17677669, %v1024_v39 }
 0x278   : > { %v1038_v41 = vsel %vm1034_vm15, %v1032_v40, -inf }
 0x279   : > { %1039 = vmax.xlane.f32.xlu2 %v1038_v41 }
 0x27d   : > { %v1027_v42 = vpop.f32.mrf.mxu3  ;;  %2908 = vmatmul.msk.bf16.vlgmr.msra.gmra.mxu0 %vm1000_vm14, %v1326_v26 }
 0x27e   : > { %v1033_v43 = vmul.f32 0.17677669, %v1027_v42 }
 0x280   : > { %v1042_v44 = vsel %vm1041_vm0, %v1033_v43, -inf }
 0x281   : > { %1043 = vmax.xlane.f32.xlu2 %v1042_v44 }
 0x285   : > { %v1029_v45 = vpop.f32.mrf.mxu3 }
 0x28d   : > { %2909 = vmatmul.msk.bf16.gmra.mxu0 %vm1000_vm14, %v1328_v46 }
 0x299   : > { %1185 = vrot.lane.b32.xlu2 %v3828_v17, %s3531_s22 }
 0x2da   : > { %v1138_v47 = vpop.f32.mrf.mxu0 }
 0x2db   : > { %v1147_v48 = vmul.f32 0.17677669, %v1138_v47 }
 0x2dd   : > { %v1150_v49 = vsel %vm1034_vm15, %v1147_v48, -inf }
 0x2de   : > { %1151 = vmax.xlane.f32.xlu1 %v1150_v49 }
 0x2e2   : > { %v1140_v50 = vpop.f32.mrf.mxu0 }
 0x2e3   : > { %v3859_v59 = vmul.f32 0.17677669, %v1140_v50 }
 0x2e4   : > { %v1037_v51 = vpop.xlane.xlu0 %1036 }
 0x2e5   : > { %v1045_v54 = vsub.f32 %v1031_v36, %v1037_v51  ;;  %v1153_v63 = vsel %vm1034_vm15, %v3859_v59, -inf }
 0x2e7   : > { %v1048_v58 = vmul.f32 1.442695, %v1045_v54 }
 0x2e8   : > { %v1246_v52 = vpop.f32.mrf.mxu2 }
 0x2e9   : > { %v3855_v53 = vmul.f32 0.17677669, %v1246_v52  ;;  %3388 = vpow2.f32 %v1048_v58 }
 0x2ea   : > { %v1143_v55 = vpop.f32.mrf.mxu0 }
 0x2eb   : > { %v1258_v56 = vsel %vm1034_vm15, %v3855_v53, -inf  ;;  %v1149_v28 = vmul.f32 0.17677669, %v1143_v55 }
 0x2ec   : > { %1259 = vmax.xlane.f32.xlu0 %v1258_v56  ;;  %v1040_v57 = vpop.xlane.xlu2 %1039 }
 0x2ed   : > { %v1046_v24 = vsub.f32 %v1032_v40, %v1040_v57  ;;  %v1156_v29 = vsel %vm1041_vm0, %v1149_v28, -inf }
 0x2ef   : > { %v3869_v4 = vpop.eup %3388  ;;  %v1050_v27 = vmul.f32 1.442695, %v1046_v24 }
 0x2f0   : > { %v1248_v60 = vpop.f32.mrf.mxu2  ;;  %v1054_v13 = vsel %vm1034_vm15, %v3869_v4, 0.0 }
 0x2f1   : > { %v3861_v61 = vmul.f32 0.17677669, %v1248_v60 }
 0x2f2   : > { %v1145_v62 = vpop.f32.mrf.mxu0 }
 0x2f3   : > { %v1261_v0 = vsel %vm1034_vm15, %v3861_v61, -inf }
 0x2f4   : > { %1154 = vmax.xlane.f32.xlu0 %v1153_v63  ;;  %1262 = vmax.xlane.f32.xlu2 %v1261_v0  ;;  %v1044_v1 = vpop.xlane.xlu2 %1043 }
 0x2f5   : > { %v1047_v2 = vsub.f32 %v1033_v43, %v1044_v1 }
 0x2f7   : > { %v1052_v3 = vmul.f32 1.442695, %v1047_v2  ;;  %1187 = vrot.lane.b32.xlu1 %v3817_v5, %s3531_s22 }
 0x2f8   : > { %v1251_v8 = vpop.f32.mrf.mxu2 }
 0x2f9   : > { %v3871_v11 = vmul.f32 0.17677669, %v1251_v8  ;;  %3390 = vpow2.f32 %v1052_v3 }
 0x2fa   : > { %v1354_v12 = vpop.f32.mrf.mxu0  ;;  %3392 = vpow2.f32 %v1050_v27 }
 0x2fb   : > { %v1264_v14 = vsel %vm1041_vm0, %v3871_v11, -inf  ;;  %v3887_v32 = vmul.f32 0.17677669, %v1354_v12 }
 0x2fc   : > { %1055 = vadd.xlane.f32.xlu2 %v1054_v13  ;;  %1265 = vmax.xlane.f32.xlu0 %v1264_v14  ;;  %v1186_v41 = vpop.permute.xlu2 %1185 }
 0x2fd   : > { %v1366_v33 = vsel %vm1034_vm15, %v3887_v32, -inf }
 0x2ff   : > { %v3877_v19 = vpop.eup %3390 }
 0x300   : > { %v1253_v15 = vpop.f32.mrf.mxu2  ;;  %v1060_v20 = vsel %vm1041_vm0, %v3877_v19, 0.0  ;;  %v3883_v30 = vpop.eup %3392 }
 0x301   : > { %v1057_v31 = vsel %vm1034_vm15, %v3883_v30, 0.0 }
 0x302   : > { %v1356_v18 = vpop.f32.mrf.mxu0 }
 0x303   : > { %v1364_v21 = vmul.f32 0.17677669, %v1356_v18 }
 0x304   : > { %1061 = vadd.xlane.f32.xlu0 %v1060_v20 }
 0x305   : > { %v1369_v23 = vsel %vm1034_vm15, %v1364_v21, -inf }
 0x30a   : > { %v1359_v22 = vpop.f32.mrf.mxu0 }
 0x30b   : > { %v3891_v34 = vmul.f32 0.17677669, %v1359_v22 }
 0x30c   : > { %1370 = vmax.xlane.f32.xlu0 %v1369_v23 }
 0x30d   : > { %v1372_v35 = vsel %vm1041_vm0, %v3891_v34, -inf }
 0x312   : > { %v1361_v25 = vpop.f32.mrf.mxu0 }
 0x321   : > { %1157 = vmax.xlane.f32.xlu1 %v1156_v29 }
 0x329   : > { %1058 = vadd.xlane.f32.xlu1 %v1057_v31 }
 0x331   : > { %1367 = vmax.xlane.f32.xlu1 %v1366_v33 }
 0x339   : > { %1373 = vmax.xlane.f32.xlu1 %v1372_v35 }
 0x351   : > { %v1152_v36 = vpop.xlane.xlu1 %1151 }
 0x352   : > { %v1159_v37 = vsub.f32 %v1147_v48, %v1152_v36 }
 0x354   : > { %v1162_v38 = vmul.f32 1.442695, %v1159_v37 }
 0x356   : > { %3394 = vpow2.f32 %v1162_v38 }
 0x35c   : > { %v3895_v39 = vpop.eup %3394 }
 0x35d   : > { %v1168_v40 = vsel %vm1034_vm15, %v3895_v39, 0.0 }
 0x35e   : > { %1169 = vadd.xlane.f32.xlu0 %v1168_v40 }
 0x35f   : > { %v1260_v26 = vpop.xlane.xlu0 %1259 }
 0x360   : > { %v1267_v42 = vsub.f32 %v3855_v53, %v1260_v26 }
 0x362   : > { %v1270_v43 = vmul.f32 1.442695, %v1267_v42 }
 0x364   : > { %3396 = vpow2.f32 %v1270_v43 }
 0x367   : > { %v1155_v44 = vpop.xlane.xlu0 %1154  ;;  %v1263_v45 = vpop.xlane.xlu2 %1262 }
 0x368   : > { %v1160_v46 = vsub.f32 %v3859_v59, %v1155_v44  ;;  %v1268_v50 = vsub.f32 %v3861_v61, %v1263_v45 }
 0x369   : > { %v1188_v47 = vpop.permute.xlu1 %1187 }
 0x36a   : > { %v3901_v48 = vpop.eup %3396  ;;  %v1164_v49 = vmul.f32 1.442695, %v1160_v46  ;;  %v1197_v51 = vand.u32 %v1188_v47, %v3820_v10  ;;  %v1272_v53 = vmul.f32 1.442695, %v1268_v50 }
 0x36b   : > { %v1276_v52 = vsel %vm1034_vm15, %v3901_v48, 0.0 }
 0x36c   : > { %3398 = vpow2.f32 %v1164_v49  ;;  %1205 = vmatpush.bf16.msrb.mxu1 %v1197_v51  ;;  %1277 = vadd.xlane.f32.xlu0 %v1276_v52 }
 0x36d   : > { %3400 = vpow2.f32 %v1272_v53 }
 0x36f   : > { %v1266_v54 = vpop.xlane.xlu0 %1265  ;;  %v1056_v8 = vpop.xlane.xlu2 %1055 }
 0x370   : > { %1206 = vmatpush.bf16.msrb.mxu1 %v1186_v41  ;;  %v1269_v33 = vsub.f32 %v3871_v11, %v1266_v54 }
 0x372   : > { %v3907_v55 = vpop.eup %3398 }
 0x373   : > { %v1171_v56 = vsel %vm1034_vm15, %v3907_v55, 0.0  ;;  %v3911_v58 = vpop.eup %3400 }
 0x374   : > { %1172 = vadd.xlane.f32.xlu2 %v1171_v56  ;;  %v1279_v59 = vsel %vm1034_vm15, %v3911_v58, 0.0 }
 0x377   : > { %v1062_v57 = vpop.xlane.xlu0 %1061 }
 0x37c   : > { %1280 = vadd.xlane.f32.xlu2 %v1279_v59 }
 0x37f   : > { %v1371_v60 = vpop.xlane.xlu0 %1370 }
 0x380   : > { %v1376_v61 = vsub.f32 %v1364_v21, %v1371_v60 }
 0x382   : > { %v1380_v62 = vmul.f32 1.442695, %v1376_v61 }
 0x384   : > { %3402 = vpow2.f32 %v1380_v62 }
 0x38a   : > { %v3915_v63 = vpop.eup %3402 }
 0x38b   : > { %v1387_v0 = vsel %vm1034_vm15, %v3915_v63, 0.0 }
 0x38c   : > { %1388 = vadd.xlane.f32.xlu1 %v1387_v0 }
 0x394   : > { %v1158_v1 = vpop.xlane.xlu1 %1157  ;;  %1293 = vrot.lane.b32.xlu2 %v3828_v17, %s3532_s13 }
 0x395   : > { %v1161_v2 = vsub.f32 %v1149_v28, %v1158_v1 }
 0x397   : > { %v1166_v3 = vmul.f32 1.442695, %v1161_v2 }
 0x399   : > { %3404 = vpow2.f32 %v1166_v3 }
 0x39a   : > { %3406 = vrcp.f32 %v1056_v8 }
 0x39c   : > { %v1059_v12 = vpop.xlane.xlu1 %1058  ;;  %1401 = vrot.lane.b32.xlu2 %v3828_v17, %s3534_s27 }
 0x39d   : > { %3408 = vrcp.f32 %v1059_v12 }
 0x39e   : > { %3410 = vrcp.f32 %v1062_v57 }
 0x39f   : > { %v3405_v13 = vpop.eup %3404 }
 0x3a0   : > { %v1174_v14 = vsel %vm1041_vm0, %v3405_v13, 0.0  ;;  %v3407_v15 = vpop.eup %3406 }
 0x3a1   : > { %1175 = vadd.xlane.f32.xlu0 %v1174_v14  ;;  %v1066_v20 = vmul.f32 %v3407_v15, %v3869_v4 }
 0x3a3   : > { %v3409_v18 = vpop.eup %3408 }
 0x3a4   : > { %v1067_v21 = vmul.f32 %v3409_v18, %v3883_v30  ;;  %v3411_v23 = vpop.eup %3410  ;;  %v1368_v17 = vpop.xlane.xlu1 %1367 }
 0x3a5   : > { %1403 = vrot.lane.b32.xlu1 %v3817_v5, %s3534_s27  ;;  %v1068_v25 = vmul.f32 %v3411_v23, %v3877_v19  ;;  %v1375_v30 = vsub.f32 %v3887_v32, %v1368_v17 }
 0x3a6   : > { %v1069_v22 = vpack.c.bf16 %v1067_v21, %v1066_v20 }
 0x3a7   : > { %v1070_v24 = vpack.c.bf16 %v1068_v25, %v1068_v25  ;;  %v1378_v19 = vmul.f32 1.442695, %v1375_v30 }
 0x3a8   : > { %2898 = vmatmul.msk.bf16.vlgmr.msrb.gmra.mxu3 %vm1034_vm15, %v1069_v22 }
 0x3ac   : > { %v1374_v4 = vpop.xlane.xlu1 %1373 }
 0x3ad   : > { %v1377_v27 = vsub.f32 %v3891_v34, %v1374_v4 }
 0x3af   : > { %v1382_v28 = vmul.f32 1.442695, %v1377_v27 }
 0x3b1   : > { %3412 = vpow2.f32 %v1382_v28 }
 0x3b2   : > { %3414 = vpow2.f32 %v1378_v19 }
 0x3b5   : > { %1295 = vrot.lane.b32.xlu0 %v3817_v5, %s3532_s13  ;;  %v1274_v5 = vmul.f32 1.442695, %v1269_v33  ;;  %v3234_v33 = vld [vmem:[%s3664_s18 + $0x28] sm:$0xff] }
 0x3b7   : > { %v3934_v29 = vpop.eup %3412  ;;  %3416 = vpow2.f32 %v1274_v5 }
 0x3b8   : > { %2899 = vmatmul.msk.bf16.gmra.mxu3 %vm1034_vm15, %v1070_v24  ;;  %v1390_v31 = vsel %vm1041_vm0, %v3934_v29, 0.0  ;;  %v3415_v35 = vpop.eup %3414 }
 0x3b9   : > { %v1384_v36 = vsel %vm1034_vm15, %v3415_v35, 0.0 }
 0x3bd   : > { %v3417_v34 = vpop.eup %3416 }
 0x3be   : > { %v1282_v38 = vsel %vm1041_vm0, %v3417_v34, 0.0 }
 0x3cf   : > { %1391 = vadd.xlane.f32.xlu1 %v1390_v31  ;;  %v3236_v31 = vld [vmem:[%s3664_s18 + $0x38] sm:$0xff] }
 0x3d0   : > { %1546 = vmatpush.bf16.msra.mxu2 %v3236_v31  ;;  %v3058_v31 = vld [vmem:[%s3688_s20 + $0xe0] sm:$0xf] }
 0x3d1   : > { %v1170_v37 = vpop.xlane.xlu0 %1169 }
 0x3d2   : > { %3418 = vrcp.f32 %v1170_v37 }
 0x3d8   : > { %v3419_v40 = vpop.eup %3418 }
 0x3d9   : > { %v1180_v26 = vmul.f32 %v3419_v40, %v3895_v39  ;;  %v3232_v40 = vld [vmem:[%s3664_s18 + $0x18] sm:$0xff] }
 0x3df   : > { %1385 = vadd.xlane.f32.xlu0 %v1384_v36  ;;  %v1278_v44 = vpop.xlane.xlu0 %1277 }
 0x3e7   : > { %1283 = vadd.xlane.f32.xlu0 %v1282_v38  ;;  %v1173_v32 = vpop.xlane.xlu2 %1172 }
 0x3e8   : > { %3420 = vrcp.f32 %v1173_v32  ;;  %v3233_v32 = vld [vmem:[%s3664_s18 + $0x20] sm:$0xff] }
 0x3ee   : > { %v3421_v41 = vpop.eup %3420 }
 0x3ef   : > { %v1181_v11 = vmul.f32 %v3421_v41, %v3907_v55  ;;  %v1281_v43 = vpop.xlane.xlu2 %1280  ;;  %v3231_v41 = vld [vmem:[%s3664_s18 + $0x10] sm:$0xff] }
 0x3f1   : > { %v1183_v42 = vpack.c.bf16 %v1181_v11, %v1180_v26  ;;  %v3230_v26 = vld [vmem:[%s3664_s18 + $0x8] sm:$0xff]  ;;  %v3229_v11 = vld [vmem:[%s3664_s18] sm:$0xff] }
 0x3f3   : > { %2902 = vmatmul.msk.bf16.vlgmr.msrb.gmra.mxu1 %vm1034_vm15, %v1183_v42 }
 0x3f7   : > { %v1294_v46 = vpop.permute.xlu2 %1293 }
 0x3ff   : > { %v1389_v45 = vpop.xlane.xlu1 %1388  ;;  %v1402_v53 = vpop.permute.xlu2 %1401 }
 0x414   : > { %v1176_v47 = vpop.xlane.xlu0 %1175 }
 0x415   : > { %3422 = vrcp.f32 %v1176_v47 }
 0x416   : > { %3424 = vrcp.f32 %v1281_v43 }
 0x417   : > { %v1404_v49 = vpop.permute.xlu1 %1403  ;;  %3426 = vrcp.f32 %v1278_v44 }
 0x418   : > { %v1413_v50 = vand.u32 %v1404_v49, %v3820_v10  ;;  %3428 = vrcp.f32 %v1389_v45 }
 0x41a   : > { %1421 = vmatpush.bf16.msra.mxu1 %v1413_v50 }
 0x41b   : > { %v3423_v51 = vpop.eup %3422 }
 0x41c   : > { %v1182_v52 = vmul.f32 %v3423_v51, %v3405_v13  ;;  %v3425_v55 = vpop.eup %3424 }
 0x41d   : > { %v3427_v57 = vpop.eup %3426  ;;  %v1289_v59 = vmul.f32 %v3425_v55, %v3911_v58 }
 0x41e   : > { %1422 = vmatpush.bf16.msra.mxu1 %v1402_v53  ;;  %v1184_v39 = vpack.c.bf16 %v1182_v52, %v1182_v52  ;;  %v1288_v61 = vmul.f32 %v3427_v57, %v3901_v48 }
 0x420   : > { %2903 = vmatmul.msk.bf16.gmra.mxu1 %vm1034_vm15, %v1184_v39  ;;  %v1291_v62 = vpack.c.bf16 %v1289_v59, %v1288_v61 }
 0x427   : > { %v1296_v54 = vpop.permute.xlu0 %1295 }
 0x428   : > { %v1305_v56 = vand.u32 %v1296_v54, %v3820_v10  ;;  %v3429_v10 = vpop.eup %3428 }
 0x429   : > { %v1397_v58 = vmul.f32 %v3429_v10, %v3915_v63  ;;  %v3376_v10 = vld [vmem:[%s4491_s21] ss:$0 sm:$0xff] }
 0x42a   : > { %1313 = vmatpush.bf16.msra.mxu3 %v1305_v56 }
 0x42b   : > { %v3949_v60 = vpop.f32.mrf.mxu3 }
 0x42e   : > { %1314 = vmatpush.bf16.msra.mxu3 %v1294_v46 }
 0x431   : > { %2906 = vmatmul.msk.bf16.vlgmr.msra.gmra.mxu3 %vm1034_vm15, %v1291_v62 }
 0x433   : > { %v3953_v0 = vpop.f32.mrf.mxu3 }
 0x43b   : > { %v3955_v1 = vpop.f32.mrf.mxu3 }
 0x442   : > { %v1392_v48 = vpop.xlane.xlu1 %1391 }
 0x443   : > { %v1107_v2 = vpop.f32.mrf.mxu3 }
 0x452   : > { %v1386_v3 = vpop.xlane.xlu0 %1385 }
 0x453   : > { %3430 = vrcp.f32 %v1386_v3 }
 0x459   : > { %v3431_v8 = vpop.eup %3430 }
 0x45a   : > { %v1396_v12 = vmul.f32 %v3431_v8, %v3415_v35  ;;  %v1284_v13 = vpop.xlane.xlu0 %1283 }
 0x45b   : > { %3432 = vrcp.f32 %v1284_v13 }
 0x45c   : > { %v1399_v14 = vpack.c.bf16 %v1397_v58, %v1396_v12  ;;  %3434 = vrcp.f32 %v1392_v48 }
 0x45e   : > { %2910 = vmatmul.msk.bf16.vlgmr.msra.gmra.mxu1 %vm1034_vm15, %v1399_v14 }
 0x461   : > { %v3433_v15 = vpop.eup %3432 }
 0x462   : > { %v1290_v18 = vmul.f32 %v3433_v15, %v3417_v34  ;;  %v3435_v21 = vpop.eup %3434 }
 0x463   : > { %v1398_v22 = vmul.f32 %v3435_v21, %v3934_v29  ;;  %v3235_v29 = vld [vmem:[%s3664_s18 + $0x30] sm:$0xff] }
 0x464   : > { %v1292_v20 = vpack.c.bf16 %v1290_v18, %v1290_v18  ;;  %1547 = vmatpush.bf16.msra.mxu2 %v3235_v29  ;;  %v3267_v29 = vld [vmem:[%s3688_s20 + $0xec] sm:$0xf0] }
 0x465   : > { %v1400_v23 = vpack.c.bf16 %v1398_v22, %v1398_v22 }
 0x466   : > { %2907 = vmatmul.msk.bf16.gmra.mxu3 %vm1034_vm15, %v1292_v20 }
 0x468   : > { %1548 = vmatpush.bf16.msra.mxu2 %v3234_v33  ;;  %v3059_v33 = vor.u32 %v3267_v29, %v3058_v31  ;;  %v3250_v31 = vld [vmem:[%s3688_s20 + $0x6c] sm:$0xf]  ;;  %v3004_v29 = vld [vmem:[%s3688_s20 + $0x78] sm:$0xf0] }
 0x46a   : > { %1854 = vmatpush.bf16.msrb.mxu3 %v3059_v33  ;;  %v2978_v33 = vld [vmem:[%s3688_s20 + $0x40] sm:$0xf] }
 0x46c   : > { %1549 = vmatpush.bf16.msra.mxu2 %v3233_v32  ;;  %v3068_v32 = vld [vmem:[%s3688_s20 + $0xf8] sm:$0xf0] }
 0x46e   : > { %2911 = vmatmul.msk.bf16.gmra.mxu1 %vm1034_vm15, %v1400_v23 }
 0x470   : > { %v1208_v63 = vpop.f32.mrf.mxu1  ;;  %1550 = vmatpush.bf16.msra.mxu2 %v3232_v40 }
 0x474   : > { %1551 = vmatpush.bf16.msra.mxu2 %v3231_v41  ;;  %v3042_v41 = vld [vmem:[%s3688_s20 + $0xc0] sm:$0xf] }
 0x478   : > { %v1210_v17 = vpop.f32.mrf.mxu1  ;;  %1552 = vmatpush.bf16.msra.mxu2 %v3230_v26  ;;  %v3263_v26 = vld [vmem:[%s3688_s20 + $0xcc] sm:$0xf0] }
 0x479   : > { %v3359_v25 = vpack.i.bf16 %v1210_v17, %v1208_v63 }
 0x47b   : > { %3360 = vrot.lane.b32.xlu2 %v3359_v25, %s3534_s27 }
 0x47c   : > { %1553 = vmatpush.bf16.msra.mxu2 %v3229_v11  ;;  %v3261_v11 = vld [vmem:[%s3688_s20 + $0xc4] sm:$0xf] }
 0x49d   : > { %v1213_v24 = vpop.f32.mrf.mxu1 }
 0x4a5   : > { %v1215_v4 = vpop.f32.mrf.mxu1 }
 0x4b4   : > { %v1316_v27 = vpop.f32.mrf.mxu3 }
 0x4bc   : > { %v1318_v28 = vpop.f32.mrf.mxu3 }
 0x4bd   : > { %v3364_v30 = vpack.i.bf16 %v1318_v28, %v1316_v27 }
 0x4bf   : > { %3365 = vrot.lane.b32.xlu0 %v3364_v30, %s3532_s13 }
 0x4d5   : > { %v3361_v42 = vpop.permute.xlu2 %3360 }
 0x4d6   : > { %v3363_v44 = vunpack.i.h.bf16 %v3361_v42  ;;  %v3362_v45 = vunpack.i.l.bf16 %v3361_v42  ;;  %v3043_v42 = vor.u32 %v3263_v26, %v3042_v41  ;;  %v3246_v41 = vld [vmem:[%s3688_s20 + $0x4c] sm:$0xf]  ;;  %v2988_v26 = vld [vmem:[%s3688_s20 + $0x58] sm:$0xf0] }
 0x4d8   : > { %v1470_v50 = vsel %vm1000_vm14, %v3953_v0, %v3363_v44  ;;  %v1469_v51 = vsel %vm1000_vm14, %v3949_v60, %v3362_v45  ;;  %v3050_v44 = vld [vmem:[%s3688_s20 + $0xc8] sm:$0xf]  ;;  %v3264_v45 = vld [vmem:[%s3688_s20 + $0xd4] sm:$0xf0]  ;;  %1855 = vmatpush.bf16.msrb.mxu3 %v3043_v42  ;;  %v2962_v42 = vld [vmem:[%s3688_s20 + $0x20] sm:$0xf] }
 0x4db   : > { %v1424_v19 = vpop.f32.mrf.mxu1 }
 0x4e3   : > { %v1426_v5 = vpop.f32.mrf.mxu1 }
 0x4e4   : > { %v3369_v35 = vpack.i.bf16 %v1426_v5, %v1424_v19  ;;  %v3265_v19 = vld [vmem:[%s3688_s20 + $0xe4] sm:$0xf]  ;;  %v3060_v5 = vld [vmem:[%s3688_s20 + $0xf0] sm:$0xf0] }
 0x4e6   : > { %3370 = vrot.lane.b32.xlu2 %v3369_v35, %s3531_s22  ;;  %v3066_v35 = vld [vmem:[%s3688_s20 + $0xe8] sm:$0xf] }
 0x4e9   : > { %v1321_v36 = vpop.f32.mrf.mxu3 }
 0x4ea   : > { %1452 = vrot.lane.b32.xlu0 %v1321_v36, %s3532_s13  ;;  %v3268_v36 = vld [vmem:[%s3688_s20 + $0xf4] sm:$0xf0] }
 0x4eb   : > { %v1429_v34 = vpop.f32.mrf.mxu1 }
 0x4ee   : > { %1440 = vrot.lane.b32.xlu2 %v1213_v24, %s3534_s27 }
 0x4f1   : > { %v1323_v37 = vpop.f32.mrf.mxu3 }
 0x4f2   : > { %v3067_v37 = vor.u32 %v3268_v36, %v3066_v35  ;;  %v3245_v35 = vld [vmem:[%s3688_s20 + $0x44] sm:$0xf] }
 0x4f3   : > { %v1431_v38 = vpop.f32.mrf.mxu1 }
 0x4f4   : > { %v3266_v38 = vld [vmem:[%s3688_s20 + $0xec] sm:$0xf]  ;;  %1890 = vmatpush.bf16.msrb.mxu1 %v3067_v37  ;;  %v2986_v37 = vld [vmem:[%s3688_s20 + $0x48] sm:$0xf] }
 0x4f5   : > { %v3071_v40 = vor.u32 %v3266_v38, %v3068_v32  ;;  %v3248_v38 = vld [vmem:[%s3688_s20 + $0x54] sm:$0xf0] }
 0x4f6   : > { %1464 = vrot.lane.b32.xlu2 %v1429_v34, %s3531_s22  ;;  %v3063_v34 = vor.u32 %v3265_v19, %v3060_v5  ;;  %v3007_v19 = vor.u32 %v3250_v31, %v3004_v29  ;;  %v3247_v5 = vld [vmem:[%s3688_s20 + $0x4c] sm:$0xf0]  ;;  %v3377_v29 = vld [vmem:[%s4492_s2] ss:$0 sm:$0xff] }
 0x4f7   : > { %1908 = vmatpush.bf16.msrb.mxu2 %v3071_v40  ;;  %v2979_v36 = vor.u32 %v3247_v5, %v2978_v33  ;;  %v2987_v40 = vor.u32 %v3248_v38, %v2986_v37 }
 0x4f8   : > { %1872 = vmatpush.bf16.msrb.mxu0 %v3063_v34  ;;  %v2980_v34 = vld [vmem:[%s3688_s20 + $0x50] sm:$0xf0] }
 0x4f9   : > { %v2983_v32 = vor.u32 %v3245_v35, %v2980_v34 }
 0x531   : > { %v3366_v43 = vpop.permute.xlu0 %3365 }
 0x532   : > { %v3368_v46 = vunpack.i.h.bf16 %v3366_v43  ;;  %v3367_v47 = vunpack.i.l.bf16 %v3366_v43  ;;  %v3044_v43 = vld [vmem:[%s3688_s20 + $0xd0] sm:$0xf0] }
 0x534   : > { %v1473_v39 = vsel %vm1472_vm1, %v1469_v51, %v3367_v47  ;;  %v1474_v54 = vsel %vm1472_vm1, %v1470_v50, %v3368_v46  ;;  %v3047_v46 = vor.u32 %v3261_v11, %v3044_v43  ;;  %v3051_v47 = vor.u32 %v3264_v45, %v3050_v44  ;;  %v3052_v50 = vld [vmem:[%s3688_s20 + $0xd8] sm:$0xf0]  ;;  %v3243_v43 = vld [vmem:[%s3688_s20 + $0x2c] sm:$0xf0]  ;;  %v3241_v44 = vld [vmem:[%s3688_s20 + $0x24] sm:$0xf] }
 0x535   : > { %v2991_v11 = vor.u32 %v3246_v41, %v2988_v26  ;;  %v2963_v45 = vor.u32 %v3243_v43, %v2962_v42 }
 0x536   : > { %1873 = vmatpush.bf16.msrb.mxu0 %v3047_v46  ;;  %1891 = vmatpush.bf16.msrb.mxu1 %v3051_v47  ;;  %v2964_v46 = vld [vmem:[%s3688_s20 + $0x30] sm:$0xf0]  ;;  %v2970_v47 = vld [vmem:[%s3688_s20 + $0x28] sm:$0xf] }
 0x540   : > { %v3371_v49 = vpop.permute.xlu2 %3370 }
 0x541   : > { %v3373_v52 = vunpack.i.h.bf16 %v3371_v49  ;;  %v3372_v53 = vunpack.i.l.bf16 %v3371_v49  ;;  %v3262_v49 = vld [vmem:[%s3688_s20 + $0xcc] sm:$0xf] }
 0x542   : > { %v3055_v51 = vor.u32 %v3262_v49, %v3052_v50  ;;  %v3244_v49 = vld [vmem:[%s3688_s20 + $0x34] sm:$0xf0] }
 0x543   : > { %v1477_v55 = vsel %vm1476_vm2, %v1473_v39, %v3372_v53  ;;  %v1478_v56 = vsel %vm1476_vm2, %v1474_v54, %v3373_v52  ;;  %v3026_v52 = vld [vmem:[%s3688_s20 + $0xa0] sm:$0xf]  ;;  %v3259_v53 = vld [vmem:[%s3688_s20 + $0xac] sm:$0xf0]  ;;  %v3257_v39 = vld [vmem:[%s3688_s20 + $0xa4] sm:$0xf] }
 0x544   : > { %v1480_v57 = vpack.c.bf16 %v1478_v56, %v1477_v55  ;;  %1909 = vmatpush.bf16.msrb.mxu2 %v3055_v51  ;;  %v3027_v54 = vor.u32 %v3259_v53, %v3026_v52  ;;  %v3028_v55 = vld [vmem:[%s3688_s20 + $0xb0] sm:$0xf0]  ;;  %v3034_v56 = vld [vmem:[%s3688_s20 + $0xa8] sm:$0xf]  ;;  %v2967_v51 = vor.u32 %v3241_v44, %v2964_v46  ;;  %v2971_v52 = vor.u32 %v3244_v49, %v2970_v47  ;;  %v3242_v53 = vld [vmem:[%s3688_s20 + $0x2c] sm:$0xf] }
 0x546   : > { %1554 = vmatmul.bf16.vlgmr.msra.gmra.mxu2 %v1480_v57  ;;  %v3260_v57 = vld [vmem:[%s3688_s20 + $0xb4] sm:$0xf0]  ;;  %1856 = vmatpush.bf16.msrb.mxu3 %v3027_v54 }
 0x548   : > { %v1441_v59 = vpop.permute.xlu2 %1440 }
 0x549   : > { %v1471_v61 = vsel %vm1000_vm14, %v3955_v1, %v1441_v59  ;;  %v3031_v59 = vor.u32 %v3257_v39, %v3028_v55  ;;  %v2972_v39 = vld [vmem:[%s3688_s20 + $0x38] sm:$0xf0] }
 0x54a   : > { %v2975_v55 = vor.u32 %v3242_v53, %v2972_v39 }
 0x54b   : > { %1874 = vmatpush.bf16.msrb.mxu0 %v3031_v59  ;;  %v3237_v59 = vld [vmem:[%s3688_s20 + $0x4] sm:$0xf] }
 0x550   : > { %v1465_v0 = vpop.permute.xlu2 %1464 }
 0x55c   : > { %v1453_v62 = vpop.permute.xlu0 %1452 }
 0x55d   : > { %v1475_v60 = vsel %vm1472_vm1, %v1471_v61, %v1453_v62  ;;  %v3035_v61 = vor.u32 %v3260_v57, %v3034_v56  ;;  %v3258_v62 = vld [vmem:[%s3688_s20 + $0xac] sm:$0xf]  ;;  %v2946_v56 = vld [vmem:[%s3688_s20] sm:$0xf]  ;;  %v3239_v57 = vld [vmem:[%s3688_s20 + $0xc] sm:$0xf0] }
 0x55e   : > { %v1479_v2 = vsel %vm1476_vm2, %v1475_v60, %v1465_v0  ;;  %v3036_v0 = vld [vmem:[%s3688_s20 + $0xb8] sm:$0xf0] }
 0x55f   : > { %v1481_v3 = vpack.c.bf16 %v1479_v2, %v1479_v2  ;;  %v3039_v60 = vor.u32 %v3258_v62, %v3036_v0  ;;  %1892 = vmatpush.bf16.msrb.mxu1 %v3035_v61  ;;  %v3010_v2 = vld [vmem:[%s3688_s20 + $0x80] sm:$0xf]  ;;  %v2947_v62 = vor.u32 %v3239_v57, %v2946_v56  ;;  %v2948_v0 = vld [vmem:[%s3688_s20 + $0x10] sm:$0xf0] }
 0x561   : > { %1559 = vmatmul.bf16.gmra.mxu2 %v1481_v3  ;;  %v3255_v3 = vld [vmem:[%s3688_s20 + $0x8c] sm:$0xf0] }
 0x562   : > { %1910 = vmatpush.bf16.msrb.mxu2 %v3039_v60  ;;  %v2954_v60 = vld [vmem:[%s3688_s20 + $0x8] sm:$0xf] }
 0x5c9   : > { %v1555_v8 = vpop.f32.mrf.mxu2 }
 0x5ca   : > { %v1564_v58 = vadd.f32 %v3715_v6, %v1555_v8  ;;  %v3011_v8 = vor.u32 %v3255_v3, %v3010_v2  ;;  %v2951_v2 = vor.u32 %v3237_v59, %v2948_v0  ;;  %v3240_v3 = vld [vmem:[%s3688_s20 + $0x14] sm:$0xf0] }
 0x5cc   : > { %v3994_v12 = vadd.f32 %v3376_v10, %v1564_v58  ;;  %v3012_v58 = vld [vmem:[%s3688_s20 + $0x90] sm:$0xf0]  ;;  %1857 = vmatpush.bf16.msrb.mxu3 %v3011_v8  ;;  %v2956_v8 = vld [vmem:[%s3688_s20 + $0x18] sm:$0xf0] }
 0x5ce   : > { %1576 = vadd.xlane.f32.xlu0 %v3994_v12 }
 0x5d1   : > { %v1557_v1 = vpop.f32.mrf.mxu2 }
 0x5d2   : > { %v1565_v13 = vadd.f32 %v3722_v9, %v1557_v1  ;;  %v3018_v1 = vld [vmem:[%s3688_s20 + $0x88] sm:$0xf] }
 0x5d4   : > { %v3998_v48 = vadd.f32 %v3376_v10, %v1565_v13  ;;  %v3256_v13 = vld [vmem:[%s3688_s20 + $0x94] sm:$0xf0] }
 0x5d6   : > { %1578 = vadd.xlane.f32.xlu2 %v3998_v48 }
 0x5e4   : > { %v1560_v14 = vpop.f32.mrf.mxu2 }
 0x5e5   : > { %v1566_v15 = vadd.f32 %v1560_v14, %v3717_v7 }
 0x5e7   : > { %v4002_v18 = vadd.f32 %v3376_v10, %v1566_v15  ;;  %v3253_v10 = vld [vmem:[%s3688_s20 + $0x84] sm:$0xf]  ;;  %v3019_v15 = vor.u32 %v3256_v13, %v3018_v1 }
 0x5e8   : > { %v3015_v14 = vor.u32 %v3253_v10, %v3012_v58  ;;  %v3238_v10 = vld [vmem:[%s3688_s20 + $0xc] sm:$0xf]  ;;  %v2955_v58 = vor.u32 %v3240_v3, %v2954_v60 }
 0x5e9   : > { %v1580_v20 = vsel %vm679_vm3, %v4002_v18, 0.0  ;;  %1893 = vmatpush.bf16.msrb.mxu1 %v3019_v15  ;;  %v2959_v1 = vor.u32 %v3238_v10, %v2956_v8 }
 0x5ea   : > { %1581 = vadd.xlane.f32.xlu1 %v1580_v20  ;;  %v3254_v20 = vld [vmem:[%s3688_s20 + $0x8c] sm:$0xf]  ;;  %1875 = vmatpush.bf16.msrb.mxu0 %v3015_v14 }
 0x5ec   : > { %v1562_v6 = vpop.f32.mrf.mxu2 }
 0x5ed   : > { %v3020_v6 = vld [vmem:[%s3688_s20 + $0x98] sm:$0xf0] }
 0x641   : > { %v1577_v21 = vpop.xlane.xlu0 %1576 }
 0x642   : > { %v1583_v22 = vmul.f32 %v1577_v21, %v3725_v16  ;;  %v3023_v21 = vor.u32 %v3254_v20, %v3020_v6 }
 0x644   : > { %v4008_v9 = vsub.f32 %v3994_v12, %v1583_v22  ;;  %v2994_v22 = vld [vmem:[%s3688_s20 + $0x60] sm:$0xf]  ;;  %1911 = vmatpush.bf16.msrb.mxu2 %v3023_v21 }
 0x646   : > { %v1589_v23 = vmul.f32 %v4008_v9, %v4008_v9 }
 0x648   : > { %1592 = vadd.xlane.f32.xlu1 %v1589_v23  ;;  %v3251_v23 = vld [vmem:[%s3688_s20 + $0x6c] sm:$0xf0]  ;;  %1912 = vmatpush.bf16.msrb.mxu2 %v3007_v19 }
 0x649   : > { %v1579_v7 = vpop.xlane.xlu2 %1578 }
 0x64a   : > { %v1584_v63 = vmul.f32 %v1579_v7, %v3725_v16  ;;  %v3249_v7 = vld [vmem:[%s3688_s20 + $0x64] sm:$0xf] }
 0x64c   : > { %v4014_v17 = vsub.f32 %v3998_v48, %v1584_v63  ;;  %v2995_v63 = vor.u32 %v3251_v23, %v2994_v22  ;;  %1913 = vmatpush.bf16.msrb.mxu2 %v2991_v11 }
 0x64e   : > { %v1590_v25 = vmul.f32 %v4014_v17, %v4014_v17  ;;  %1858 = vmatpush.bf16.msrb.mxu3 %v2995_v63 }
 0x650   : > { %1594 = vadd.xlane.f32.xlu1 %v1590_v25  ;;  %v2996_v25 = vld [vmem:[%s3688_s20 + $0x70] sm:$0xf0]  ;;  %1914 = vmatpush.bf16.msrb.mxu2 %v2975_v55 }
 0x652   : > { %1859 = vmatpush.bf16.msrb.mxu3 %v2979_v36 }
 0x654   : > { %1915 = vmatpush.bf16.msrb.mxu2 %v2959_v1 }
 0x656   : > { %1860 = vmatpush.bf16.msrb.mxu3 %v2963_v45 }
 0x65a   : > { %1861 = vmatpush.bf16.msrb.mxu3 %v2947_v62 }
 0x65d   : > { %v1582_v24 = vpop.xlane.xlu1 %1581 }
 0x65e   : > { %v1585_v4 = vmul.f32 %v1582_v24, %v3725_v16  ;;  %v3002_v24 = vld [vmem:[%s3688_s20 + $0x68] sm:$0xf] }
 0x660   : > { %v4020_v27 = vsub.f32 %v4002_v18, %v1585_v4  ;;  %v3252_v4 = vld [vmem:[%s3688_s20 + $0x74] sm:$0xf0] }
 0x662   : > { %v1591_v28 = vmul.f32 %v4020_v27, %v4020_v27 }
 0x664   : > { %v1596_v30 = vsel %vm679_vm3, %v1591_v28, 0.0  ;;  %v2999_v28 = vor.u32 %v3249_v7, %v2996_v25 }
 0x665   : > { %1597 = vadd.xlane.f32.xlu1 %v1596_v30  ;;  %v3003_v30 = vor.u32 %v3252_v4, %v3002_v24 }
 0x666   : > { %1876 = vmatpush.bf16.msrb.mxu0 %v2999_v28 }
 0x667   : > { %1894 = vmatpush.bf16.msrb.mxu1 %v3003_v30 }
 0x66a   : > { %1877 = vmatpush.bf16.msrb.mxu0 %v2983_v32 }
 0x66b   : > { %1895 = vmatpush.bf16.msrb.mxu1 %v2987_v40 }
 0x66e   : > { %1878 = vmatpush.bf16.msrb.mxu0 %v2967_v51 }
 0x66f   : > { %1896 = vmatpush.bf16.msrb.mxu1 %v2971_v52 }
 0x672   : > { %1879 = vmatpush.bf16.msrb.mxu0 %v2951_v2 }
 0x673   : > { %1897 = vmatpush.bf16.msrb.mxu1 %v2955_v58 }
 0x6bb   : > { %v1593_v50 = vpop.xlane.xlu1 %1592 }
 0x6bc   : > { %v1599_v54 = vmul.f32 %v1593_v50, %v3725_v16  ;;  %v1684_v50 = vld [vmem:[%s3693_s23] sm:$0xf] }
 0x6bd   : > { %v4106_v51 = vperm.slane %v1684_v50, 1  ;;  %v4108_v52 = vperm.slane %v1684_v50, 2  ;;  %v4116_v59 = vperm.slane %v1684_v50, 3 }
 0x6be   : > { %v1602_v61 = vadd.f32 1e-06, %v1599_v54 }
 0x6c0   : > { %3436 = vrsqrt.f32 %v1602_v61  ;;  %vm1611_vm5 = vweird.f32 %v1602_v61 }
 0x6c3   : > { %v1595_v13 = vpop.xlane.xlu1 %1594 }
 0x6c4   : > { %v1600_v14 = vmul.f32 %v1595_v13, %v3725_v16 }
 0x6c6   : > { %v3437_v15 = vpop.eup %3436  ;;  %v1603_v20 = vadd.f32 1e-06, %v1600_v14 }
 0x6c7   : > { %v1606_v6 = vmul.f32 %v3437_v15, %v1602_v61  ;;  %vm1612_vm4 = vweird.f32 %v3437_v15 }
 0x6c8   : > { %3438 = vrsqrt.f32 %v1603_v20  ;;  %vm1613_vm6 = vmor %vm1611_vm5, %vm1612_vm4  ;;  %vm1621_vm8 = vweird.f32 %v1603_v20 }
 0x6c9   : > { %v1607_v21 = vmul.f32 %v3437_v15, %v1606_v6 }
 0x6cb   : > { %v1608_v22 = vmul.f32 0.5, %v1607_v21 }
 0x6cd   : > { %v1609_v23 = vsub.f32 1.5, %v1608_v22 }
 0x6ce   : > { %v3439_v7 = vpop.eup %3438 }
 0x6cf   : > { %v1610_v63 = vmul.f32 %v3437_v15, %v1609_v23  ;;  %v1616_v25 = vmul.f32 %v3439_v7, %v1603_v20  ;;  %vm1622_vm7 = vweird.f32 %v3439_v7 }
 0x6d0   : > { %vm1623_vm9 = vmor %vm1621_vm8, %vm1622_vm7 }
 0x6d1   : > { %v1617_v24 = vmul.f32 %v3439_v7, %v1616_v25  ;;  %v1614_v4 = vsel %vm1613_vm6, %v3437_v15, %v1610_v63 }
 0x6d2   : > { %v1635_v31 = vmul.f32 %v1614_v4, %v4008_v9  ;;  %v3378_v9 = vld [vmem:[%s4493_s3] ss:$0 sm:$0xff] }
 0x6d3   : > { %v1618_v28 = vmul.f32 0.5, %v1617_v24 }
 0x6d4   : > { %v1641_v34 = vmul.f32 %v3377_v29, %v1635_v31 }
 0x6d5   : > { %v1619_v30 = vsub.f32 1.5, %v1618_v28 }
 0x6d6   : > { %v1647_v32 = vadd.f32 %v3378_v9, %v1641_v34 }
 0x6d7   : > { %v1620_v19 = vmul.f32 %v3439_v7, %v1619_v30 }
 0x6d8   : > { %v1598_v33 = vpop.xlane.xlu1 %1597 }
 0x6d9   : > { %v1624_v5 = vsel %vm1623_vm9, %v3439_v7, %v1620_v19  ;;  %v1601_v35 = vmul.f32 %v1598_v33, %v3725_v16 }
 0x6da   : > { %v1636_v36 = vmul.f32 %v1624_v5, %v4014_v17 }
 0x6db   : > { %v1604_v37 = vadd.f32 1e-06, %v1601_v35 }
 0x6dc   : > { %v1642_v38 = vmul.f32 %v3377_v29, %v1636_v36 }
 0x6dd   : > { %3440 = vrsqrt.f32 %v1604_v37  ;;  %vm1631_vm11 = vweird.f32 %v1604_v37 }
 0x6de   : > { %v1648_v40 = vadd.f32 %v3378_v9, %v1642_v38 }
 0x6e0   : > { %v1650_v41 = vpack.c.bf16 %v1648_v40, %v1647_v32 }
 0x6e2   : > { %1862 = vmatmul.bf16.vlgmr.msrb.gmra.mxu3 %v1650_v41  ;;  %1880 = vmatmul.bf16.vlgmr.msrb.gmra.mxu0 %v1650_v41 }
 0x6e3   : > { %v3441_v26 = vpop.eup %3440  ;;  %1898 = vmatmul.bf16.vlgmr.msrb.gmra.mxu1 %v1650_v41  ;;  %1916 = vmatmul.bf16.vlgmr.msrb.gmra.mxu2 %v1650_v41 }
 0x6e4   : > { %v1626_v16 = vmul.f32 %v3441_v26, %v1604_v37  ;;  %vm1632_vm10 = vweird.f32 %v3441_v26 }
 0x6e5   : > { %vm1633_vm12 = vmor %vm1631_vm11, %vm1632_vm10  ;;  %vm2587_vm10 = vsmask.f32 256 }
 0x6e6   : > { %v1627_v11 = vmul.f32 %v3441_v26, %v1626_v16  ;;  %vm2588_vm11 = vmand %vm679_vm3, %vm2587_vm10 }
 0x6e8   : > { %v1628_v17 = vmul.f32 0.5, %v1627_v11 }
 0x6ea   : > { %v1629_v42 = vsub.f32 1.5, %v1628_v17  ;;  %v3535_v17 = vmov -1.0  }
 0x6ec   : > { %v1630_v43 = vmul.f32 %v3441_v26, %v1629_v42 }
 0x6ee   : > { %v1634_v44 = vsel %vm1633_vm12, %v3441_v26, %v1630_v43 }
 0x6ef   : > { %v1637_v45 = vmul.f32 %v1634_v44, %v4020_v27  ;;  %v4112_v27 = vperm.slane %v1684_v50, 0 }
 0x6f1   : > { %v1643_v46 = vmul.f32 %v3377_v29, %v1637_v45 }
 0x6f3   : > { %v1649_v47 = vadd.f32 %v3378_v9, %v1643_v46 }
 0x6f5   : > { %v1651_v49 = vpack.c.bf16 %v1649_v47, %v1649_v47 }
 0x6f7   : > { %1867 = vmatmul.bf16.gmra.mxu3 %v1651_v49  ;;  %1885 = vmatmul.bf16.gmra.mxu0 %v1651_v49 }
 0x6f8   : > { %1903 = vmatmul.bf16.gmra.mxu1 %v1651_v49  ;;  %1921 = vmatmul.bf16.gmra.mxu2 %v1651_v49 }
 0x75f   : > { %v1881_v53 = vpop.f32.mrf.mxu0 }
 0x760   : > { %v1882_v39 = vadd.f32 %v1881_v53, %v4106_v51  ;;  %v1899_v54 = vpop.f32.mrf.mxu1 }
 0x761   : > { %v1900_v55 = vadd.f32 %v1899_v54, %v4108_v52  ;;  %v3292_v54 = vld [vmem:[%s3698_s0 + $0xb8] sm:$0xff] }
 0x762   : > { %v1939_v56 = vmul.f32 0.70710677, %v1882_v39  ;;  %v4160_v40 = vmul.f32 0.5, %v1882_v39  ;;  %v3284_v39 = vld [vmem:[%s3698_s0 + $0x78] sm:$0xff]  ;;  %2542 = vmatpush.bf16.msra.mxu1 %v3292_v54  ;;  %v3283_v54 = vld [vmem:[%s3698_s0 + $0x70] sm:$0xff] }
 0x763   : > { %v4114_v57 = vmul.f32 0.70710677, %v1900_v55  ;;  %v4162_v41 = vmul.f32 0.5, %v1900_v55  ;;  %2524 = vmatpush.bf16.msra.mxu0 %v3284_v39 }
 0x764   : > { %v1975_v61 = vand.u32 2147483647, %v1939_v56  ;;  %vm1951_vm13 = vcmp.ge.f32.partialorder %v1939_v56, 0.0 }
 0x765   : > { %v1976_v62 = vand.u32 2147483647, %v4114_v57  ;;  %v1863_v0 = vpop.f32.mrf.mxu3  ;;  %v4168_v42 = vsel %vm1951_vm13, 1.0, %v3535_v17  ;;  %vm1952_vm14 = vcmp.ge.f32.partialorder %v4114_v57, 0.0 }
 0x766   : > { %v1987_v60 = vmul.f32 0.3275911, %v1975_v61  ;;  %v4120_v2 = vadd.f32 %v1863_v0, %v4112_v27  ;;  %v1917_v3 = vpop.f32.mrf.mxu2  ;;  %v2131_v21 = vsub.f32 0.0, %v1975_v61 }
 0x767   : > { %v1988_v10 = vmul.f32 0.3275911, %v1976_v62  ;;  %v4123_v8 = vadd.f32 %v1917_v3, %v4116_v59  ;;  %v1883_v20 = vpop.f32.mrf.mxu0  ;;  %v2132_v25 = vsub.f32 0.0, %v1976_v62  ;;  %2525 = vmatpush.bf16.msra.mxu0 %v3283_v54 }
 0x768   : > { %v1999_v58 = vadd.f32 1.0, %v1987_v60  ;;  %v4126_v1 = vmul.f32 0.70710677, %v4120_v2  ;;  %v1901_v6 = vpop.f32.mrf.mxu1  ;;  %v4139_v7 = vadd.f32 %v1883_v20, %v4106_v51  ;;  %v2143_v4 = vmul.f32 %v2131_v21, %v1975_v61 }
 0x769   : > { %v2000_v13 = vadd.f32 1.0, %v1988_v10  ;;  %v4129_v14 = vmul.f32 0.70710677, %v4123_v8  ;;  %v4142_v63 = vadd.f32 %v1901_v6, %v4108_v52  ;;  %v2144_v36 = vmul.f32 %v2132_v25, %v1976_v62 }
 0x76a   : > { %3442 = vrcp.f32 %v1999_v58  ;;  %v4132_v15 = vand.u32 2147483647, %v4126_v1  ;;  %v4146_v30 = vmul.f32 0.70710677, %v4139_v7  ;;  %v2156_v38 = vmul.f32 1.442695, %v2143_v4 }
 0x76b   : > { %3444 = vrcp.f32 %v2000_v13  ;;  %v4136_v23 = vand.u32 2147483647, %v4129_v14  ;;  %v4154_v5 = vmul.f32 0.70710677, %v4142_v63  ;;  %v2158_v50 = vmul.f32 1.442695, %v2144_v36 }
 0x76c   : > { %v1986_v22 = vmul.f32 0.3275911, %v4132_v15  ;;  %v4158_v34 = vand.u32 2147483647, %v4146_v30  ;;  %vm1950_vm15 = vcmp.ge.f32.partialorder %v4126_v1, 0.0  ;;  %v2130_v0 = vsub.f32 0.0, %v4132_v15 }
 0x76d   : > { %v1989_v28 = vmul.f32 0.3275911, %v4136_v23  ;;  %v1865_v9 = vpop.f32.mrf.mxu3  ;;  %v4172_v44 = vand.u32 2147483647, %v4154_v5  ;;  %v4198_v20 = vsel %vm1952_vm14, 1.0, %v3535_v17  ;;  %vm1955_vm0 = vcmp.ge.f32.partialorder %v4146_v30, 0.0 }
 0x76e   : > { %v1998_v24 = vadd.f32 1.0, %v1986_v22  ;;  %v1919_v32 = vpop.f32.mrf.mxu2  ;;  %v1991_v16 = vmul.f32 0.3275911, %v4158_v34  ;;  %v4175_v45 = vadd.f32 %v1865_v9, %v4112_v27  ;;  %vm1956_vm1 = vcmp.ge.f32.partialorder %v4154_v5, 0.0  ;;  %v3278_v5 = vld [vmem:[%s3698_s0 + $0x48] sm:$0xff] }
 0x76f   : > { %v2001_v33 = vadd.f32 1.0, %v1989_v28  ;;  %v1992_v61 = vmul.f32 0.3275911, %v4172_v44  ;;  %v4225_v39 = vadd.f32 %v1919_v32, %v4116_v59  ;;  %vm1953_vm4 = vcmp.ge.f32.partialorder %v4129_v14, 0.0 }
 0x770   : > { %v4148_v31 = vpop.eup %3442  ;;  %3446 = vrcp.f32 %v1998_v24  ;;  %v2003_v53 = vadd.f32 1.0, %v1991_v16  ;;  %v4193_v13 = vmul.f32 0.70710677, %v4175_v45  ;;  %v4207_v24 = vsel %vm1950_vm15, 1.0, %v3535_v17 }
 0x771   : > { %v4150_v29 = vpop.eup %3444  ;;  %v2023_v19 = vmul.f32 1.0614054, %v4148_v31  ;;  %3448 = vrcp.f32 %v2001_v33  ;;  %v2004_v58 = vadd.f32 1.0, %v1992_v61  ;;  %v2133_v33 = vsub.f32 0.0, %v4136_v23 }
 0x772   : > { %v2024_v35 = vmul.f32 1.0614054, %v4150_v29  ;;  %3450 = vpow2.f32 %v2156_v38  ;;  %v2142_v38 = vmul.f32 %v2130_v0, %v4132_v15  ;;  %vm1954_vm2 = vcmp.ge.f32.partialorder %v4193_v13, 0.0 }
 0x773   : > { %v2035_v37 = vadd.f32 -1.4531521, %v2023_v19  ;;  %3452 = vrcp.f32 %v2003_v53  ;;  %v2136_v53 = vsub.f32 0.0, %v4172_v44 }
 0x774   : > { %v2036_v26 = vadd.f32 -1.4531521, %v2024_v35  ;;  %v4165_v11 = vpop.f32.mrf.mxu0  ;;  %3454 = vpow2.f32 %v2158_v50  ;;  %v2135_v35 = vsub.f32 0.0, %v4158_v34 }
 0x775   : > { %v2047_v43 = vmul.f32 %v4148_v31, %v2035_v37  ;;  %v4177_v46 = vpop.f32.mrf.mxu1  ;;  %3456 = vrcp.f32 %v2004_v58  ;;  %v2145_v58 = vmul.f32 %v2133_v33, %v4136_v23  ;;  %v3300_v23 = vld [vmem:[%s3698_s0 + $0xf8] sm:$0xff]  ;;  %v3282_v33 = vld [vmem:[%s3698_s0 + $0x68] sm:$0xff] }
 0x776   : > { %v4179_v47 = vpop.eup %3446  ;;  %v2048_v49 = vmul.f32 %v4150_v29, %v2036_v26  ;;  %v4217_v26 = vand.u32 2147483647, %v4193_v13  ;;  %v2147_v32 = vmul.f32 %v2135_v35, %v4158_v34  ;;  %v3290_v34 = vld [vmem:[%s3698_s0 + $0xa8] sm:$0xff]  ;;  %2560 = vmatpush.bf16.msra.mxu2 %v3300_v23  ;;  %2526 = vmatpush.bf16.msra.mxu0 %v3282_v33 }
 0x777   : > { %v2059_v55 = vadd.f32 1.4214138, %v2047_v43  ;;  %v2022_v56 = vmul.f32 1.0614054, %v4179_v47  ;;  %v4189_v60 = vpop.eup %3448  ;;  %v3298_v33 = vld [vmem:[%s3698_s0 + $0xe8] sm:$0xff] }
 0x778   : > { %v2060_v62 = vadd.f32 1.4214138, %v2048_v49  ;;  %v2025_v21 = vmul.f32 1.0614054, %v4189_v60  ;;  %v3451_v9 = vpop.eup %3450 }
 0x779   : > { %v2071_v3 = vmul.f32 %v4148_v31, %v2059_v55  ;;  %v2034_v10 = vadd.f32 -1.4531521, %v2022_v56  ;;  %v4219_v43 = vpop.eup %3452  ;;  %v3291_v55 = vld [vmem:[%s3698_s0 + $0xb0] sm:$0xff] }
 0x77a   : > { %v2072_v6 = vmul.f32 %v4150_v29, %v2060_v62  ;;  %v4202_v22 = vpop.f32.mrf.mxu3  ;;  %v2037_v19 = vadd.f32 -1.4531521, %v2025_v21  ;;  %v2027_v61 = vmul.f32 1.0614054, %v4219_v43  ;;  %v1990_v62 = vmul.f32 0.3275911, %v4217_v26  ;;  %v3455_v0 = vpop.eup %3454  ;;  %2543 = vmatpush.bf16.msra.mxu1 %v3291_v55 }
 0x77b   : > { %v2083_v25 = vadd.f32 -0.28449672, %v2071_v3  ;;  %v2046_v4 = vmul.f32 %v4179_v47, %v2034_v10  ;;  %v4210_v28 = vpop.f32.mrf.mxu2  ;;  %v4255_v55 = vmul.f32 1.442695, %v2145_v58  ;;  %v2134_v58 = vsub.f32 0.0, %v4217_v26 }
 0x77c   : > { %v2084_v57 = vadd.f32 -0.28449672, %v2072_v6  ;;  %v1888_v36 = vpop.f32.mrf.mxu0  ;;  %v2049_v50 = vmul.f32 %v4189_v60, %v2037_v19  ;;  %v4234_v6 = vpop.eup %3456  ;;  %v3276_v19 = vld [vmem:[%s3698_s0 + $0x38] sm:$0xff] }
 0x77d   : > { %v2095_v37 = vmul.f32 %v4148_v31, %v2083_v25  ;;  %v2058_v1 = vadd.f32 1.4214138, %v2046_v4  ;;  %v1906_v16 = vpop.f32.mrf.mxu1  ;;  %v2039_v4 = vadd.f32 -1.4531521, %v2027_v61  ;;  %v4239_v36 = vmul.f32 0.5, %v4139_v7  ;;  %2506 = vmatpush.bf16.msra.mxu3 %v3276_v19  ;;  %v3274_v19 = vld [vmem:[%s3698_s0 + $0x28] sm:$0xff] }
 0x77e   : > { %v2096_v49 = vmul.f32 %v4150_v29, %v2084_v57  ;;  %v2061_v10 = vadd.f32 1.4214138, %v2049_v50  ;;  %v2002_v57 = vadd.f32 1.0, %v1990_v62  ;;  %v2154_v7 = vmul.f32 1.442695, %v2142_v38  ;;  %2544 = vmatpush.bf16.msra.mxu1 %v3290_v34 }
 0x77f   : > { %v2107_v56 = vadd.f32 0.2548296, %v2095_v37  ;;  %v2070_v15 = vmul.f32 %v4179_v47, %v2058_v1  ;;  %v2028_v37 = vmul.f32 1.0614054, %v4234_v6  ;;  %v2148_v1 = vmul.f32 %v2136_v53, %v4172_v44 }
 0x780   : > { %v2108_v3 = vadd.f32 0.2548296, %v2096_v49  ;;  %v2051_v49 = vmul.f32 %v4219_v43, %v2039_v4  ;;  %3458 = vrcp.f32 %v2002_v57  ;;  %v2073_v54 = vmul.f32 %v4189_v60, %v2061_v10  ;;  %v3281_v10 = vld [vmem:[%s3698_s0 + $0x60] sm:$0xff] }
 0x781   : > { %v2119_v21 = vmul.f32 %v4148_v31, %v2107_v56  ;;  %v2082_v25 = vadd.f32 -0.28449672, %v2070_v15  ;;  %v4249_v31 = vmul.f32 0.70710677, %v4225_v39  ;;  %v4253_v44 = vmul.f32 0.5, %v4142_v63  ;;  %v3275_v63 = vld [vmem:[%s3698_s0 + $0x30] sm:$0xff]  ;;  %2527 = vmatpush.bf16.msra.mxu0 %v3281_v10 }
 0x782   : > { %v1870_v35 = vpop.f32.mrf.mxu3  ;;  %v2120_v16 = vmul.f32 %v4150_v29, %v2108_v3  ;;  %v2040_v53 = vadd.f32 -1.4531521, %v2028_v37  ;;  %v2063_v56 = vadd.f32 1.4214138, %v2051_v49  ;;  %v2164_v15 = vmul.f32 1.442695, %v2147_v32  ;;  %2507 = vmatpush.bf16.msra.mxu3 %v3275_v63 }
 0x783   : > { %v1924_v50 = vpop.f32.mrf.mxu2  ;;  %v2179_v29 = vmul.f32 %v3451_v9, %v2119_v21  ;;  %v2094_v61 = vmul.f32 %v4179_v47, %v2082_v25  ;;  %v2166_v62 = vmul.f32 1.442695, %v2148_v1  ;;  %v3299_v3 = vld [vmem:[%s3698_s0 + $0xf0] sm:$0xff]  ;;  %v4266_v21 = vand.u32 2147483647, %v4249_v31  ;;  %v3289_v32 = vld [vmem:[%s3698_s0 + $0xa0] sm:$0xff] }
 0x784   : > { %v2052_v38 = vmul.f32 %v4234_v6, %v2040_v53  ;;  %v2180_v4 = vmul.f32 %v3455_v0, %v2120_v16  ;;  %v2075_v9 = vmul.f32 %v4219_v43, %v2063_v56  ;;  %3460 = vpow2.f32 %v2154_v7  ;;  %2561 = vmatpush.bf16.msra.mxu2 %v3299_v3  ;;  %2545 = vmatpush.bf16.msra.mxu1 %v3289_v32  ;;  %v3280_v50 = vld [vmem:[%s3698_s0 + $0x58] sm:$0xff]  ;;  %v3297_v63 = vld [vmem:[%s3698_s0 + $0xe0] sm:$0xff]  ;;  %v3287_v32 = vld [vmem:[%s3698_s0 + $0x90] sm:$0xff] }
 0x785   : > { %v2085_v25 = vadd.f32 -0.28449672, %v2073_v54  ;;  %v2191_v37 = vsub.f32 1.0, %v2179_v29  ;;  %3462 = vpow2.f32 %v2164_v15  ;;  %v1993_v23 = vmul.f32 0.3275911, %v4266_v21  ;;  %v3288_v7 = vld [vmem:[%s3698_s0 + $0x98] sm:$0xff]  ;;  %2528 = vmatpush.bf16.msra.mxu0 %v3280_v50 }
 0x786   : > { %v2064_v57 = vadd.f32 1.4214138, %v2052_v38  ;;  %v4271_v0 = vpop.eup %3458  ;;  %v2087_v1 = vadd.f32 -0.28449672, %v2075_v9  ;;  %v2106_v34 = vadd.f32 0.2548296, %v2094_v61  ;;  %v4279_v49 = vadd.f32 %v4165_v11, %v4106_v51  ;;  %2508 = vmatpush.bf16.msra.mxu3 %v3274_v19 }
 0x787   : > { %v2026_v16 = vmul.f32 1.0614054, %v4271_v0  ;;  %v2192_v54 = vsub.f32 1.0, %v2180_v4  ;;  %v2146_v29 = vmul.f32 %v2134_v58, %v4217_v26  ;;  %v2005_v56 = vadd.f32 1.0, %v1993_v23  ;;  %v3273_v38 = vld [vmem:[%s3698_s0 + $0x20] sm:$0xff]  ;;  %v3279_v58 = vld [vmem:[%s3698_s0 + $0x50] sm:$0xff] }
 0x788   : > { %v2076_v35 = vmul.f32 %v4234_v6, %v2064_v57  ;;  %v2099_v53 = vmul.f32 %v4219_v43, %v2087_v1  ;;  %3464 = vpow2.f32 %v2166_v62  ;;  %2562 = vmatpush.bf16.msra.mxu2 %v3298_v33  ;;  %v2203_v51 = vmul.f32 %v2191_v37, %v4168_v42  ;;  %2546 = vmatpush.bf16.msra.mxu1 %v3288_v7 }
 0x789   : > { %v2038_v61 = vadd.f32 -1.4531521, %v2026_v16  ;;  %v2097_v11 = vmul.f32 %v4189_v60, %v2085_v25  ;;  %3466 = vrcp.f32 %v2005_v56  ;;  %v2118_v26 = vmul.f32 %v4179_v47, %v2106_v34  ;;  %2529 = vmatpush.bf16.msra.mxu0 %v3279_v58 }
 0x78a   : > { %v2088_v15 = vadd.f32 -0.28449672, %v2076_v35  ;;  %v2111_v3 = vadd.f32 0.2548296, %v2099_v53  ;;  %v3461_v10 = vpop.eup %3460  ;;  %v4293_v9 = vmul.f32 0.70710677, %v4279_v49  ;;  %v2204_v25 = vmul.f32 %v2192_v54, %v4198_v20  ;;  %2509 = vmatpush.bf16.msra.mxu3 %v3273_v38 }
 0x78b   : > { %v2050_v4 = vmul.f32 %v4271_v0, %v2038_v61  ;;  %v3463_v42 = vpop.eup %3462  ;;  %v1967_v57 = vsel %vm1955_vm0, 1.0, %v3535_v17  ;;  %v2162_v19 = vmul.f32 1.442695, %v2146_v29  ;;  %3468 = vpow2.f32 %v4255_v55  ;;  %v3272_v20 = vld [vmem:[%s3698_s0 + $0x18] sm:$0xff]  ;;  %v3286_v53 = vld [vmem:[%s3698_s0 + $0x88] sm:$0xff] }
 0x78c   : > { %v2100_v62 = vmul.f32 %v4234_v6, %v2088_v15  ;;  %v2123_v47 = vmul.f32 %v4219_v43, %v2111_v3  ;;  %v1968_v37 = vsel %vm1956_vm1, 1.0, %v3535_v17  ;;  %2563 = vmatpush.bf16.msra.mxu2 %v3297_v63  ;;  %v2109_v33 = vadd.f32 0.2548296, %v2097_v11  ;;  %2547 = vmatpush.bf16.msra.mxu1 %v3287_v32  ;;  %v3296_v55 = vld [vmem:[%s3698_s0 + $0xd8] sm:$0xff]  ;;  %v3271_v63 = vld [vmem:[%s3698_s0 + $0x10] sm:$0xff] }
 0x78d   : > { %v2062_v23 = vadd.f32 1.4214138, %v2050_v4  ;;  %v4308_v34 = vand.u32 2147483647, %v4293_v9  ;;  %v4312_v43 = vadd.f32 %v4177_v46, %v4108_v52  ;;  %v2215_v16 = vadd.f32 1.0, %v2203_v51  ;;  %v3295_v51 = vld [vmem:[%s3698_s0 + $0xd0] sm:$0xff]  ;;  %2530 = vmatpush.bf16.msra.mxu0 %v3278_v5 }
 0x78e   : > { %v2112_v1 = vadd.f32 0.2548296, %v2100_v62  ;;  %v2183_v30 = vmul.f32 %v3463_v42, %v2123_v47  ;;  %v3465_v35 = vpop.eup %3464  ;;  %v2178_v50 = vmul.f32 %v3461_v10, %v2118_v26  ;;  %v2216_v56 = vadd.f32 1.0, %v2204_v25  ;;  %2510 = vmatpush.bf16.msra.mxu3 %v3272_v20  ;;  %v3277_v62 = vld [vmem:[%s3698_s0 + $0x40] sm:$0xff] }
 0x78f   : > { %v2074_v54 = vmul.f32 %v4271_v0, %v2062_v23  ;;  %v4319_v29 = vpop.eup %3466  ;;  %v2137_v52 = vsub.f32 0.0, %v4266_v21  ;;  %v1995_v46 = vmul.f32 0.3275911, %v4308_v34  ;;  %3470 = vpow2.f32 %v2162_v19  ;;  %v3285_v4 = vld [vmem:[%s3698_s0 + $0x80] sm:$0xff] }
 0x790   : > { %v2124_v7 = vmul.f32 %v4234_v6, %v2112_v1  ;;  %v2195_v15 = vsub.f32 1.0, %v2183_v30  ;;  %v2029_v6 = vmul.f32 1.0614054, %v4319_v29  ;;  %2564 = vmatpush.bf16.msra.mxu2 %v3296_v55  ;;  %v2121_v11 = vmul.f32 %v4189_v60, %v2109_v33  ;;  %2548 = vmatpush.bf16.msra.mxu1 %v3286_v53  ;;  %v3270_v30 = vld [vmem:[%s3698_s0 + $0x8] sm:$0xff] }
 0x791   : > { %v2086_v38 = vadd.f32 -0.28449672, %v2074_v54  ;;  %v2007_v10 = vadd.f32 1.0, %v1995_v46  ;;  %v4329_v26 = vmul.f32 0.70710677, %v4312_v43  ;;  %v3469_v58 = vpop.eup %3468  ;;  %v4336_v47 = vadd.f32 %v4202_v22, %v4112_v27  ;;  %v3294_v55 = vld [vmem:[%s3698_s0 + $0xc8] sm:$0xff]  ;;  %2531 = vmatpush.bf16.msra.mxu0 %v3277_v62 }
 0x792   : > { %v2184_v61 = vmul.f32 %v3465_v35, %v2124_v7  ;;  %v2207_v3 = vmul.f32 %v2195_v15, %v1967_v57  ;;  %v2041_v25 = vadd.f32 -1.4531521, %v2029_v6  ;;  %v2190_v60 = vsub.f32 1.0, %v2178_v50  ;;  %2511 = vmatpush.bf16.msra.mxu3 %v3271_v63 }
 0x793   : > { %v2098_v42 = vmul.f32 %v4271_v0, %v2086_v38  ;;  %v2149_v19 = vmul.f32 %v2137_v52, %v4266_v21  ;;  %3472 = vrcp.f32 %v2007_v10  ;;  %v4341_v33 = vand.u32 2147483647, %v4329_v26 }
 0x794   : > { %v2196_v32 = vsub.f32 1.0, %v2184_v61  ;;  %v2219_v57 = vadd.f32 1.0, %v2207_v3  ;;  %v2053_v20 = vmul.f32 %v4319_v29, %v2041_v25  ;;  %2565 = vmatpush.bf16.msra.mxu2 %v3295_v51  ;;  %v2227_v5 = vmul.f32 %v2215_v16, %v4160_v40  ;;  %2549 = vmatpush.bf16.msra.mxu1 %v3285_v4 }
 0x795   : > { %v2110_v23 = vadd.f32 0.2548296, %v2098_v42  ;;  %v2228_v27 = vmul.f32 %v2216_v56, %v4162_v41  ;;  %v4349_v21 = vmul.f32 0.70710677, %v4336_v47  ;;  %v1996_v54 = vmul.f32 0.3275911, %v4341_v33 }
 0x796   : > { %v2208_v1 = vmul.f32 %v2196_v32, %v1968_v37  ;;  %v2231_v22 = vmul.f32 %v2219_v57, %v4239_v36  ;;  %v3471_v37 = vpop.eup %3470  ;;  %v2065_v7 = vadd.f32 1.4214138, %v2053_v20  ;;  %v2202_v53 = vmul.f32 %v2190_v60, %v4207_v24  ;;  %2512 = vmatpush.bf16.msra.mxu3 %v3270_v30 }
 0x797   : > { %v2122_v50 = vmul.f32 %v4271_v0, %v2110_v23  ;;  %v2168_v41 = vmul.f32 1.442695, %v2149_v19  ;;  %v4355_v36 = vand.u32 2147483647, %v4349_v21  ;;  %v2008_v52 = vadd.f32 1.0, %v1996_v54  ;;  %v3269_v0 = vld [vmem:[%s3698_s0] sm:$0xff] }
 0x798   : > { %v2220_v35 = vadd.f32 1.0, %v2208_v1  ;;  %v2239_v40 = vpack.c.bf16 %v2231_v22, %v2227_v5  ;;  %v2077_v15 = vmul.f32 %v4319_v29, %v2065_v7  ;;  %2566 = vmatpush.bf16.msra.mxu2 %v3294_v55  ;;  %v2181_v24 = vmul.f32 %v3469_v58, %v2121_v11 }
 0x799   : > { %v2182_v56 = vmul.f32 %v3471_v37, %v2122_v50  ;;  %v4360_v46 = vpop.eup %3472  ;;  %v1994_v61 = vmul.f32 0.3275911, %v4355_v36  ;;  %v4366_v38 = vadd.f32 %v4210_v28, %v4116_v59  ;;  %3474 = vrcp.f32 %v2008_v52 }
 0x79a   : > { %v2232_v16 = vmul.f32 %v2220_v35, %v4253_v44  ;;  %2532 = vmatmul.bf16.vlgmr.msra.gmra.mxu0 %v2239_v40  ;;  %v3293_v44 = vld [vmem:[%s3698_s0 + $0xc0] sm:$0xff]  ;;  %v2089_v51 = vadd.f32 -0.28449672, %v2077_v15  ;;  %v2214_v3 = vadd.f32 1.0, %v2202_v53  ;;  %v1966_v10 = vsel %vm1954_vm2, 1.0, %v3535_v17  ;;  %2513 = vmatpush.bf16.msra.mxu3 %v3269_v0 }
 0x79b   : > { %v2194_v63 = vsub.f32 1.0, %v2182_v56  ;;  %3476 = vpow2.f32 %v2168_v41  ;;  %v2006_v62 = vadd.f32 1.0, %v1994_v61  ;;  %v2139_v58 = vsub.f32 0.0, %v4308_v34 }
 0x79c   : > { %v2240_v6 = vpack.c.bf16 %v2232_v16, %v2228_v27  ;;  %v2101_v4 = vmul.f32 %v4319_v29, %v2089_v51  ;;  %v4375_v59 = vmul.f32 0.70710677, %v4366_v38  ;;  %v1926_v28 = vmul.f32 0.5, %v4120_v2  ;;  %2567 = vmatpush.bf16.msra.mxu2 %v3293_v44 }
 0x79d   : > { %v2206_v11 = vmul.f32 %v2194_v63, %v1966_v10  ;;  %v1930_v32 = vmul.f32 0.5, %v4175_v45  ;;  %v2031_v13 = vmul.f32 1.0614054, %v4360_v46  ;;  %v2193_v42 = vsub.f32 1.0, %v2181_v24 }
 0x79e   : > { %2550 = vmatmul.bf16.vlgmr.msra.gmra.mxu1 %v2240_v6  ;;  %v2113_v60 = vadd.f32 0.2548296, %v2101_v4  ;;  %3478 = vrcp.f32 %v2006_v62  ;;  %v2226_v57 = vmul.f32 %v2214_v3, %v1926_v28  ;;  %v1965_v19 = vsel %vm1953_vm4, 1.0, %v3535_v17 }
 0x79f   : > { %v2218_v25 = vadd.f32 1.0, %v2206_v11  ;;  %v1985_v1 = vand.u32 2147483647, %v4375_v59  ;;  %v2043_v23 = vadd.f32 -1.4531521, %v2031_v13  ;;  %v4384_v20 = vpop.eup %3474  ;;  %v2151_v30 = vmul.f32 %v2139_v58, %v4308_v34 }
 0x7a0   : > { %v2125_v45 = vmul.f32 %v4319_v29, %v2113_v60  ;;  %v2140_v55 = vsub.f32 0.0, %v4341_v33  ;;  %vm1957_vm5 = vcmp.ge.f32.partialorder %v4249_v31, 0.0  ;;  %v2032_v14 = vmul.f32 1.0614054, %v4384_v20 }
 0x7a1   : > { %v2230_v2 = vmul.f32 %v2218_v25, %v1930_v32  ;;  %v3477_v5 = vpop.eup %3476  ;;  %v1997_v27 = vmul.f32 0.3275911, %v1985_v1  ;;  %v2055_v22 = vmul.f32 %v4360_v46, %v2043_v23  ;;  %v2205_v37 = vmul.f32 %v2193_v42, %v1965_v19 }
 0x7a2   : > { %v2185_v50 = vmul.f32 %v3477_v5, %v2125_v45  ;;  %v2044_v53 = vadd.f32 -1.4531521, %v2032_v14  ;;  %v1969_v34 = vsel %vm1957_vm5, 1.0, %v3535_v17  ;;  %v2172_v41 = vmul.f32 1.442695, %v2151_v30 }
 0x7a3   : > { %v2238_v35 = vpack.c.bf16 %v2230_v2, %v2226_v57  ;;  %v2009_v7 = vadd.f32 1.0, %v1997_v27  ;;  %v2067_v54 = vadd.f32 1.4214138, %v2055_v22  ;;  %v2152_v16 = vmul.f32 %v2140_v55, %v4341_v33 }
 0x7a4   : > { %v4392_v40 = vpop.eup %3478  ;;  %v2197_v29 = vsub.f32 1.0, %v2185_v50  ;;  %v2138_v31 = vsub.f32 0.0, %v4355_v36  ;;  %v2056_v15 = vmul.f32 %v4384_v20, %v2044_v53  ;;  %v2217_v52 = vadd.f32 1.0, %v2205_v37 }
 0x7a5   : > { %2514 = vmatmul.bf16.vlgmr.msra.gmra.mxu3 %v2238_v35  ;;  %3480 = vrcp.f32 %v2009_v7  ;;  %v2079_v56 = vmul.f32 %v4360_v46, %v2067_v54  ;;  %v2030_v24 = vmul.f32 1.0614054, %v4392_v40  ;;  %v1929_v61 = vmul.f32 0.5, %v4123_v8 }
 0x7a6   : > { %v2209_v0 = vmul.f32 %v2197_v29, %v1969_v34  ;;  %v1933_v44 = vmul.f32 0.5, %v4225_v39  ;;  %v2068_v63 = vadd.f32 1.4214138, %v2056_v15  ;;  %3482 = vpow2.f32 %v2172_v41 }
 0x7a7   : > { %v2091_v6 = vadd.f32 -0.28449672, %v2079_v56  ;;  %v2174_v33 = vmul.f32 1.442695, %v2152_v16  ;;  %v2042_v3 = vadd.f32 -1.4531521, %v2030_v24  ;;  %v2150_v10 = vmul.f32 %v2138_v31, %v4355_v36 }
 0x7a8   : > { %v2221_v51 = vadd.f32 1.0, %v2209_v0  ;;  %v2080_v11 = vmul.f32 %v4384_v20, %v2068_v63  ;;  %v2229_v4 = vmul.f32 %v2217_v52, %v1929_v61  ;;  %v2141_v8 = vsub.f32 0.0, %v1985_v1 }
 0x7a9   : > { %v2103_v62 = vmul.f32 %v4360_v46, %v2091_v6  ;;  %v2054_v28 = vmul.f32 %v4392_v40, %v2042_v3  ;;  %3484 = vpow2.f32 %v2174_v33  ;;  %v2170_v57 = vmul.f32 1.442695, %v2150_v10 }
 0x7aa   : > { %v2233_v58 = vmul.f32 %v2221_v51, %v1933_v44  ;;  %v2092_v39 = vadd.f32 -0.28449672, %v2080_v11  ;;  %vm1959_vm6 = vcmp.ge.f32.partialorder %v4293_v9, 0.0  ;;  %v2153_v30 = vmul.f32 %v2141_v8, %v1985_v1 }
 0x7ab   : > { %v3481_v32 = vpop.eup %3480  ;;  %v2115_v13 = vadd.f32 0.2548296, %v2103_v62  ;;  %v2066_v25 = vadd.f32 1.4214138, %v2054_v28  ;;  %3486 = vpow2.f32 %v2170_v57  ;;  %vm1960_vm7 = vcmp.ge.f32.partialorder %v4329_v26, 0.0 }
 0x7ac   : > { %v2241_v42 = vpack.c.bf16 %v2233_v58, %v2229_v4  ;;  %v2033_v60 = vmul.f32 1.0614054, %v3481_v32  ;;  %v2104_v36 = vmul.f32 %v4384_v20, %v2092_v39  ;;  %v3483_v23 = vpop.eup %3482  ;;  %v2176_v54 = vmul.f32 1.442695, %v2153_v30  ;;  %v3379_v57 = vld [vmem:[%s645_s30] ss:$0 sm:$0xff] }
 0x7ad   : > { %v2127_v19 = vmul.f32 %v4360_v46, %v2115_v13  ;;  %v2078_v2 = vmul.f32 %v4392_v40, %v2066_v25  ;;  %v1971_v46 = vsel %vm1959_vm6, 1.0, %v3535_v17  ;;  %v1935_v29 = vmul.f32 0.5, %v4279_v49 }
 0x7ae   : > { %2568 = vmatmul.bf16.vlgmr.msra.gmra.mxu2 %v2241_v42  ;;  %v2045_v45 = vadd.f32 -1.4531521, %v2033_v60  ;;  %v2116_v5 = vadd.f32 0.2548296, %v2104_v36  ;;  %v1972_v31 = vsel %vm1960_vm7, 1.0, %v3535_v17  ;;  %3488 = vpow2.f32 %v2176_v54 }
 0x7af   : > { %v2187_v55 = vmul.f32 %v3483_v23, %v2127_v19  ;;  %v2090_v27 = vadd.f32 -0.28449672, %v2078_v2  ;;  %v3485_v35 = vpop.eup %3484  ;;  %vm1958_vm8 = vcmp.ge.f32.partialorder %v4349_v21, 0.0  ;;  %v1936_v61 = vmul.f32 0.5, %v4312_v43 }
 0x7b0   : > { %v2057_v22 = vmul.f32 %v3481_v32, %v2045_v45  ;;  %v2128_v37 = vmul.f32 %v4384_v20, %v2116_v5  ;;  %v1970_v33 = vsel %vm1958_vm8, 1.0, %v3535_v17  ;;  %v1934_v11 = vmul.f32 0.5, %v4336_v47 }
 0x7b1   : > { %v2199_v14 = vsub.f32 1.0, %v2187_v55  ;;  %v2102_v50 = vmul.f32 %v4392_v40, %v2090_v27  ;;  %v3487_v15 = vpop.eup %3486  ;;  %vm1961_vm9 = vcmp.ge.f32.partialorder %v4375_v59, 0.0  ;;  %v1937_v39 = vmul.f32 0.5, %v4366_v38 }
 0x7b2   : > { %v2069_v7 = vadd.f32 1.4214138, %v2057_v22  ;;  %v2188_v9 = vmul.f32 %v3485_v35, %v2128_v37  ;;  %v1973_v28 = vsel %vm1961_vm9, 1.0, %v3535_v17 }
 0x7b3   : > { %v2211_v53 = vmul.f32 %v2199_v14, %v1971_v46  ;;  %v2114_v1 = vadd.f32 0.2548296, %v2102_v50 }
 0x7b4   : > { %v2081_v34 = vmul.f32 %v3481_v32, %v2069_v7  ;;  %v2200_v16 = vsub.f32 1.0, %v2188_v9  ;;  %v3489_v10 = vpop.eup %3488 }
 0x7b5   : > { %v2223_v41 = vadd.f32 1.0, %v2211_v53  ;;  %v2126_v20 = vmul.f32 %v4392_v40, %v2114_v1 }
 0x7b6   : > { %v2093_v56 = vadd.f32 -0.28449672, %v2081_v34  ;;  %v2212_v0 = vmul.f32 %v2200_v16, %v1972_v31 }
 0x7b7   : > { %v2235_v52 = vmul.f32 %v2223_v41, %v1935_v29  ;;  %v2186_v26 = vmul.f32 %v3487_v15, %v2126_v20 }
 0x7b8   : > { %v2105_v24 = vmul.f32 %v3481_v32, %v2093_v56  ;;  %v2224_v6 = vadd.f32 1.0, %v2212_v0 }
 0x7b9   : > { %v2243_v44 = vpack.c.bf16 %v2235_v52, %v2235_v52  ;;  %v2198_v49 = vsub.f32 1.0, %v2186_v26 }
 0x7ba   : > { %v2117_v63 = vadd.f32 0.2548296, %v2105_v24  ;;  %v2236_v51 = vmul.f32 %v2224_v6, %v1936_v61 }
 0x7bb   : > { %2537 = vmatmul.bf16.gmra.mxu0 %v2243_v44  ;;  %v2210_v40 = vmul.f32 %v2198_v49, %v1970_v33 }
 0x7bc   : > { %v2129_v3 = vmul.f32 %v3481_v32, %v2117_v63  ;;  %v2244_v62 = vpack.c.bf16 %v2236_v51, %v2236_v51 }
 0x7bd   : > { %v2222_v21 = vadd.f32 1.0, %v2210_v40 }
 0x7be   : > { %v2189_v4 = vmul.f32 %v3489_v10, %v2129_v3  ;;  %2555 = vmatmul.bf16.gmra.mxu1 %v2244_v62 }
 0x7bf   : > { %v2234_v43 = vmul.f32 %v2222_v21, %v1934_v11 }
 0x7c0   : > { %v2201_v58 = vsub.f32 1.0, %v2189_v4 }
 0x7c1   : > { %v2242_v8 = vpack.c.bf16 %v2234_v43, %v2234_v43 }
 0x7c2   : > { %v2213_v13 = vmul.f32 %v2201_v58, %v1973_v28 }
 0x7c3   : > { %2519 = vmatmul.bf16.gmra.mxu3 %v2242_v8 }
 0x7c4   : > { %v2225_v32 = vadd.f32 1.0, %v2213_v13 }
 0x7c6   : > { %v2237_v42 = vmul.f32 %v2225_v32, %v1937_v39 }
 0x7c8   : > { %v2245_v25 = vpack.c.bf16 %v2237_v42, %v2237_v42 }
 0x7ca   : > { %2573 = vmatmul.bf16.gmra.mxu2 %v2245_v25 }
 0x817   : > { %v2533_v47 = vpop.f32.mrf.mxu0 }
 0x81b   : > { %v2551_v59 = vpop.f32.mrf.mxu1 }
 0x81f   : > { %v2535_v36 = vpop.f32.mrf.mxu0 }
 0x823   : > { %v2553_v45 = vpop.f32.mrf.mxu1 }
 0x828   : > { %v2515_v60 = vpop.f32.mrf.mxu3 }
 0x829   : > { %v2516_v19 = vadd.f32 %v3379_v57, %v2515_v60 }
 0x82b   : > { %v2534_v23 = vadd.f32 %v2533_v47, %v2516_v19 }
 0x82d   : > { %v2552_v55 = vadd.f32 %v2551_v59, %v2534_v23 }
 0x830   : > { %v2517_v17 = vpop.f32.mrf.mxu3 }
 0x831   : > { %v2518_v2 = vadd.f32 %v3379_v57, %v2517_v17  ;;  %v2569_v38 = vpop.f32.mrf.mxu2 }
 0x832   : > { %v2570_v27 = vadd.f32 %v2569_v38, %v2552_v55 }
 0x833   : > { %v2536_v30 = vadd.f32 %v2535_v36, %v2518_v2 }
 0x834   : > { %v2578_v35 = vadd.f32 %v2570_v27, %v3994_v12  ;;  %v2589_v12 = vld [vmem:[%s3707_s5 + $0x8] sm:$0x1] }
 0x835   : > { %v2554_v5 = vadd.f32 %v2553_v45, %v2536_v30 }
 0x838   : > { %v2538_v22 = vpop.f32.mrf.mxu0 }
 0x839   : > { %v2571_v14 = vpop.f32.mrf.mxu2 }
 0x83a   : > { %v2572_v37 = vadd.f32 %v2571_v14, %v2554_v5 }
 0x83b   : > { %v2556_v46 = vpop.f32.mrf.mxu1 }
 0x83c   : > { %v2579_v50 = vadd.f32 %v2572_v37, %v3998_v48 }
 0x83e   : > { %v3308_v7 = vpack.c.bf16 %v2579_v50, %v2578_v35 }
 0x840   : > { %3309 = vst [vmem:[%s3707_s5] sm:$0xff] %v3308_v7   ;;  %v2540_v54 = vpop.f32.mrf.mxu0 }
 0x843   : > { %v2558_v53 = vpop.f32.mrf.mxu1 }
 0x846   : > { %v2520_v9 = vpop.f32.mrf.mxu3 }
 0x847   : > { %v2521_v1 = vadd.f32 %v3379_v57, %v2520_v9 }
 0x849   : > { %v2539_v34 = vadd.f32 %v2538_v22, %v2521_v1 }
 0x84b   : > { %v2557_v29 = vadd.f32 %v2556_v46, %v2539_v34 }
 0x84d   : > { %v2574_v41 = vpop.f32.mrf.mxu2 }
 0x84e   : > { %v2575_v16 = vadd.f32 %v2574_v41, %v2557_v29  ;;  %v2522_v31 = vpop.f32.mrf.mxu3 }
 0x850   : > { %v2580_v20 = vadd.f32 %v2575_v16, %v4002_v18 }
 0x852   : > { %v2583_v56 = vpack.c.bf16 %v2580_v20, %v2580_v20 }
 0x854   : > { %v2590_v48 = vsel %vm2588_vm11, %v2583_v56, %v2589_v12 }
 0x855   : > { %2591 = vst [vmem:[%s3707_s5 + $0x8] sm:$0x1] %v2590_v48  ;;  %v2576_v15 = vpop.f32.mrf.mxu2 }
 0x856 PF: > { %s4494_s15 = sld [smem:[#allocation5_spill]] }
 0x857   : > { %s4495_s25 = sld [smem:[#allocation3_spill]] }
 0x858   : > { %s4496_s26 = sld [smem:[#allocation4_spill]] }
 0x859   : > { %s4497_s27 = sld [smem:[#allocation6_spill]] }
 0x85a   : > { %s4498_s28 = sld [smem:[#allocation7_spill]] }
 0x85c   : > { %s23_s29 = sadd.s32 1, %s4494_s15  }
 0x85d   : > { %p20_p8 = scmp.ge.s32.totalorder %s23_s29, 6  }
 0x85f   :  { %22 = sbr.rel (!%p20_p8) target bundleno = 7 (0x7), region = 142 }

</bundles_post_ra>
